<compile_context>
chip_gen: v7x
topology: tpu7x:2x2x1
jax: 0.10.0
libtpu: 0.0.40
codegen_flags: <defaults>
</compile_context>

<pallas_src>
import functools

import jax
import jax.numpy as jnp
from jax.experimental import pallas as pl
from jax.experimental.pallas import tpu as pltpu

LATENT_DIM = 128
BN_EPS = 1e-5
TILE_M = 512                     # im2col rows per grid step (v5e: raise for big B)
VMEM_LIMIT = 32 * 1024 * 1024    # safe on v5e/v6e (128 MiB phys) and v7x (64 MiB)

# (cin, cout) per conv layer — true channel counts, no lane padding.
CONV_CFGS = ((3, 32), (32, 64), (64, 128), (128, 256))

_VMEM = pl.BlockSpec(memory_space=pltpu.MemorySpace.VMEM)


# ----------------------------- Pallas kernels ------------------------------

def conv_bn_relu_kernel(x_ref, w_ref, gamma_ref, beta_ref, o_ref, y_ref, *, bm, inv_m):
    """Fused conv (matmul on im2col patches) + training-mode BatchNorm + ReLU.

    Grid: 1-D over M tiles, "arbitrary" (BN stats are a global reduction over
    M).  Per step: one (bm,K)@(K,N) MXU matmul stored into the resident f32
    scratch y_ref.  Last step: two-pass mean/var over the resident y, fold
    gamma/beta into scale/shift, apply + ReLU, write the resident output once.
    """
    i = pl.program_id(0)
    y = jnp.dot(x_ref[...], w_ref[...], preferred_element_type=jnp.float32)
    y_ref[pl.ds(pl.multiple_of(i * bm, bm), bm), :] = y

    @pl.when(i == pl.num_programs(0) - 1)
    def _finalize():
        y_all = y_ref[...]                                     # (M, N) f32
        mean = jnp.sum(y_all, axis=0, keepdims=True) * inv_m   # (1, N)
        d = y_all - mean
        var = jnp.sum(d * d, axis=0, keepdims=True) * inv_m    # biased var (torch BN, training)
        scale = gamma_ref[...] * jax.lax.rsqrt(var + BN_EPS)
        shift = beta_ref[...] - mean * scale
        o_ref[...] = jnp.maximum(y_all * scale + shift, 0.0).astype(o_ref.dtype)


def fc_heads_kernel(x_ref, w_ref, b_ref, mu_ref, lv_ref):
    """Both linear heads fused into one (B,1024)@(1024,256) matmul; the two
    128-wide halves are split with static, lane-aligned slices."""
    y = jnp.dot(x_ref[...], w_ref[...], preferred_element_type=jnp.float32) + b_ref[...]
    mu_ref[...] = y[:, :LATENT_DIM]
    lv_ref[...] = y[:, LATENT_DIM:]


# ------------------------------ Pallas wrappers ----------------------------

def _pick_block_m(m, target=TILE_M):
    if m <= target:
        return m
    for bm in (target, 256, 128, 64, 32, 16, 8):
        if m % bm == 0:
            return bm
    return m


def conv_bn_relu(patches, w, gamma, beta):
    """patches: (M, K) bf16 im2col rows; w: (K, N) bf16.  Returns (M, N) bf16."""
    M, K = patches.shape
    N = w.shape[1]
    bm = _pick_block_m(M)
    grid = (M // bm,)

    # Resident VMEM: y scratch (f32) + full output (bf16) + weight + 2x patch tile.
    resident_bytes = M * N * 4 + M * N * 2 + K * N * 2 + 2 * bm * K * 2 + 4 * N * 4
    assert resident_bytes < VMEM_LIMIT, (
        f"resident-y conv layer needs {resident_bytes} B VMEM; add streaming fallback")

    x_spec = pl.BlockSpec((bm, K), lambda i: (i, 0))
    w_spec = pl.BlockSpec((K, N), lambda i: (0, 0))
    vec_spec = pl.BlockSpec((1, N), lambda i: (0, 0))
    out_spec = pl.BlockSpec((M, N), lambda i: (0, 0))   # fully resident, written at finalize

    return pl.pallas_call(
        functools.partial(conv_bn_relu_kernel, bm=bm, inv_m=1.0 / M),
        out_shape=jax.ShapeDtypeStruct((M, N), jnp.bfloat16),
        grid_spec=pltpu.PrefetchScalarGridSpec(
            num_scalar_prefetch=0,
            grid=grid,
            in_specs=[x_spec, w_spec, vec_spec, vec_spec],
            out_specs=out_spec,
            scratch_shapes=[pltpu.VMEM((M, N), jnp.float32)]),
        compiler_params=pltpu.CompilerParams(
            dimension_semantics=("arbitrary",),          # global BN reduction over M
            vmem_limit_bytes=VMEM_LIMIT),
    )(patches, w, gamma, beta)


def fc_heads(x, w, b):
    B = x.shape[0]
    return pl.pallas_call(
        fc_heads_kernel,
        out_shape=(jax.ShapeDtypeStruct((B, LATENT_DIM), jnp.float32),
                   jax.ShapeDtypeStruct((B, LATENT_DIM), jnp.float32)),
        in_specs=[_VMEM, _VMEM, _VMEM],
        out_specs=(_VMEM, _VMEM),
        compiler_params=pltpu.CompilerParams(vmem_limit_bytes=VMEM_LIMIT),
    )(x, w, b)


# ------------------------------- JAX glue ----------------------------------

def im2col(x_nhwc, k=3, stride=2, pad=1):
    """3x3 / stride-2 / pad-1 patches.  Returns (B*Ho*Wo, k*k*C) with patch
    element ordering (kh, kw, c_in)."""
    B, H, W, C = x_nhwc.shape
    xp = jnp.pad(x_nhwc, ((0, 0), (pad, pad), (pad, pad), (0, 0)))
    Ho = (H + 2 * pad - k) // stride + 1
    Wo = (W + 2 * pad - k) // stride + 1
    pieces = []
    for di in range(k):
        for dj in range(k):
            pieces.append(
                xp[:, di:di + Ho * stride:stride, dj:dj + Wo * stride:stride, :])
    patches = jnp.concatenate(pieces, axis=-1)            # (B, Ho, Wo, k*k*C)
    return patches.reshape(B * Ho * Wo, k * k * C), (B, Ho, Wo)


def init_params(key):
    """Deterministic synthetic parameters with Encoder.__init__ shapes."""
    params = {"conv": []}
    for (cin, cout) in CONV_CFGS:
        key, kw = jax.random.split(key)
        # Rows in (kh, kw, c_in) order == torch (Cout,Cin,kH,kW) permuted to
        # (kH,kW,Cin,Cout) then reshaped to (9*Cin, Cout).
        w = (jax.random.normal(kw, (9 * cin, cout), jnp.float32)
             / jnp.sqrt(9.0 * cin)).astype(jnp.bfloat16)
        # Conv bias intentionally omitted: cancelled exactly by the training-mode
        # BatchNorm mean subtraction that immediately follows.
        gamma = jnp.ones((1, cout), jnp.float32)    # BN default gamma=1
        beta = jnp.zeros((1, cout), jnp.float32)    # BN default beta=0
        params["conv"].append((w, gamma, beta))

    key, k1, k2, k3, k4 = jax.random.split(key, 5)
    wm = jax.random.normal(k1, (1024, LATENT_DIM), jnp.float32) / jnp.sqrt(1024.0)
    bm = 0.01 * jax.random.normal(k2, (1, LATENT_DIM), jnp.float32)
    wv = jax.random.normal(k3, (1024, LATENT_DIM), jnp.float32) / jnp.sqrt(1024.0)
    bv = 0.01 * jax.random.normal(k4, (1, LATENT_DIM), jnp.float32)

    # FC weight rows are in torch.flatten (NCHW) order; permute them once to
    # NHWC-flatten order so the kernel consumes the NHWC activation directly.
    C, H, W = 256, 2, 2
    hwc = jnp.arange(H * W * C)
    h = hwc // (W * C)
    w_ = (hwc // C) % W
    c = hwc % C
    perm = c * (H * W) + h * W + w_
    params["fc_w"] = jnp.concatenate([wm[perm, :], wv[perm, :]], axis=1).astype(jnp.bfloat16)
    params["fc_b"] = jnp.concatenate([bm, bv], axis=1)     # (1, 256) f32
    return params


def encoder_forward(x_nchw, params):
    """Equivalent of Encoder.forward (training-mode BatchNorm).
    x_nchw: (B, 3, 32, 32) float32."""
    x = jnp.transpose(x_nchw, (0, 2, 3, 1)).astype(jnp.bfloat16)   # NCHW -> NHWC, bf16
    for (w, gamma, beta) in params["conv"]:
        patches, (B, Ho, Wo) = im2col(x)
        out = conv_bn_relu(patches, w, gamma, beta)                # (B*Ho*Wo, Cout) bf16
        x = out.reshape(B, Ho, Wo, w.shape[1])
    B = x.shape[0]
    x_flat = x.reshape(B, -1)          # NHWC flatten; FC rows pre-permuted to match torch
    mu, log_var = fc_heads(x_flat, params["fc_w"], params["fc_b"])
    return mu, log_var


if __name__ == "__main__":
    key = jax.random.PRNGKey(0)
    key_x, key_p = jax.random.split(key)
    # Smallest shape consistent with the module: 32x32 spatial so the flatten
    # produces exactly 1024 features for the nn.Linear(1024, latent_dim) heads.
    x = jax.random.normal(key_x, (2, 3, 32, 32), jnp.float32)
    params = init_params(key_p)

    mu, log_var = jax.jit(encoder_forward)(x, params)
    jax.block_until_ready((mu, log_var))

    assert mu.shape == (2, LATENT_DIM) and log_var.shape == (2, LATENT_DIM)
    assert mu.dtype == jnp.float32 and log_var.dtype == jnp.float32
    assert bool(jnp.all(jnp.isfinite(mu))) and bool(jnp.all(jnp.isfinite(log_var)))
    print("KERNEL_OK")
</pallas_src>

<mosaic_0001>
module attributes {stable_mosaic.version = 11 : i64} {
  func.func @conv_bn_relu_kernel(%arg0: i32, %arg1: memref<512x27xbf16, #tpu.memory_space<vmem>>, %arg2: memref<27x32xbf16, #tpu.memory_space<vmem>>, %arg3: memref<1x32xf32, #tpu.memory_space<vmem>>, %arg4: memref<1x32xf32, #tpu.memory_space<vmem>>, %arg5: memref<512x32xbf16, #tpu.memory_space<vmem>>, %arg6: memref<512x32xf32, #tpu.memory_space<vmem>>) attributes {dimension_semantics = [#tpu.dimension_semantics<arbitrary>], iteration_bounds = array<i64: 1>, scalar_prefetch = 0 : i64, scratch_operands = 1 : i64, tpu.core_type = #tpu.core_type<tc>, window_params = [{transform_indices = @transform_0, window_bounds = array<i64: 512, 27>}, {pipeline_mode = #tpu.pipeline_mode<synchronous>, transform_indices = @transform_1, window_bounds = array<i64: 27, 32>}, {pipeline_mode = #tpu.pipeline_mode<synchronous>, transform_indices = @transform_2, window_bounds = array<i64: 1, 32>}, {pipeline_mode = #tpu.pipeline_mode<synchronous>, transform_indices = @transform_3, window_bounds = array<i64: 1, 32>}, {pipeline_mode = #tpu.pipeline_mode<synchronous>, transform_indices = @transform_4, window_bounds = array<i64: 512, 32>}]} {
    %c0 = arith.constant 0 : index
    %c0_0 = arith.constant 0 : index
    %0 = vector.load %arg1[%c0, %c0_0] : memref<512x27xbf16, #tpu.memory_space<vmem>>, vector<512x27xbf16>
    %c0_1 = arith.constant 0 : index
    %c0_2 = arith.constant 0 : index
    %1 = vector.load %arg2[%c0_1, %c0_2] : memref<27x32xbf16, #tpu.memory_space<vmem>>, vector<27x32xbf16>
    %cst = arith.constant dense<0.000000e+00> : vector<512x32xf32>
    %2 = tpu.matmul %0, %1, %cst {dimension_numbers = #tpu.dot_dimension_numbers<[1], [0], [0], [1], [0, 0, 1, 1], [], []>} : vector<512x27xbf16>, vector<27x32xbf16>, vector<512x32xf32> -> vector<512x32xf32>
    %c512_i32 = arith.constant 512 : i32
    %3 = arith.muli %arg0, %c512_i32 : i32
    %4 = tpu.assume_multiple %3, 512 : i32
    %5 = arith.index_cast %4 : i32 to index
    %c0_3 = arith.constant 0 : index
    %6 = vector.load %arg6[%5, %c0_3] : memref<512x32xf32, #tpu.memory_space<vmem>>, vector<512x32xf32>
    tpu.vector_store %arg6[%5, %c0_3], %2 {strides = array<i32>} : memref<512x32xf32, #tpu.memory_space<vmem>>, vector<512x32xf32>,
    %c0_i32 = arith.constant 0 : i32
    %7 = arith.cmpi eq, %arg0, %c0_i32 : i32
    %8 = arith.extui %7 : i1 to i32
    %c0_i32_4 = arith.constant 0 : i32
    %9 = arith.cmpi ne, %8, %c0_i32_4 : i32
    scf.if %9 {
      %c0_5 = arith.constant 0 : index
      %c0_6 = arith.constant 0 : index
      %10 = vector.load %arg6[%c0_5, %c0_6] : memref<512x32xf32, #tpu.memory_space<vmem>>, vector<512x32xf32>
      %cst_7 = arith.constant dense<0.000000e+00> : vector<32xf32>
      %11 = vector.multi_reduction <add>, %10, %cst_7 [0] : vector<512x32xf32> to vector<32xf32>
      %12 = vector.shape_cast %11 : vector<32xf32> to vector<1x32xf32>
      %cst_8 = arith.constant 0.001953125 : f32
      %13 = vector.broadcast %cst_8 : f32 to vector<1x32xf32>
      %14 = arith.mulf %12, %13 : vector<1x32xf32>
      %15 = vector.broadcast %14 : vector<1x32xf32> to vector<512x32xf32>
      %16 = arith.subf %10, %15 : vector<512x32xf32>
      %17 = arith.mulf %16, %16 : vector<512x32xf32>
      %cst_9 = arith.constant dense<0.000000e+00> : vector<32xf32>
      %18 = vector.multi_reduction <add>, %17, %cst_9 [0] : vector<512x32xf32> to vector<32xf32>
      %19 = vector.shape_cast %18 : vector<32xf32> to vector<1x32xf32>
      %cst_10 = arith.constant 0.001953125 : f32
      %20 = vector.broadcast %cst_10 : f32 to vector<1x32xf32>
      %21 = arith.mulf %19, %20 : vector<1x32xf32>
      %c0_11 = arith.constant 0 : index
      %c0_12 = arith.constant 0 : index
      %22 = vector.load %arg3[%c0_11, %c0_12] : memref<1x32xf32, #tpu.memory_space<vmem>>, vector<1x32xf32>
      %cst_13 = arith.constant 9.99999974E-6 : f32
      %23 = vector.broadcast %cst_13 : f32 to vector<1x32xf32>
      %24 = arith.addf %21, %23 : vector<1x32xf32>
      %25 = math.rsqrt %24 : vector<1x32xf32>
      %26 = arith.mulf %22, %25 : vector<1x32xf32>
      %c0_14 = arith.constant 0 : index
      %c0_15 = arith.constant 0 : index
      %27 = vector.load %arg4[%c0_14, %c0_15] : memref<1x32xf32, #tpu.memory_space<vmem>>, vector<1x32xf32>
      %28 = arith.mulf %14, %26 : vector<1x32xf32>
      %29 = arith.subf %27, %28 : vector<1x32xf32>
      %30 = vector.broadcast %26 : vector<1x32xf32> to vector<512x32xf32>
      %31 = arith.mulf %10, %30 : vector<512x32xf32>
      %32 = vector.broadcast %29 : vector<1x32xf32> to vector<512x32xf32>
      %33 = arith.addf %31, %32 : vector<512x32xf32>
      %cst_16 = arith.constant 0.000000e+00 : f32
      %34 = vector.broadcast %cst_16 : f32 to vector<512x32xf32>
      %35 = arith.maximumf %33, %34 : vector<512x32xf32>
      %36 = arith.truncf %35 : vector<512x32xf32> to vector<512x32xbf16>
      %c0_17 = arith.constant 0 : index
      %c0_18 = arith.constant 0 : index
      %37 = vector.load %arg5[%c0_17, %c0_18] : memref<512x32xbf16, #tpu.memory_space<vmem>>, vector<512x32xbf16>
      tpu.vector_store %arg5[%c0_17, %c0_18], %36 {strides = array<i32>} : memref<512x32xbf16, #tpu.memory_space<vmem>>, vector<512x32xbf16>,
    } else {
    }
    return
  }
  func.func @transform_0(%arg0: i32) -> (i32, i32) {
    %c0_i32 = arith.constant 0 : i32
    %c0_i32_0 = arith.constant 0 : i32
    return %arg0, %c0_i32 : i32, i32
  }
  func.func @transform_1(%arg0: i32) -> (i32, i32) {
    %c0_i32 = arith.constant 0 : i32
    %c0_i32_0 = arith.constant 0 : i32
    %c0_i32_1 = arith.constant 0 : i32
    return %c0_i32, %c0_i32_0 : i32, i32
  }
  func.func @transform_2(%arg0: i32) -> (i32, i32) {
    %c0_i32 = arith.constant 0 : i32
    %c0_i32_0 = arith.constant 0 : i32
    %c0_i32_1 = arith.constant 0 : i32
    return %c0_i32, %c0_i32_0 : i32, i32
  }
  func.func @transform_3(%arg0: i32) -> (i32, i32) {
    %c0_i32 = arith.constant 0 : i32
    %c0_i32_0 = arith.constant 0 : i32
    %c0_i32_1 = arith.constant 0 : i32
    return %c0_i32, %c0_i32_0 : i32, i32
  }
  func.func @transform_4(%arg0: i32) -> (i32, i32) {
    %c0_i32 = arith.constant 0 : i32
    %c0_i32_0 = arith.constant 0 : i32
    %c0_i32_1 = arith.constant 0 : i32
    return %c0_i32, %c0_i32_0 : i32, i32
  }
}

module attributes {stable_mosaic.version = 11 : i64} {
  func.func @conv_bn_relu_kernel(%arg0: i32, %arg1: memref<128x288xbf16, #tpu.memory_space<vmem>>, %arg2: memref<288x64xbf16, #tpu.memory_space<vmem>>, %arg3: memref<1x64xf32, #tpu.memory_space<vmem>>, %arg4: memref<1x64xf32, #tpu.memory_space<vmem>>, %arg5: memref<128x64xbf16, #tpu.memory_space<vmem>>, %arg6: memref<128x64xf32, #tpu.memory_space<vmem>>) attributes {dimension_semantics = [#tpu.dimension_semantics<arbitrary>], iteration_bounds = array<i64: 1>, scalar_prefetch = 0 : i64, scratch_operands = 1 : i64, tpu.core_type = #tpu.core_type<tc>, window_params = [{transform_indices = @transform_0, window_bounds = array<i64: 128, 288>}, {pipeline_mode = #tpu.pipeline_mode<synchronous>, transform_indices = @transform_1, window_bounds = array<i64: 288, 64>}, {pipeline_mode = #tpu.pipeline_mode<synchronous>, transform_indices = @transform_2, window_bounds = array<i64: 1, 64>}, {pipeline_mode = #tpu.pipeline_mode<synchronous>, transform_indices = @transform_3, window_bounds = array<i64: 1, 64>}, {pipeline_mode = #tpu.pipeline_mode<synchronous>, transform_indices = @transform_4, window_bounds = array<i64: 128, 64>}]} {
    %c0 = arith.constant 0 : index
    %c0_0 = arith.constant 0 : index
    %0 = vector.load %arg1[%c0, %c0_0] : memref<128x288xbf16, #tpu.memory_space<vmem>>, vector<128x288xbf16>
    %c0_1 = arith.constant 0 : index
    %c0_2 = arith.constant 0 : index
    %1 = vector.load %arg2[%c0_1, %c0_2] : memref<288x64xbf16, #tpu.memory_space<vmem>>, vector<288x64xbf16>
    %cst = arith.constant dense<0.000000e+00> : vector<128x64xf32>
    %2 = tpu.matmul %0, %1, %cst {dimension_numbers = #tpu.dot_dimension_numbers<[1], [0], [0], [1], [0, 0, 1, 1], [], []>} : vector<128x288xbf16>, vector<288x64xbf16>, vector<128x64xf32> -> vector<128x64xf32>
    %c128_i32 = arith.constant 128 : i32
    %3 = arith.muli %arg0, %c128_i32 : i32
    %4 = tpu.assume_multiple %3, 128 : i32
    %5 = arith.index_cast %4 : i32 to index
    %c0_3 = arith.constant 0 : index
    %6 = vector.load %arg6[%5, %c0_3] : memref<128x64xf32, #tpu.memory_space<vmem>>, vector<128x64xf32>
    tpu.vector_store %arg6[%5, %c0_3], %2 {strides = array<i32>} : memref<128x64xf32, #tpu.memory_space<vmem>>, vector<128x64xf32>,
    %c0_i32 = arith.constant 0 : i32
    %7 = arith.cmpi eq, %arg0, %c0_i32 : i32
    %8 = arith.extui %7 : i1 to i32
    %c0_i32_4 = arith.constant 0 : i32
    %9 = arith.cmpi ne, %8, %c0_i32_4 : i32
    scf.if %9 {
      %c0_5 = arith.constant 0 : index
      %c0_6 = arith.constant 0 : index
      %10 = vector.load %arg6[%c0_5, %c0_6] : memref<128x64xf32, #tpu.memory_space<vmem>>, vector<128x64xf32>
      %cst_7 = arith.constant dense<0.000000e+00> : vector<64xf32>
      %11 = vector.multi_reduction <add>, %10, %cst_7 [0] : vector<128x64xf32> to vector<64xf32>
      %12 = vector.shape_cast %11 : vector<64xf32> to vector<1x64xf32>
      %cst_8 = arith.constant 7.812500e-03 : f32
      %13 = vector.broadcast %cst_8 : f32 to vector<1x64xf32>
      %14 = arith.mulf %12, %13 : vector<1x64xf32>
      %15 = vector.broadcast %14 : vector<1x64xf32> to vector<128x64xf32>
      %16 = arith.subf %10, %15 : vector<128x64xf32>
      %17 = arith.mulf %16, %16 : vector<128x64xf32>
      %cst_9 = arith.constant dense<0.000000e+00> : vector<64xf32>
      %18 = vector.multi_reduction <add>, %17, %cst_9 [0] : vector<128x64xf32> to vector<64xf32>
      %19 = vector.shape_cast %18 : vector<64xf32> to vector<1x64xf32>
      %cst_10 = arith.constant 7.812500e-03 : f32
      %20 = vector.broadcast %cst_10 : f32 to vector<1x64xf32>
      %21 = arith.mulf %19, %20 : vector<1x64xf32>
      %c0_11 = arith.constant 0 : index
      %c0_12 = arith.constant 0 : index
      %22 = vector.load %arg3[%c0_11, %c0_12] : memref<1x64xf32, #tpu.memory_space<vmem>>, vector<1x64xf32>
      %cst_13 = arith.constant 9.99999974E-6 : f32
      %23 = vector.broadcast %cst_13 : f32 to vector<1x64xf32>
      %24 = arith.addf %21, %23 : vector<1x64xf32>
      %25 = math.rsqrt %24 : vector<1x64xf32>
      %26 = arith.mulf %22, %25 : vector<1x64xf32>
      %c0_14 = arith.constant 0 : index
      %c0_15 = arith.constant 0 : index
      %27 = vector.load %arg4[%c0_14, %c0_15] : memref<1x64xf32, #tpu.memory_space<vmem>>, vector<1x64xf32>
      %28 = arith.mulf %14, %26 : vector<1x64xf32>
      %29 = arith.subf %27, %28 : vector<1x64xf32>
      %30 = vector.broadcast %26 : vector<1x64xf32> to vector<128x64xf32>
      %31 = arith.mulf %10, %30 : vector<128x64xf32>
      %32 = vector.broadcast %29 : vector<1x64xf32> to vector<128x64xf32>
      %33 = arith.addf %31, %32 : vector<128x64xf32>
      %cst_16 = arith.constant 0.000000e+00 : f32
      %34 = vector.broadcast %cst_16 : f32 to vector<128x64xf32>
      %35 = arith.maximumf %33, %34 : vector<128x64xf32>
      %36 = arith.truncf %35 : vector<128x64xf32> to vector<128x64xbf16>
      %c0_17 = arith.constant 0 : index
      %c0_18 = arith.constant 0 : index
      %37 = vector.load %arg5[%c0_17, %c0_18] : memref<128x64xbf16, #tpu.memory_space<vmem>>, vector<128x64xbf16>
      tpu.vector_store %arg5[%c0_17, %c0_18], %36 {strides = array<i32>} : memref<128x64xbf16, #tpu.memory_space<vmem>>, vector<128x64xbf16>,
    } else {
    }
    return
  }
  func.func @transform_0(%arg0: i32) -> (i32, i32) {
    %c0_i32 = arith.constant 0 : i32
    %c0_i32_0 = arith.constant 0 : i32
    return %arg0, %c0_i32 : i32, i32
  }
  func.func @transform_1(%arg0: i32) -> (i32, i32) {
    %c0_i32 = arith.constant 0 : i32
    %c0_i32_0 = arith.constant 0 : i32
    %c0_i32_1 = arith.constant 0 : i32
    return %c0_i32, %c0_i32_0 : i32, i32
  }
  func.func @transform_2(%arg0: i32) -> (i32, i32) {
    %c0_i32 = arith.constant 0 : i32
    %c0_i32_0 = arith.constant 0 : i32
    %c0_i32_1 = arith.constant 0 : i32
    return %c0_i32, %c0_i32_0 : i32, i32
  }
  func.func @transform_3(%arg0: i32) -> (i32, i32) {
    %c0_i32 = arith.constant 0 : i32
    %c0_i32_0 = arith.constant 0 : i32
    %c0_i32_1 = arith.constant 0 : i32
    return %c0_i32, %c0_i32_0 : i32, i32
  }
  func.func @transform_4(%arg0: i32) -> (i32, i32) {
    %c0_i32 = arith.constant 0 : i32
    %c0_i32_0 = arith.constant 0 : i32
    %c0_i32_1 = arith.constant 0 : i32
    return %c0_i32, %c0_i32_0 : i32, i32
  }
}

module attributes {stable_mosaic.version = 11 : i64} {
  func.func @conv_bn_relu_kernel(%arg0: i32, %arg1: memref<32x576xbf16, #tpu.memory_space<vmem>>, %arg2: memref<576x128xbf16, #tpu.memory_space<vmem>>, %arg3: memref<1x128xf32, #tpu.memory_space<vmem>>, %arg4: memref<1x128xf32, #tpu.memory_space<vmem>>, %arg5: memref<32x128xbf16, #tpu.memory_space<vmem>>, %arg6: memref<32x128xf32, #tpu.memory_space<vmem>>) attributes {dimension_semantics = [#tpu.dimension_semantics<arbitrary>], iteration_bounds = array<i64: 1>, scalar_prefetch = 0 : i64, scratch_operands = 1 : i64, tpu.core_type = #tpu.core_type<tc>, window_params = [{transform_indices = @transform_0, window_bounds = array<i64: 32, 576>}, {pipeline_mode = #tpu.pipeline_mode<synchronous>, transform_indices = @transform_1, window_bounds = array<i64: 576, 128>}, {pipeline_mode = #tpu.pipeline_mode<synchronous>, transform_indices = @transform_2, window_bounds = array<i64: 1, 128>}, {pipeline_mode = #tpu.pipeline_mode<synchronous>, transform_indices = @transform_3, window_bounds = array<i64: 1, 128>}, {pipeline_mode = #tpu.pipeline_mode<synchronous>, transform_indices = @transform_4, window_bounds = array<i64: 32, 128>}]} {
    %c0 = arith.constant 0 : index
    %c0_0 = arith.constant 0 : index
    %0 = vector.load %arg1[%c0, %c0_0] : memref<32x576xbf16, #tpu.memory_space<vmem>>, vector<32x576xbf16>
    %c0_1 = arith.constant 0 : index
    %c0_2 = arith.constant 0 : index
    %1 = vector.load %arg2[%c0_1, %c0_2] : memref<576x128xbf16, #tpu.memory_space<vmem>>, vector<576x128xbf16>
    %cst = arith.constant dense<0.000000e+00> : vector<32x128xf32>
    %2 = tpu.matmul %0, %1, %cst {dimension_numbers = #tpu.dot_dimension_numbers<[1], [0], [0], [1], [0, 0, 1, 1], [], []>} : vector<32x576xbf16>, vector<576x128xbf16>, vector<32x128xf32> -> vector<32x128xf32>
    %c32_i32 = arith.constant 32 : i32
    %3 = arith.muli %arg0, %c32_i32 : i32
    %4 = tpu.assume_multiple %3, 32 : i32
    %5 = arith.index_cast %4 : i32 to index
    %c0_3 = arith.constant 0 : index
    %6 = vector.load %arg6[%5, %c0_3] : memref<32x128xf32, #tpu.memory_space<vmem>>, vector<32x128xf32>
    tpu.vector_store %arg6[%5, %c0_3], %2 {strides = array<i32>} : memref<32x128xf32, #tpu.memory_space<vmem>>, vector<32x128xf32>,
    %c0_i32 = arith.constant 0 : i32
    %7 = arith.cmpi eq, %arg0, %c0_i32 : i32
    %8 = arith.extui %7 : i1 to i32
    %c0_i32_4 = arith.constant 0 : i32
    %9 = arith.cmpi ne, %8, %c0_i32_4 : i32
    scf.if %9 {
      %c0_5 = arith.constant 0 : index
      %c0_6 = arith.constant 0 : index
      %10 = vector.load %arg6[%c0_5, %c0_6] : memref<32x128xf32, #tpu.memory_space<vmem>>, vector<32x128xf32>
      %cst_7 = arith.constant dense<0.000000e+00> : vector<128xf32>
      %11 = vector.multi_reduction <add>, %10, %cst_7 [0] : vector<32x128xf32> to vector<128xf32>
      %12 = vector.shape_cast %11 : vector<128xf32> to vector<1x128xf32>
      %cst_8 = arith.constant 3.125000e-02 : f32
      %13 = vector.broadcast %cst_8 : f32 to vector<1x128xf32>
      %14 = arith.mulf %12, %13 : vector<1x128xf32>
      %15 = vector.broadcast %14 : vector<1x128xf32> to vector<32x128xf32>
      %16 = arith.subf %10, %15 : vector<32x128xf32>
      %17 = arith.mulf %16, %16 : vector<32x128xf32>
      %cst_9 = arith.constant dense<0.000000e+00> : vector<128xf32>
      %18 = vector.multi_reduction <add>, %17, %cst_9 [0] : vector<32x128xf32> to vector<128xf32>
      %19 = vector.shape_cast %18 : vector<128xf32> to vector<1x128xf32>
      %cst_10 = arith.constant 3.125000e-02 : f32
      %20 = vector.broadcast %cst_10 : f32 to vector<1x128xf32>
      %21 = arith.mulf %19, %20 : vector<1x128xf32>
      %c0_11 = arith.constant 0 : index
      %c0_12 = arith.constant 0 : index
      %22 = vector.load %arg3[%c0_11, %c0_12] : memref<1x128xf32, #tpu.memory_space<vmem>>, vector<1x128xf32>
      %cst_13 = arith.constant 9.99999974E-6 : f32
      %23 = vector.broadcast %cst_13 : f32 to vector<1x128xf32>
      %24 = arith.addf %21, %23 : vector<1x128xf32>
      %25 = math.rsqrt %24 : vector<1x128xf32>
      %26 = arith.mulf %22, %25 : vector<1x128xf32>
      %c0_14 = arith.constant 0 : index
      %c0_15 = arith.constant 0 : index
      %27 = vector.load %arg4[%c0_14, %c0_15] : memref<1x128xf32, #tpu.memory_space<vmem>>, vector<1x128xf32>
      %28 = arith.mulf %14, %26 : vector<1x128xf32>
      %29 = arith.subf %27, %28 : vector<1x128xf32>
      %30 = vector.broadcast %26 : vector<1x128xf32> to vector<32x128xf32>
      %31 = arith.mulf %10, %30 : vector<32x128xf32>
      %32 = vector.broadcast %29 : vector<1x128xf32> to vector<32x128xf32>
      %33 = arith.addf %31, %32 : vector<32x128xf32>
      %cst_16 = arith.constant 0.000000e+00 : f32
      %34 = vector.broadcast %cst_16 : f32 to vector<32x128xf32>
      %35 = arith.maximumf %33, %34 : vector<32x128xf32>
      %36 = arith.truncf %35 : vector<32x128xf32> to vector<32x128xbf16>
      %c0_17 = arith.constant 0 : index
      %c0_18 = arith.constant 0 : index
      %37 = vector.load %arg5[%c0_17, %c0_18] : memref<32x128xbf16, #tpu.memory_space<vmem>>, vector<32x128xbf16>
      tpu.vector_store %arg5[%c0_17, %c0_18], %36 {strides = array<i32>} : memref<32x128xbf16, #tpu.memory_space<vmem>>, vector<32x128xbf16>,
    } else {
    }
    return
  }
  func.func @transform_0(%arg0: i32) -> (i32, i32) {
    %c0_i32 = arith.constant 0 : i32
    %c0_i32_0 = arith.constant 0 : i32
    return %arg0, %c0_i32 : i32, i32
  }
  func.func @transform_1(%arg0: i32) -> (i32, i32) {
    %c0_i32 = arith.constant 0 : i32
    %c0_i32_0 = arith.constant 0 : i32
    %c0_i32_1 = arith.constant 0 : i32
    return %c0_i32, %c0_i32_0 : i32, i32
  }
  func.func @transform_2(%arg0: i32) -> (i32, i32) {
    %c0_i32 = arith.constant 0 : i32
    %c0_i32_0 = arith.constant 0 : i32
    %c0_i32_1 = arith.constant 0 : i32
    return %c0_i32, %c0_i32_0 : i32, i32
  }
  func.func @transform_3(%arg0: i32) -> (i32, i32) {
    %c0_i32 = arith.constant 0 : i32
    %c0_i32_0 = arith.constant 0 : i32
    %c0_i32_1 = arith.constant 0 : i32
    return %c0_i32, %c0_i32_0 : i32, i32
  }
  func.func @transform_4(%arg0: i32) -> (i32, i32) {
    %c0_i32 = arith.constant 0 : i32
    %c0_i32_0 = arith.constant 0 : i32
    %c0_i32_1 = arith.constant 0 : i32
    return %c0_i32, %c0_i32_0 : i32, i32
  }
}

module attributes {stable_mosaic.version = 11 : i64} {
  func.func @fc_heads_kernel(%arg0: memref<2x1024xbf16, #tpu.memory_space<vmem>>, %arg1: memref<1024x256xbf16, #tpu.memory_space<vmem>>, %arg2: memref<1x256xf32, #tpu.memory_space<vmem>>, %arg3: memref<2x128xf32, #tpu.memory_space<vmem>>, %arg4: memref<2x128xf32, #tpu.memory_space<vmem>>) attributes {dimension_semantics = [], scalar_prefetch = 0 : i64, scratch_operands = 0 : i64, tpu.core_type = #tpu.core_type<tc>} {
    %c0 = arith.constant 0 : index
    %c0_0 = arith.constant 0 : index
    %0 = vector.load %arg0[%c0, %c0_0] : memref<2x1024xbf16, #tpu.memory_space<vmem>>, vector<2x1024xbf16>
    %c0_1 = arith.constant 0 : index
    %c0_2 = arith.constant 0 : index
    %1 = vector.load %arg1[%c0_1, %c0_2] : memref<1024x256xbf16, #tpu.memory_space<vmem>>, vector<1024x256xbf16>
    %cst = arith.constant dense<0.000000e+00> : vector<2x256xf32>
    %2 = tpu.matmul %0, %1, %cst {dimension_numbers = #tpu.dot_dimension_numbers<[1], [0], [0], [1], [0, 0, 1, 1], [], []>} : vector<2x1024xbf16>, vector<1024x256xbf16>, vector<2x256xf32> -> vector<2x256xf32>
    %c0_3 = arith.constant 0 : index
    %c0_4 = arith.constant 0 : index
    %3 = vector.load %arg2[%c0_3, %c0_4] : memref<1x256xf32, #tpu.memory_space<vmem>>, vector<1x256xf32>
    %4 = vector.broadcast %3 : vector<1x256xf32> to vector<2x256xf32>
    %5 = arith.addf %2, %4 : vector<2x256xf32>
    %6 = vector.extract_strided_slice %5 {offsets = [0, 0], sizes = [2, 128], strides = [1, 1]} : vector<2x256xf32> to vector<2x128xf32>
    %c0_5 = arith.constant 0 : index
    %c0_6 = arith.constant 0 : index
    %7 = vector.load %arg3[%c0_5, %c0_6] : memref<2x128xf32, #tpu.memory_space<vmem>>, vector<2x128xf32>
    tpu.vector_store %arg3[%c0_5, %c0_6], %6 {strides = array<i32>} : memref<2x128xf32, #tpu.memory_space<vmem>>, vector<2x128xf32>,
    %8 = vector.extract_strided_slice %5 {offsets = [0, 128], sizes = [2, 128], strides = [1, 1]} : vector<2x256xf32> to vector<2x128xf32>
    %c0_7 = arith.constant 0 : index
    %c0_8 = arith.constant 0 : index
    %9 = vector.load %arg4[%c0_7, %c0_8] : memref<2x128xf32, #tpu.memory_space<vmem>>, vector<2x128xf32>
    tpu.vector_store %arg4[%c0_7, %c0_8], %8 {strides = array<i32>} : memref<2x128xf32, #tpu.memory_space<vmem>>, vector<2x128xf32>,
    return
  }
}

module attributes {stable_mosaic.version = 11 : i64} {
  func.func @conv_bn_relu_kernel(%arg0: i32, %arg1: memref<8x1152xbf16, #tpu.memory_space<vmem>>, %arg2: memref<1152x256xbf16, #tpu.memory_space<vmem>>, %arg3: memref<1x256xf32, #tpu.memory_space<vmem>>, %arg4: memref<1x256xf32, #tpu.memory_space<vmem>>, %arg5: memref<8x256xbf16, #tpu.memory_space<vmem>>, %arg6: memref<8x256xf32, #tpu.memory_space<vmem>>) attributes {dimension_semantics = [#tpu.dimension_semantics<arbitrary>], iteration_bounds = array<i64: 1>, scalar_prefetch = 0 : i64, scratch_operands = 1 : i64, tpu.core_type = #tpu.core_type<tc>, window_params = [{transform_indices = @transform_0, window_bounds = array<i64: 8, 1152>}, {pipeline_mode = #tpu.pipeline_mode<synchronous>, transform_indices = @transform_1, window_bounds = array<i64: 1152, 256>}, {pipeline_mode = #tpu.pipeline_mode<synchronous>, transform_indices = @transform_2, window_bounds = array<i64: 1, 256>}, {pipeline_mode = #tpu.pipeline_mode<synchronous>, transform_indices = @transform_3, window_bounds = array<i64: 1, 256>}, {pipeline_mode = #tpu.pipeline_mode<synchronous>, transform_indices = @transform_4, window_bounds = array<i64: 8, 256>}]} {
    %c0 = arith.constant 0 : index
    %c0_0 = arith.constant 0 : index
    %0 = vector.load %arg1[%c0, %c0_0] : memref<8x1152xbf16, #tpu.memory_space<vmem>>, vector<8x1152xbf16>
    %c0_1 = arith.constant 0 : index
    %c0_2 = arith.constant 0 : index
    %1 = vector.load %arg2[%c0_1, %c0_2] : memref<1152x256xbf16, #tpu.memory_space<vmem>>, vector<1152x256xbf16>
    %cst = arith.constant dense<0.000000e+00> : vector<8x256xf32>
    %2 = tpu.matmul %0, %1, %cst {dimension_numbers = #tpu.dot_dimension_numbers<[1], [0], [0], [1], [0, 0, 1, 1], [], []>} : vector<8x1152xbf16>, vector<1152x256xbf16>, vector<8x256xf32> -> vector<8x256xf32>
    %c8_i32 = arith.constant 8 : i32
    %3 = arith.muli %arg0, %c8_i32 : i32
    %4 = tpu.assume_multiple %3, 8 : i32
    %5 = arith.index_cast %4 : i32 to index
    %c0_3 = arith.constant 0 : index
    %6 = vector.load %arg6[%5, %c0_3] : memref<8x256xf32, #tpu.memory_space<vmem>>, vector<8x256xf32>
    tpu.vector_store %arg6[%5, %c0_3], %2 {strides = array<i32>} : memref<8x256xf32, #tpu.memory_space<vmem>>, vector<8x256xf32>,
    %c0_i32 = arith.constant 0 : i32
    %7 = arith.cmpi eq, %arg0, %c0_i32 : i32
    %8 = arith.extui %7 : i1 to i32
    %c0_i32_4 = arith.constant 0 : i32
    %9 = arith.cmpi ne, %8, %c0_i32_4 : i32
    scf.if %9 {
      %c0_5 = arith.constant 0 : index
      %c0_6 = arith.constant 0 : index
      %10 = vector.load %arg6[%c0_5, %c0_6] : memref<8x256xf32, #tpu.memory_space<vmem>>, vector<8x256xf32>
      %cst_7 = arith.constant dense<0.000000e+00> : vector<256xf32>
      %11 = vector.multi_reduction <add>, %10, %cst_7 [0] : vector<8x256xf32> to vector<256xf32>
      %12 = vector.shape_cast %11 : vector<256xf32> to vector<1x256xf32>
      %cst_8 = arith.constant 1.250000e-01 : f32
      %13 = vector.broadcast %cst_8 : f32 to vector<1x256xf32>
      %14 = arith.mulf %12, %13 : vector<1x256xf32>
      %15 = vector.broadcast %14 : vector<1x256xf32> to vector<8x256xf32>
      %16 = arith.subf %10, %15 : vector<8x256xf32>
      %17 = arith.mulf %16, %16 : vector<8x256xf32>
      %cst_9 = arith.constant dense<0.000000e+00> : vector<256xf32>
      %18 = vector.multi_reduction <add>, %17, %cst_9 [0] : vector<8x256xf32> to vector<256xf32>
      %19 = vector.shape_cast %18 : vector<256xf32> to vector<1x256xf32>
      %cst_10 = arith.constant 1.250000e-01 : f32
      %20 = vector.broadcast %cst_10 : f32 to vector<1x256xf32>
      %21 = arith.mulf %19, %20 : vector<1x256xf32>
      %c0_11 = arith.constant 0 : index
      %c0_12 = arith.constant 0 : index
      %22 = vector.load %arg3[%c0_11, %c0_12] : memref<1x256xf32, #tpu.memory_space<vmem>>, vector<1x256xf32>
      %cst_13 = arith.constant 9.99999974E-6 : f32
      %23 = vector.broadcast %cst_13 : f32 to vector<1x256xf32>
      %24 = arith.addf %21, %23 : vector<1x256xf32>
      %25 = math.rsqrt %24 : vector<1x256xf32>
      %26 = arith.mulf %22, %25 : vector<1x256xf32>
      %c0_14 = arith.constant 0 : index
      %c0_15 = arith.constant 0 : index
      %27 = vector.load %arg4[%c0_14, %c0_15] : memref<1x256xf32, #tpu.memory_space<vmem>>, vector<1x256xf32>
      %28 = arith.mulf %14, %26 : vector<1x256xf32>
      %29 = arith.subf %27, %28 : vector<1x256xf32>
      %30 = vector.broadcast %26 : vector<1x256xf32> to vector<8x256xf32>
      %31 = arith.mulf %10, %30 : vector<8x256xf32>
      %32 = vector.broadcast %29 : vector<1x256xf32> to vector<8x256xf32>
      %33 = arith.addf %31, %32 : vector<8x256xf32>
      %cst_16 = arith.constant 0.000000e+00 : f32
      %34 = vector.broadcast %cst_16 : f32 to vector<8x256xf32>
      %35 = arith.maximumf %33, %34 : vector<8x256xf32>
      %36 = arith.truncf %35 : vector<8x256xf32> to vector<8x256xbf16>
      %c0_17 = arith.constant 0 : index
      %c0_18 = arith.constant 0 : index
      %37 = vector.load %arg5[%c0_17, %c0_18] : memref<8x256xbf16, #tpu.memory_space<vmem>>, vector<8x256xbf16>
      tpu.vector_store %arg5[%c0_17, %c0_18], %36 {strides = array<i32>} : memref<8x256xbf16, #tpu.memory_space<vmem>>, vector<8x256xbf16>,
    } else {
    }
    return
  }
  func.func @transform_0(%arg0: i32) -> (i32, i32) {
    %c0_i32 = arith.constant 0 : i32
    %c0_i32_0 = arith.constant 0 : i32
    return %arg0, %c0_i32 : i32, i32
  }
  func.func @transform_1(%arg0: i32) -> (i32, i32) {
    %c0_i32 = arith.constant 0 : i32
    %c0_i32_0 = arith.constant 0 : i32
    %c0_i32_1 = arith.constant 0 : i32
    return %c0_i32, %c0_i32_0 : i32, i32
  }
  func.func @transform_2(%arg0: i32) -> (i32, i32) {
    %c0_i32 = arith.constant 0 : i32
    %c0_i32_0 = arith.constant 0 : i32
    %c0_i32_1 = arith.constant 0 : i32
    return %c0_i32, %c0_i32_0 : i32, i32
  }
  func.func @transform_3(%arg0: i32) -> (i32, i32) {
    %c0_i32 = arith.constant 0 : i32
    %c0_i32_0 = arith.constant 0 : i32
    %c0_i32_1 = arith.constant 0 : i32
    return %c0_i32, %c0_i32_0 : i32, i32
  }
  func.func @transform_4(%arg0: i32) -> (i32, i32) {
    %c0_i32 = arith.constant 0 : i32
    %c0_i32_0 = arith.constant 0 : i32
    %c0_i32_1 = arith.constant 0 : i32
    return %c0_i32, %c0_i32_0 : i32, i32
  }
}

</mosaic_0001>

<bundles_post_ra>
// kernel: encoder_forward.5
= control target key start
LH: loop header
LB: loop body
LE: loop exit
PB: predicated region body
PF: predicated region fallthrough
CT: control target
= control target key end

     0   :  { %vm354_vm0 = vcmask 1044480   ;;  %vm355_vm1 = vcmask 1045504   ;;  %vm257_vm2 = vcmask 220160   ;;  %v2069_v1 = vmov 65535   ;;  %s3779_s1 = inlined_call_operand.vmem [shape: bf16[27,32], index: 1, kind: input, shape index: {}]   ;;  %s3780_s0 = inlined_call_operand.vmem [shape: bf16[512,27], index: 0, kind: input, shape index: {}]   ;;  %s3781_s2 = inlined_call_operand.vmem [shape: f32[1,32], index: 2, kind: input, shape index: {}]   ;;  %s3782_s3 = inlined_call_operand.vmem [shape: f32[1,32], index: 3, kind: input, shape index: {}]   ;;  %s3783_s4 = inlined_call_operand.vmem [shape: bf16[512,32], index: 4, kind: output, shape index: {}]  }
   0x1   :  { %v2018_v0 = vld [vmem:[%s3779_s1] sm:$0xff]   ;;  %v356_v2 = vsel %vm354_vm0, 4294967295, %v2069_v1  ;;  %v2019_v3 = vld [vmem:[%s3779_s1 + $0x8] sm:$0x3f]   ;;  %v2022_v8 = vld [vmem:[%s3780_s0 + $0x10] sm:$0xff]   ;;  %vm652_vm3 = vcmask 261120  }
   0x2   :  { %1945 = vmatprep.subr.bf16.mxu0 %v2018_v0  ;;  %v357_v4 = vsel %vm355_vm1, %v356_v2, 0  ;;  %v2020_v5 = vld [vmem:[%s3780_s0] sm:$0xff]   ;;  %2013 = vmatprep.subr.bf16.mxu1 %v2018_v0  ;;  %v2021_v7 = vld [vmem:[%s3780_s0 + $0x8] sm:$0xff]   ;;  %v2023_v9 = vld [vmem:[%s3780_s0 + $0x18] sm:$0xff]   ;;  %vm1648_vm4 = vcmask 257024  }
   0x3   :  { %1946 = vmatpush3.bf16.msra.mxu0 %v2018_v0  ;;  %v359_v6 = vand.u32 %v2019_v3, %v357_v4  ;;  %2015 = vmatpush3.bf16.msra.mxu1 %v2018_v0  ;;  %v2024_v10 = vld [vmem:[%s3780_s0 + $0x20] sm:$0xff]   ;;  %v2037_v12 = vld [vmem:[%s3780_s0 + $0x88] sm:$0xff]   ;;  %v2038_v13 = vld [vmem:[%s3780_s0 + $0x90] sm:$0xff]  }
   0x4   :  { %1949 = vmatprep.mubr.msk.bf16.mxu0 %vm257_vm2, %v2020_v5  ;;  %v2036_v11 = vld [vmem:[%s3780_s0 + $0x80] sm:$0xff]   ;;  %v2025_v14 = vld [vmem:[%s3780_s0 + $0x28] sm:$0xff]   ;;  %v2026_v15 = vld [vmem:[%s3780_s0 + $0x30] sm:$0xff]  }
   0x5   :  { %1947 = vmatprep.subr.bf16.mxu0 %v359_v6  ;;  %2014 = vmatprep.subr.bf16.mxu1 %v359_v6  ;;  %v2039_v16 = vld [vmem:[%s3780_s0 + $0x98] sm:$0xff]   ;;  %v2040_v17 = vld [vmem:[%s3780_s0 + $0xa0] sm:$0xff]   ;;  %v2041_v20 = vld [vmem:[%s3780_s0 + $0xa8] sm:$0xff]  }
   0x6   :  { %1981 = vmatprep.mubr.msk.bf16.mxu1 %vm257_vm2, %v2036_v11  ;;  %v2027_v18 = vld [vmem:[%s3780_s0 + $0x38] sm:$0xff]   ;;  %v2028_v19 = vld [vmem:[%s3780_s0 + $0x40] sm:$0xff]   ;;  %v2042_v21 = vld [vmem:[%s3780_s0 + $0xb0] sm:$0xff]  }
   0x7   :  { %1948 = vmatpush3.bf16.msra.mxu0 %v359_v6  ;;  %2016 = vmatpush3.bf16.msra.mxu1 %v359_v6  ;;  %v2029_v22 = vld [vmem:[%s3780_s0 + $0x48] sm:$0xff]   ;;  %v2030_v23 = vld [vmem:[%s3780_s0 + $0x50] sm:$0xff]   ;;  %v2043_v24 = vld [vmem:[%s3780_s0 + $0xb8] sm:$0xff]  }
   0x8   :  { %v2044_v25 = vld [vmem:[%s3780_s0 + $0xc0] sm:$0xff]   ;;  %v2031_v26 = vld [vmem:[%s3780_s0 + $0x58] sm:$0xff]   ;;  %v2045_v28 = vld [vmem:[%s3780_s0 + $0xc8] sm:$0xff]  }
   0x9   :  { %v2032_v27 = vld [vmem:[%s3780_s0 + $0x60] sm:$0xff]   ;;  %v2046_v29 = vld [vmem:[%s3780_s0 + $0xd0] sm:$0xff]   ;;  %v2033_v30 = vld [vmem:[%s3780_s0 + $0x68] sm:$0xff]  }
   0xa   :  { %1950 = vmatmul.mubr.msk.bf16.vlgmr.msra.gmra.mrb[0].mxu0 %vm257_vm2, %v2021_v7  ;;  %1982 = vmatmul.mubr.msk.bf16.vlgmr.msra.gmra.mrb[0].mxu1 %vm257_vm2, %v2037_v12  ;;  %v2034_v31 = vld [vmem:[%s3780_s0 + $0x70] sm:$0xff]   ;;  %v2047_v32 = vld [vmem:[%s3780_s0 + $0xd8] sm:$0xff]   ;;  %v2048_v33 = vld [vmem:[%s3780_s0 + $0xe0] sm:$0xff]  }
   0xb   :  { %1953 = vmatprep.mubr.msk.bf16.mxu0 %vm257_vm2, %v2022_v8  ;;  %1985 = vmatprep.mubr.msk.bf16.mxu1 %vm257_vm2, %v2038_v13  ;;  %v2035_v34 = vld [vmem:[%s3780_s0 + $0x78] sm:$0xff]   ;;  %v2049_v35 = vld [vmem:[%s3780_s0 + $0xe8] sm:$0xff]   ;;  %v2050_v36 = vld [vmem:[%s3780_s0 + $0xf0] sm:$0xff]  }
   0xc   :  { %v2051_v37 = vld [vmem:[%s3780_s0 + $0xf8] sm:$0xff]  }
  0x12   :  { %1954 = vmatmul.mubr.msk.bf16.gmra.mrb[4].mxu0 %vm257_vm2, %v2023_v9  ;;  %1986 = vmatmul.mubr.msk.bf16.gmra.mrb[4].mxu1 %vm257_vm2, %v2039_v16 }
  0x13   :  { %1957 = vmatprep.mubr.msk.bf16.mxu0 %vm257_vm2, %v2024_v10  ;;  %1989 = vmatprep.mubr.msk.bf16.mxu1 %vm257_vm2, %v2040_v17 }
  0x1a   :  { %1958 = vmatmul.mubr.msk.bf16.gmra.mrb[8].mxu0 %vm257_vm2, %v2025_v14  ;;  %1990 = vmatmul.mubr.msk.bf16.gmra.mrb[8].mxu1 %vm257_vm2, %v2041_v20 }
  0x1b   :  { %1961 = vmatprep.mubr.msk.bf16.mxu0 %vm257_vm2, %v2026_v15  ;;  %1993 = vmatprep.mubr.msk.bf16.mxu1 %vm257_vm2, %v2042_v21 }
  0x22   :  { %1962 = vmatmul.mubr.msk.bf16.gmra.mrb[12].mxu0 %vm257_vm2, %v2027_v18  ;;  %1994 = vmatmul.mubr.msk.bf16.gmra.mrb[12].mxu1 %vm257_vm2, %v2043_v24 }
  0x23   :  { %1965 = vmatprep.mubr.msk.bf16.mxu0 %vm257_vm2, %v2028_v19  ;;  %1997 = vmatprep.mubr.msk.bf16.mxu1 %vm257_vm2, %v2044_v25 }
  0x2a   :  { %1966 = vmatmul.mubr.msk.bf16.gmra.mrb[16].mxu0 %vm257_vm2, %v2029_v22  ;;  %1998 = vmatmul.mubr.msk.bf16.gmra.mrb[16].mxu1 %vm257_vm2, %v2045_v28 }
  0x2b   :  { %1969 = vmatprep.mubr.msk.bf16.mxu0 %vm257_vm2, %v2030_v23  ;;  %2001 = vmatprep.mubr.msk.bf16.mxu1 %vm257_vm2, %v2046_v29 }
  0x32   :  { %1970 = vmatmul.mubr.msk.bf16.gmra.mrb[20].mxu0 %vm257_vm2, %v2031_v26  ;;  %2002 = vmatmul.mubr.msk.bf16.gmra.mrb[20].mxu1 %vm257_vm2, %v2047_v32 }
  0x33   :  { %1973 = vmatprep.mubr.msk.bf16.mxu0 %vm257_vm2, %v2032_v27  ;;  %2005 = vmatprep.mubr.msk.bf16.mxu1 %vm257_vm2, %v2048_v33 }
  0x3a   :  { %1974 = vmatmul.mubr.msk.bf16.gmra.mrb[24].mxu0 %vm257_vm2, %v2033_v30  ;;  %2006 = vmatmul.mubr.msk.bf16.gmra.mrb[24].mxu1 %vm257_vm2, %v2049_v35 }
  0x3b   :  { %1977 = vmatprep.mubr.msk.bf16.mxu0 %vm257_vm2, %v2034_v31  ;;  %2009 = vmatprep.mubr.msk.bf16.mxu1 %vm257_vm2, %v2050_v36 }
  0x42   :  { %1978 = vmatmul.mubr.msk.bf16.gmra.mrb[28].mxu0 %vm257_vm2, %v2035_v34  ;;  %2010 = vmatmul.mubr.msk.bf16.gmra.mrb[28].mxu1 %vm257_vm2, %v2051_v37 }
  0xdd   :  { %v1951_v38 = vpop.f32.mrb[0].mxu0  ;;  %v1983_v49 = vpop.f32.mrb[0].mxu1 }
  0xde   :  { %655 = vst.msk [vmem:[#allocation2 + $0x10] sm:$0xff] %vm652_vm3, %v1951_v38  ;;  %v395_v39 = vpop.f32.mrb[1].mxu0  ;;  %687 = vst.msk [vmem:[#allocation2 + $0x110] sm:$0xff] %vm652_vm3, %v1983_v49  ;;  %v523_v52 = vpop.f32.mrb[1].mxu1 }
  0xdf   :  { %653 = vst.msk [vmem:[#allocation2] sm:$0xff] %vm652_vm3, %v395_v39  ;;  %v1952_v40 = vpop.f32.mrb[2].mxu0  ;;  %685 = vst.msk [vmem:[#allocation2 + $0x100] sm:$0xff] %vm652_vm3, %v523_v52  ;;  %v1984_v55 = vpop.f32.mrb[2].mxu1 }
  0xe0   :  { %656 = vst.msk [vmem:[#allocation2 + $0x18] sm:$0xff] %vm652_vm3, %v1952_v40  ;;  %v398_v41 = vpop.f32.mrb[3].mxu0  ;;  %688 = vst.msk [vmem:[#allocation2 + $0x118] sm:$0xff] %vm652_vm3, %v1984_v55  ;;  %v526_v57 = vpop.f32.mrb[3].mxu1 }
  0xe1   :  { %654 = vst.msk [vmem:[#allocation2 + $0x8] sm:$0xff] %vm652_vm3, %v398_v41  ;;  %686 = vst.msk [vmem:[#allocation2 + $0x108] sm:$0xff] %vm652_vm3, %v526_v57 }
  0xe5   :  { %v1955_v42 = vpop.f32.mrb[4].mxu0  ;;  %v2237_v46 = vld [vmem:[#allocation2 + $0x10] sm:$0xff]  ;;  %v1987_v6 = vpop.f32.mrb[4].mxu1 }
  0xe6   :  { %v2233_v43 = vld [vmem:[#allocation2] sm:$0xff]  ;;  %659 = vst.msk [vmem:[#allocation2 + $0x30] sm:$0xff] %vm652_vm3, %v1955_v42  ;;  %v411_v44 = vpop.f32.mrb[5].mxu0  ;;  %v788_v56 = vsel %vm652_vm3, %v2237_v46, 0.0  ;;  %691 = vst.msk [vmem:[#allocation2 + $0x130] sm:$0xff] %vm652_vm3, %v1987_v6  ;;  %v539_v8 = vpop.f32.mrb[5].mxu1 }
  0xe7   :  { %657 = vst.msk [vmem:[#allocation2 + $0x20] sm:$0xff] %vm652_vm3, %v411_v44  ;;  %v1956_v45 = vpop.f32.mrb[6].mxu0  ;;  %v785_v50 = vsel %vm652_vm3, %v2233_v43, 0.0  ;;  %v2248_v53 = vld [vmem:[#allocation2 + $0x18] sm:$0xff]  ;;  %689 = vst.msk [vmem:[#allocation2 + $0x120] sm:$0xff] %vm652_vm3, %v539_v8  ;;  %v1988_v11 = vpop.f32.mrb[6].mxu1 }
  0xe8   :  { %v2239_v47 = vld [vmem:[#allocation2 + $0x8] sm:$0xff]  ;;  %660 = vst.msk [vmem:[#allocation2 + $0x38] sm:$0xff] %vm652_vm3, %v1956_v45  ;;  %v414_v48 = vpop.f32.mrb[7].mxu0  ;;  %v790_v59 = vsel %vm652_vm3, %v2248_v53, 0.0  ;;  %692 = vst.msk [vmem:[#allocation2 + $0x138] sm:$0xff] %vm652_vm3, %v1988_v11  ;;  %v542_v13 = vpop.f32.mrb[7].mxu1 }
  0xe9   :  { %v786_v51 = vsel %vm652_vm3, %v2239_v47, 0.0  ;;  %658 = vst.msk [vmem:[#allocation2 + $0x28] sm:$0xff] %vm652_vm3, %v414_v48  ;;  %690 = vst.msk [vmem:[#allocation2 + $0x128] sm:$0xff] %vm652_vm3, %v542_v13 }
  0xea   :  { %v787_v54 = vadd.f32 %v786_v51, %v785_v50 }
  0xec   :  { %v789_v58 = vadd.f32 %v788_v56, %v787_v54 }
  0xed   :  { %v1959_v60 = vpop.f32.mrb[8].mxu0  ;;  %v2263_v2 = vld [vmem:[#allocation2 + $0x30] sm:$0xff]  ;;  %v1991_v26 = vpop.f32.mrb[8].mxu1 }
  0xee   :  { %v2257_v61 = vld [vmem:[#allocation2 + $0x20] sm:$0xff]  ;;  %v791_v62 = vadd.f32 %v790_v59, %v789_v58  ;;  %663 = vst.msk [vmem:[#allocation2 + $0x50] sm:$0xff] %vm652_vm3, %v1959_v60  ;;  %v427_v63 = vpop.f32.mrb[9].mxu0  ;;  %v796_v12 = vsel %vm652_vm3, %v2263_v2, 0.0  ;;  %695 = vst.msk [vmem:[#allocation2 + $0x150] sm:$0xff] %vm652_vm3, %v1991_v26  ;;  %v555_v28 = vpop.f32.mrb[9].mxu1 }
  0xef   :  { %v792_v0 = vsel %vm652_vm3, %v2257_v61, 0.0  ;;  %661 = vst.msk [vmem:[#allocation2 + $0x40] sm:$0xff] %vm652_vm3, %v427_v63  ;;  %v1960_v1 = vpop.f32.mrb[10].mxu0  ;;  %v2272_v9 = vld [vmem:[#allocation2 + $0x38] sm:$0xff]  ;;  %693 = vst.msk [vmem:[#allocation2 + $0x140] sm:$0xff] %vm652_vm3, %v555_v28  ;;  %v1992_v31 = vpop.f32.mrb[10].mxu1 }
  0xf0   :  { %v793_v3 = vadd.f32 %v792_v0, %v791_v62  ;;  %v2265_v4 = vld [vmem:[#allocation2 + $0x28] sm:$0xff]  ;;  %664 = vst.msk [vmem:[#allocation2 + $0x58] sm:$0xff] %vm652_vm3, %v1960_v1  ;;  %v430_v5 = vpop.f32.mrb[11].mxu0  ;;  %v798_v15 = vsel %vm652_vm3, %v2272_v9, 0.0  ;;  %696 = vst.msk [vmem:[#allocation2 + $0x158] sm:$0xff] %vm652_vm3, %v1992_v31  ;;  %v558_v33 = vpop.f32.mrb[11].mxu1 }
  0xf1   :  { %v794_v7 = vsel %vm652_vm3, %v2265_v4, 0.0  ;;  %662 = vst.msk [vmem:[#allocation2 + $0x48] sm:$0xff] %vm652_vm3, %v430_v5  ;;  %694 = vst.msk [vmem:[#allocation2 + $0x148] sm:$0xff] %vm652_vm3, %v558_v33 }
  0xf2   :  { %v795_v10 = vadd.f32 %v794_v7, %v793_v3 }
  0xf4   :  { %v797_v14 = vadd.f32 %v796_v12, %v795_v10 }
  0xf5   :  { %v1963_v16 = vpop.f32.mrb[12].mxu0  ;;  %v2287_v22 = vld [vmem:[#allocation2 + $0x50] sm:$0xff]  ;;  %v1995_v49 = vpop.f32.mrb[12].mxu1 }
  0xf6   :  { %v2281_v17 = vld [vmem:[#allocation2 + $0x40] sm:$0xff]  ;;  %v799_v18 = vadd.f32 %v798_v15, %v797_v14  ;;  %667 = vst.msk [vmem:[#allocation2 + $0x70] sm:$0xff] %vm652_vm3, %v1963_v16  ;;  %v443_v19 = vpop.f32.mrb[13].mxu0  ;;  %v804_v32 = vsel %vm652_vm3, %v2287_v22, 0.0  ;;  %699 = vst.msk [vmem:[#allocation2 + $0x170] sm:$0xff] %vm652_vm3, %v1995_v49  ;;  %v571_v51 = vpop.f32.mrb[13].mxu1 }
  0xf7   :  { %v800_v20 = vsel %vm652_vm3, %v2281_v17, 0.0  ;;  %665 = vst.msk [vmem:[#allocation2 + $0x60] sm:$0xff] %vm652_vm3, %v443_v19  ;;  %v1964_v21 = vpop.f32.mrb[14].mxu0  ;;  %v2296_v29 = vld [vmem:[#allocation2 + $0x58] sm:$0xff]  ;;  %697 = vst.msk [vmem:[#allocation2 + $0x160] sm:$0xff] %vm652_vm3, %v571_v51  ;;  %v1996_v55 = vpop.f32.mrb[14].mxu1 }
  0xf8   :  { %v801_v23 = vadd.f32 %v800_v20, %v799_v18  ;;  %v2289_v24 = vld [vmem:[#allocation2 + $0x48] sm:$0xff]  ;;  %668 = vst.msk [vmem:[#allocation2 + $0x78] sm:$0xff] %vm652_vm3, %v1964_v21  ;;  %v446_v25 = vpop.f32.mrb[15].mxu0  ;;  %v806_v35 = vsel %vm652_vm3, %v2296_v29, 0.0  ;;  %700 = vst.msk [vmem:[#allocation2 + $0x178] sm:$0xff] %vm652_vm3, %v1996_v55  ;;  %v574_v57 = vpop.f32.mrb[15].mxu1 }
  0xf9   :  { %v802_v27 = vsel %vm652_vm3, %v2289_v24, 0.0  ;;  %666 = vst.msk [vmem:[#allocation2 + $0x68] sm:$0xff] %vm652_vm3, %v446_v25  ;;  %698 = vst.msk [vmem:[#allocation2 + $0x168] sm:$0xff] %vm652_vm3, %v574_v57 }
  0xfa   :  { %v803_v30 = vadd.f32 %v802_v27, %v801_v23 }
  0xfc   :  { %v805_v34 = vadd.f32 %v804_v32, %v803_v30 }
  0xfd   :  { %v1967_v36 = vpop.f32.mrb[16].mxu0  ;;  %v2311_v42 = vld [vmem:[#allocation2 + $0x70] sm:$0xff]  ;;  %v1999_v10 = vpop.f32.mrb[16].mxu1 }
  0xfe   :  { %v2305_v37 = vld [vmem:[#allocation2 + $0x60] sm:$0xff]  ;;  %v807_v38 = vadd.f32 %v806_v35, %v805_v34  ;;  %671 = vst.msk [vmem:[#allocation2 + $0x90] sm:$0xff] %vm652_vm3, %v1967_v36  ;;  %v459_v39 = vpop.f32.mrb[17].mxu0  ;;  %v812_v56 = vsel %vm652_vm3, %v2311_v42, 0.0  ;;  %703 = vst.msk [vmem:[#allocation2 + $0x190] sm:$0xff] %vm652_vm3, %v1999_v10  ;;  %v587_v12 = vpop.f32.mrb[17].mxu1 }
  0xff   :  { %v808_v40 = vsel %vm652_vm3, %v2305_v37, 0.0  ;;  %669 = vst.msk [vmem:[#allocation2 + $0x80] sm:$0xff] %vm652_vm3, %v459_v39  ;;  %v1968_v41 = vpop.f32.mrb[18].mxu0  ;;  %v2320_v52 = vld [vmem:[#allocation2 + $0x78] sm:$0xff]  ;;  %701 = vst.msk [vmem:[#allocation2 + $0x180] sm:$0xff] %vm652_vm3, %v587_v12  ;;  %v2000_v15 = vpop.f32.mrb[18].mxu1 }
 0x100   :  { %v809_v44 = vadd.f32 %v808_v40, %v807_v38  ;;  %v2313_v45 = vld [vmem:[#allocation2 + $0x68] sm:$0xff]  ;;  %672 = vst.msk [vmem:[#allocation2 + $0x98] sm:$0xff] %vm652_vm3, %v1968_v41  ;;  %v462_v48 = vpop.f32.mrb[19].mxu0  ;;  %v814_v59 = vsel %vm652_vm3, %v2320_v52, 0.0  ;;  %704 = vst.msk [vmem:[#allocation2 + $0x198] sm:$0xff] %vm652_vm3, %v2000_v15  ;;  %v590_v18 = vpop.f32.mrb[19].mxu1 }
 0x101   :  { %v810_v50 = vsel %vm652_vm3, %v2313_v45, 0.0  ;;  %670 = vst.msk [vmem:[#allocation2 + $0x88] sm:$0xff] %vm652_vm3, %v462_v48  ;;  %702 = vst.msk [vmem:[#allocation2 + $0x188] sm:$0xff] %vm652_vm3, %v590_v18 }
 0x102   :  { %v811_v54 = vadd.f32 %v810_v50, %v809_v44 }
 0x104   :  { %v813_v58 = vadd.f32 %v812_v56, %v811_v54 }
 0x105   :  { %v1971_v60 = vpop.f32.mrb[20].mxu0  ;;  %v2335_v5 = vld [vmem:[#allocation2 + $0x90] sm:$0xff]  ;;  %v2003_v34 = vpop.f32.mrb[20].mxu1 }
 0x106   :  { %v2329_v62 = vld [vmem:[#allocation2 + $0x80] sm:$0xff]  ;;  %v815_v63 = vadd.f32 %v814_v59, %v813_v58  ;;  %675 = vst.msk [vmem:[#allocation2 + $0xb0] sm:$0xff] %vm652_vm3, %v1971_v60  ;;  %v475_v0 = vpop.f32.mrb[21].mxu0  ;;  %v820_v16 = vsel %vm652_vm3, %v2335_v5, 0.0  ;;  %707 = vst.msk [vmem:[#allocation2 + $0x1b0] sm:$0xff] %vm652_vm3, %v2003_v34  ;;  %v603_v36 = vpop.f32.mrb[21].mxu1 }
 0x107   :  { %v816_v1 = vsel %vm652_vm3, %v2329_v62, 0.0  ;;  %673 = vst.msk [vmem:[#allocation2 + $0xa0] sm:$0xff] %vm652_vm3, %v475_v0  ;;  %v1972_v3 = vpop.f32.mrb[22].mxu0  ;;  %v2344_v13 = vld [vmem:[#allocation2 + $0x98] sm:$0xff]  ;;  %705 = vst.msk [vmem:[#allocation2 + $0x1a0] sm:$0xff] %vm652_vm3, %v603_v36  ;;  %v2004_v40 = vpop.f32.mrb[22].mxu1 }
 0x108   :  { %v817_v6 = vadd.f32 %v816_v1, %v815_v63  ;;  %v2337_v7 = vld [vmem:[#allocation2 + $0x88] sm:$0xff]  ;;  %676 = vst.msk [vmem:[#allocation2 + $0xb8] sm:$0xff] %vm652_vm3, %v1972_v3  ;;  %v478_v8 = vpop.f32.mrb[23].mxu0  ;;  %v822_v20 = vsel %vm652_vm3, %v2344_v13, 0.0  ;;  %708 = vst.msk [vmem:[#allocation2 + $0x1b8] sm:$0xff] %vm652_vm3, %v2004_v40  ;;  %v606_v44 = vpop.f32.mrb[23].mxu1 }
 0x109   :  { %v818_v11 = vsel %vm652_vm3, %v2337_v7, 0.0  ;;  %674 = vst.msk [vmem:[#allocation2 + $0xa8] sm:$0xff] %vm652_vm3, %v478_v8  ;;  %706 = vst.msk [vmem:[#allocation2 + $0x1a8] sm:$0xff] %vm652_vm3, %v606_v44  ;;  %v2414_v34 = vld [vmem:[#allocation2 + $0x100] sm:$0xff] }
 0x10a   :  { %v819_v14 = vadd.f32 %v818_v11, %v817_v6  ;;  %v848_v44 = vsel %vm652_vm3, %v2414_v34, 0.0 }
 0x10c   :  { %v821_v19 = vadd.f32 %v820_v16, %v819_v14 }
 0x10d   :  { %v1975_v21 = vpop.f32.mrb[24].mxu0  ;;  %v2359_v30 = vld [vmem:[#allocation2 + $0xb0] sm:$0xff]  ;;  %v2007_v0 = vpop.f32.mrb[24].mxu1 }
 0x10e   :  { %v2353_v23 = vld [vmem:[#allocation2 + $0xa0] sm:$0xff]  ;;  %v823_v25 = vadd.f32 %v822_v20, %v821_v19  ;;  %679 = vst.msk [vmem:[#allocation2 + $0xd0] sm:$0xff] %vm652_vm3, %v1975_v21  ;;  %v491_v26 = vpop.f32.mrb[25].mxu0  ;;  %v828_v41 = vsel %vm652_vm3, %v2359_v30, 0.0  ;;  %711 = vst.msk [vmem:[#allocation2 + $0x1d0] sm:$0xff] %vm652_vm3, %v2007_v0  ;;  %v619_v3 = vpop.f32.mrb[25].mxu1 }
 0x10f   :  { %v824_v27 = vsel %vm652_vm3, %v2353_v23, 0.0  ;;  %677 = vst.msk [vmem:[#allocation2 + $0xc0] sm:$0xff] %vm652_vm3, %v491_v26  ;;  %v1976_v28 = vpop.f32.mrb[26].mxu0  ;;  %v2368_v38 = vld [vmem:[#allocation2 + $0xb8] sm:$0xff]  ;;  %709 = vst.msk [vmem:[#allocation2 + $0x1c0] sm:$0xff] %vm652_vm3, %v619_v3  ;;  %v2008_v10 = vpop.f32.mrb[26].mxu1 }
 0x110   :  { %v825_v31 = vadd.f32 %v824_v27, %v823_v25  ;;  %v2361_v32 = vld [vmem:[#allocation2 + $0xa8] sm:$0xff]  ;;  %680 = vst.msk [vmem:[#allocation2 + $0xd8] sm:$0xff] %vm652_vm3, %v1976_v28  ;;  %v494_v33 = vpop.f32.mrb[27].mxu0  ;;  %v830_v49 = vsel %vm652_vm3, %v2368_v38, 0.0  ;;  %712 = vst.msk [vmem:[#allocation2 + $0x1d8] sm:$0xff] %vm652_vm3, %v2008_v10  ;;  %v622_v12 = vpop.f32.mrb[27].mxu1 }
 0x111   :  { %v826_v35 = vsel %vm652_vm3, %v2361_v32, 0.0  ;;  %678 = vst.msk [vmem:[#allocation2 + $0xc8] sm:$0xff] %vm652_vm3, %v494_v33  ;;  %710 = vst.msk [vmem:[#allocation2 + $0x1c8] sm:$0xff] %vm652_vm3, %v622_v12  ;;  %v2441_v10 = vld [vmem:[#allocation2 + $0x128] sm:$0xff] }
 0x112   :  { %v827_v39 = vadd.f32 %v826_v35, %v825_v31 }
 0x114   :  { %v829_v48 = vadd.f32 %v828_v41, %v827_v39 }
 0x115   :  { %v1979_v50 = vpop.f32.mrb[28].mxu0  ;;  %v2383_v58 = vld [vmem:[#allocation2 + $0xd0] sm:$0xff]  ;;  %v2011_v26 = vpop.f32.mrb[28].mxu1 }
 0x116   :  { %v2377_v51 = vld [vmem:[#allocation2 + $0xc0] sm:$0xff]  ;;  %v831_v54 = vadd.f32 %v830_v49, %v829_v48  ;;  %683 = vst.msk [vmem:[#allocation2 + $0xf0] sm:$0xff] %vm652_vm3, %v1979_v50  ;;  %v507_v55 = vpop.f32.mrb[29].mxu0  ;;  %v836_v11 = vsel %vm652_vm3, %v2383_v58, 0.0  ;;  %715 = vst.msk [vmem:[#allocation2 + $0x1f0] sm:$0xff] %vm652_vm3, %v2011_v26  ;;  %v635_v28 = vpop.f32.mrb[29].mxu1 }
 0x117   :  { %v832_v56 = vsel %vm652_vm3, %v2377_v51, 0.0  ;;  %681 = vst.msk [vmem:[#allocation2 + $0xe0] sm:$0xff] %vm652_vm3, %v507_v55  ;;  %v1980_v57 = vpop.f32.mrb[30].mxu0  ;;  %v2392_v6 = vld [vmem:[#allocation2 + $0xd8] sm:$0xff]  ;;  %713 = vst.msk [vmem:[#allocation2 + $0x1e0] sm:$0xff] %vm652_vm3, %v635_v28  ;;  %v2012_v35 = vpop.f32.mrb[30].mxu1 }
 0x118   :  { %v833_v59 = vadd.f32 %v832_v56, %v831_v54  ;;  %v2385_v60 = vld [vmem:[#allocation2 + $0xc8] sm:$0xff]  ;;  %684 = vst.msk [vmem:[#allocation2 + $0xf8] sm:$0xff] %vm652_vm3, %v1980_v57  ;;  %v510_v63 = vpop.f32.mrb[31].mxu0  ;;  %v838_v15 = vsel %vm652_vm3, %v2392_v6, 0.0  ;;  %716 = vst.msk [vmem:[#allocation2 + $0x1f8] sm:$0xff] %vm652_vm3, %v2012_v35  ;;  %v638_v39 = vpop.f32.mrb[31].mxu1 }
 0x119   :  { %v834_v1 = vsel %vm652_vm3, %v2385_v60, 0.0  ;;  %682 = vst.msk [vmem:[#allocation2 + $0xe8] sm:$0xff] %vm652_vm3, %v510_v63  ;;  %714 = vst.msk [vmem:[#allocation2 + $0x1e8] sm:$0xff] %vm652_vm3, %v638_v39  ;;  %v2425_v49 = vld [vmem:[#allocation2 + $0x108] sm:$0xff]  ;;  %v2427_v50 = vld [vmem:[#allocation2 + $0x110] sm:$0xff] }
 0x11a   :  { %v835_v8 = vadd.f32 %v834_v1, %v833_v59  ;;  %v850_v55 = vsel %vm652_vm3, %v2425_v49, 0.0  ;;  %v2431_v56 = vld [vmem:[#allocation2 + $0x118] sm:$0xff]  ;;  %v2433_v59 = vld [vmem:[#allocation2 + $0x120] sm:$0xff]  ;;  %v852_v63 = vsel %vm652_vm3, %v2427_v50, 0.0  ;;  %v2457_v35 = vld [vmem:[#allocation2 + $0x148] sm:$0xff] }
 0x11b   :  { %v854_v1 = vsel %vm652_vm3, %v2431_v56, 0.0  ;;  %v856_v3 = vsel %vm652_vm3, %v2433_v59, 0.0 }
 0x11c   :  { %v837_v14 = vadd.f32 %v836_v11, %v835_v8  ;;  %v2443_v11 = vld [vmem:[#allocation2 + $0x130] sm:$0xff] }
 0x11d   :  { %v2405_v20 = vld [vmem:[#allocation2 + $0xf0] sm:$0xff] }
 0x11e   :  { %v2401_v16 = vld [vmem:[#allocation2 + $0xe0] sm:$0xff]  ;;  %v839_v18 = vadd.f32 %v838_v15, %v837_v14  ;;  %v844_v36 = vsel %vm652_vm3, %v2405_v20, 0.0  ;;  %v858_v14 = vsel %vm652_vm3, %v2441_v10, 0.0  ;;  %v2447_v15 = vld [vmem:[#allocation2 + $0x138] sm:$0xff] }
 0x11f   :  { %v840_v19 = vsel %vm652_vm3, %v2401_v16, 0.0  ;;  %v2412_v31 = vld [vmem:[#allocation2 + $0xf8] sm:$0xff] }
 0x120   :  { %v841_v21 = vadd.f32 %v840_v19, %v839_v18  ;;  %v2407_v25 = vld [vmem:[#allocation2 + $0xe8] sm:$0xff]  ;;  %v846_v41 = vsel %vm652_vm3, %v2412_v31, 0.0  ;;  %v2449_v19 = vld [vmem:[#allocation2 + $0x140] sm:$0xff] }
 0x121   :  { %v842_v27 = vsel %vm652_vm3, %v2407_v25, 0.0  ;;  %v864_v28 = vsel %vm652_vm3, %v2449_v19, 0.0 }
 0x122   :  { %v843_v33 = vadd.f32 %v842_v27, %v841_v21  ;;  %v860_v21 = vsel %vm652_vm3, %v2443_v11, 0.0  ;;  %v862_v27 = vsel %vm652_vm3, %v2447_v15, 0.0 }
 0x124   :  { %v845_v40 = vadd.f32 %v844_v36, %v843_v33  ;;  %v2459_v36 = vld [vmem:[#allocation2 + $0x150] sm:$0xff] }
 0x126   :  { %v847_v48 = vadd.f32 %v846_v41, %v845_v40  ;;  %v866_v40 = vsel %vm652_vm3, %v2457_v35, 0.0  ;;  %v2463_v41 = vld [vmem:[#allocation2 + $0x158] sm:$0xff] }
 0x128   :  { %v849_v54 = vadd.f32 %v848_v44, %v847_v48  ;;  %v2465_v48 = vld [vmem:[#allocation2 + $0x160] sm:$0xff] }
 0x12a   :  { %v851_v57 = vadd.f32 %v850_v55, %v849_v54  ;;  %v868_v54 = vsel %vm652_vm3, %v2459_v36, 0.0 }
 0x12c   :  { %v853_v0 = vadd.f32 %v852_v63, %v851_v57  ;;  %v870_v57 = vsel %vm652_vm3, %v2463_v41, 0.0  ;;  %v872_v63 = vsel %vm652_vm3, %v2465_v48, 0.0 }
 0x12e   :  { %v855_v8 = vadd.f32 %v854_v1, %v853_v0  ;;  %v2473_v1 = vld [vmem:[#allocation2 + $0x168] sm:$0xff] }
 0x130   :  { %v857_v12 = vadd.f32 %v856_v3, %v855_v8  ;;  %v2475_v3 = vld [vmem:[#allocation2 + $0x170] sm:$0xff] }
 0x132   :  { %v859_v18 = vadd.f32 %v858_v14, %v857_v12  ;;  %v874_v12 = vsel %vm652_vm3, %v2473_v1, 0.0  ;;  %v2479_v14 = vld [vmem:[#allocation2 + $0x178] sm:$0xff] }
 0x134   :  { %v861_v26 = vadd.f32 %v860_v21, %v859_v18  ;;  %v2481_v21 = vld [vmem:[#allocation2 + $0x180] sm:$0xff] }
 0x135   :  { %3832 = vst [vmem:[#allocation3_spill] sm:$0xff] %v2481_v21 }
 0x136   :  { %v863_v33 = vadd.f32 %v862_v27, %v861_v26  ;;  %v876_v26 = vsel %vm652_vm3, %v2475_v3, 0.0 }
 0x138   :  { %v865_v39 = vadd.f32 %v864_v28, %v863_v33  ;;  %v878_v28 = vsel %vm652_vm3, %v2479_v14, 0.0  ;;  %v880_v33 = vsel %vm652_vm3, %v2481_v21, 0.0 }
 0x13a   :  { %v867_v44 = vadd.f32 %v866_v40, %v865_v39  ;;  %v2489_v40 = vld [vmem:[#allocation2 + $0x188] sm:$0xff] }
 0x13b   :  { %3833 = vst [vmem:[#allocation4_spill] sm:$0xff] %v2489_v40 }
 0x13c   :  { %v869_v55 = vadd.f32 %v868_v54, %v867_v44  ;;  %v2491_v44 = vld [vmem:[#allocation2 + $0x190] sm:$0xff] }
 0x13d   :  { %3834 = vst [vmem:[#allocation5_spill] sm:$0xff] %v2491_v44 }
 0x13e   :  { %v871_v0 = vadd.f32 %v870_v57, %v869_v55  ;;  %v882_v55 = vsel %vm652_vm3, %v2489_v40, 0.0  ;;  %v2495_v57 = vld [vmem:[#allocation2 + $0x198] sm:$0xff] }
 0x13f   :  { %3835 = vst [vmem:[#allocation6_spill] sm:$0xff] %v2495_v57 }
 0x140   :  { %v873_v8 = vadd.f32 %v872_v63, %v871_v0  ;;  %v2497_v0 = vld [vmem:[#allocation2 + $0x1a0] sm:$0xff] }
 0x141   :  { %3836 = vst [vmem:[#allocation7_spill] sm:$0xff] %v2497_v0 }
 0x142   :  { %v875_v18 = vadd.f32 %v874_v12, %v873_v8  ;;  %v884_v8 = vsel %vm652_vm3, %v2491_v44, 0.0  ;;  %v2513_v44 = vld [vmem:[#allocation2 + $0x1c0] sm:$0xff] }
 0x143   :  { %3840 = vst [vmem:[#allocation11_spill] sm:$0xff] %v2513_v44 }
 0x144   :  { %v877_v27 = vadd.f32 %v876_v26, %v875_v18  ;;  %v886_v18 = vsel %vm652_vm3, %v2495_v57, 0.0  ;;  %v888_v26 = vsel %vm652_vm3, %v2497_v0, 0.0 }
 0x146   :  { %v879_v39 = vadd.f32 %v878_v28, %v877_v27  ;;  %v2505_v28 = vld [vmem:[#allocation2 + $0x1a8] sm:$0xff] }
 0x147   :  { %3837 = vst [vmem:[#allocation8_spill] sm:$0xff] %v2505_v28 }
 0x148   :  { %v881_v54 = vadd.f32 %v880_v33, %v879_v39  ;;  %v2507_v33 = vld [vmem:[#allocation2 + $0x1b0] sm:$0xff] }
 0x149   :  { %3838 = vst [vmem:[#allocation9_spill] sm:$0xff] %v2507_v33 }
 0x14a   :  { %v883_v63 = vadd.f32 %v882_v55, %v881_v54  ;;  %v890_v54 = vsel %vm652_vm3, %v2505_v28, 0.0  ;;  %v2511_v55 = vld [vmem:[#allocation2 + $0x1b8] sm:$0xff] }
 0x14b   :  { %3839 = vst [vmem:[#allocation10_spill] sm:$0xff] %v2511_v55 }
 0x14c   :  { %v885_v12 = vadd.f32 %v884_v8, %v883_v63  ;;  %v892_v63 = vsel %vm652_vm3, %v2507_v33, 0.0 }
 0x14e   :  { %v887_v27 = vadd.f32 %v886_v18, %v885_v12  ;;  %v894_v12 = vsel %vm652_vm3, %v2511_v55, 0.0  ;;  %v896_v18 = vsel %vm652_vm3, %v2513_v44, 0.0  ;;  %v2531_v55 = vld [vmem:[#allocation2 + $0x1e0] sm:$0xff] }
 0x14f   :  { %3844 = vst [vmem:[#allocation15_spill] sm:$0xff] %v2531_v55  ;;  %v904_v44 = vsel %vm652_vm3, %v2531_v55, 0.0 }
 0x150   :  { %v889_v39 = vadd.f32 %v888_v26, %v887_v27  ;;  %v2521_v26 = vld [vmem:[#allocation2 + $0x1c8] sm:$0xff]  ;;  %v2523_v27 = vld [vmem:[#allocation2 + $0x1d0] sm:$0xff] }
 0x151   :  { %3841 = vst [vmem:[#allocation12_spill] sm:$0xff] %v2521_v26  ;;  %3842 = vst [vmem:[#allocation13_spill] sm:$0xff] %v2523_v27 }
 0x152   :  { %v891_v40 = vadd.f32 %v890_v54, %v889_v39  ;;  %v898_v39 = vsel %vm652_vm3, %v2521_v26, 0.0  ;;  %v2527_v54 = vld [vmem:[#allocation2 + $0x1d8] sm:$0xff] }
 0x153   :  { %3843 = vst [vmem:[#allocation14_spill] sm:$0xff] %v2527_v54 }
 0x154   :  { %v893_v8 = vadd.f32 %v892_v63, %v891_v40  ;;  %v900_v40 = vsel %vm652_vm3, %v2523_v27, 0.0 }
 0x156   :  { %v895_v0 = vadd.f32 %v894_v12, %v893_v8  ;;  %v902_v8 = vsel %vm652_vm3, %v2527_v54, 0.0 }
 0x158   :  { %v897_v28 = vadd.f32 %v896_v18, %v895_v0  ;;  %v2537_v18 = vld [vmem:[#allocation2 + $0x1e8] sm:$0xff] }
 0x159   :  { %3845 = vst [vmem:[#allocation16_spill] sm:$0xff] %v2537_v18  ;;  %v906_v26 = vsel %vm652_vm3, %v2537_v18, 0.0 }
 0x15a   :  { %v899_v57 = vadd.f32 %v898_v39, %v897_v28  ;;  %v2541_v28 = vld [vmem:[#allocation2 + $0x1f0] sm:$0xff] }
 0x15b   :  { %3846 = vst [vmem:[#allocation17_spill] sm:$0xff] %v2541_v28 }
 0x15c   :  { %v901_v63 = vadd.f32 %v900_v40, %v899_v57  ;;  %v908_v57 = vsel %vm652_vm3, %v2541_v28, 0.0  ;;  %v2545_v40 = vld [vmem:[#allocation2 + $0x1f8] sm:$0xff] }
 0x15d   :  { %3847 = vst [vmem:[#allocation18_spill] sm:$0xff] %v2545_v40 }
 0x15e   :  { %v903_v12 = vadd.f32 %v902_v8, %v901_v63  ;;  %v910_v63 = vsel %vm652_vm3, %v2545_v40, 0.0 }
 0x160   :  { %v905_v0 = vadd.f32 %v904_v44, %v903_v12 }
 0x162   :  { %v907_v39 = vadd.f32 %v906_v26, %v905_v0 }
 0x164   :  { %v909_v27 = vadd.f32 %v908_v57, %v907_v39 }
 0x166   :  { %v911_v8 = vadd.f32 %v910_v63, %v909_v27 }
 0x168   :  { %v912_v55 = vrot.slane %v911_v8, 4 }
 0x16a   :  { %v913_v44 = vadd.f32 %v912_v55, %v911_v8 }
 0x16c   :  { %v914_v12 = vrot.slane %v913_v44, 2 }
 0x16e   :  { %v915_v54 = vadd.f32 %v914_v12, %v913_v44 }
 0x170   :  { %v916_v33 = vrot.slane %v915_v54, 1 }
 0x172   :  { %v917_v21 = vadd.f32 %v916_v33, %v915_v54 }
 0x174   :  { %v2549_v18 = vmul.f32 0.001953125, %v917_v21 }
 0x176   :  { %v919_v26 = vsub.f32 %v2233_v43, %v2549_v18  ;;  %v920_v0 = vsub.f32 %v2239_v47, %v2549_v18  ;;  %v921_v39 = vsub.f32 %v2237_v46, %v2549_v18  ;;  %v922_v27 = vsub.f32 %v2248_v53, %v2549_v18 }
 0x177   :  { %v923_v63 = vsub.f32 %v2257_v61, %v2549_v18  ;;  %v924_v21 = vsub.f32 %v2265_v4, %v2549_v18  ;;  %v925_v46 = vsub.f32 %v2263_v2, %v2549_v18  ;;  %v926_v61 = vsub.f32 %v2272_v9, %v2549_v18 }
 0x178   :  { %v983_v57 = vmul.f32 %v919_v26, %v919_v26  ;;  %v984_v55 = vmul.f32 %v920_v0, %v920_v0  ;;  %v985_v33 = vmul.f32 %v921_v39, %v921_v39  ;;  %v986_v54 = vmul.f32 %v922_v27, %v922_v27 }
 0x179   :  { %v987_v44 = vmul.f32 %v923_v63, %v923_v63  ;;  %v988_v26 = vmul.f32 %v924_v21, %v924_v21  ;;  %v927_v39 = vsub.f32 %v2281_v17, %v2549_v18  ;;  %v989_v27 = vmul.f32 %v925_v46, %v925_v46 }
 0x17a   :  { %v1047_v43 = vsel %vm652_vm3, %v983_v57, 0.0  ;;  %v1048_v47 = vsel %vm652_vm3, %v984_v55, 0.0  ;;  %v1050_v53 = vsel %vm652_vm3, %v985_v33, 0.0  ;;  %v1052_v0 = vsel %vm652_vm3, %v986_v54, 0.0 }
 0x17b   :  { %v1049_v8 = vadd.f32 %v1048_v47, %v1047_v43  ;;  %v1054_v57 = vsel %vm652_vm3, %v987_v44, 0.0  ;;  %v928_v2 = vsub.f32 %v2289_v24, %v2549_v18  ;;  %v990_v63 = vmul.f32 %v926_v61, %v926_v61 }
 0x17c   :  { %v1056_v33 = vsel %vm652_vm3, %v988_v26, 0.0  ;;  %v929_v9 = vsub.f32 %v2287_v22, %v2549_v18  ;;  %v991_v21 = vmul.f32 %v927_v39, %v927_v39  ;;  %v1058_v54 = vsel %vm652_vm3, %v989_v27, 0.0 }
 0x17d   :  { %v1051_v12 = vadd.f32 %v1050_v53, %v1049_v8  ;;  %v930_v17 = vsub.f32 %v2296_v29, %v2549_v18  ;;  %v992_v8 = vmul.f32 %v928_v2, %v928_v2  ;;  %v1060_v46 = vsel %vm652_vm3, %v990_v63, 0.0 }
 0x17e   :  { %v931_v24 = vsub.f32 %v2305_v37, %v2549_v18  ;;  %v993_v53 = vmul.f32 %v929_v9, %v929_v9  ;;  %v932_v22 = vsub.f32 %v2313_v45, %v2549_v18  ;;  %v933_v29 = vsub.f32 %v2311_v42, %v2549_v18 }
 0x17f   :  { %v1053_v4 = vadd.f32 %v1052_v0, %v1051_v12  ;;  %v1062_v12 = vsel %vm652_vm3, %v991_v21, 0.0  ;;  %v994_v26 = vmul.f32 %v930_v17, %v930_v17  ;;  %v1064_v0 = vsel %vm652_vm3, %v992_v8, 0.0 }
 0x180   :  { %v995_v39 = vmul.f32 %v931_v24, %v931_v24  ;;  %v1066_v27 = vsel %vm652_vm3, %v993_v53, 0.0  ;;  %v934_v37 = vsub.f32 %v2320_v52, %v2549_v18  ;;  %v935_v45 = vsub.f32 %v2329_v62, %v2549_v18 }
 0x181   :  { %v1055_v55 = vadd.f32 %v1054_v57, %v1053_v4  ;;  %v1068_v2 = vsel %vm652_vm3, %v994_v26, 0.0  ;;  %v936_v42 = vsub.f32 %v2337_v7, %v2549_v18  ;;  %v937_v17 = vsub.f32 %v2335_v5, %v2549_v18 }
 0x182   :  { %v998_v21 = vmul.f32 %v934_v37, %v934_v37  ;;  %v999_v8 = vmul.f32 %v935_v45, %v935_v45  ;;  %v938_v24 = vsub.f32 %v2344_v13, %v2549_v18  ;;  %v941_v37 = vsub.f32 %v2359_v30, %v2549_v18 }
 0x183   :  { %v1057_v43 = vadd.f32 %v1056_v33, %v1055_v55  ;;  %v996_v55 = vmul.f32 %v932_v22, %v932_v22  ;;  %v997_v33 = vmul.f32 %v933_v29, %v933_v29  ;;  %v1000_v53 = vmul.f32 %v936_v42, %v936_v42 }
 0x184   :  { %v939_v22 = vsub.f32 %v2353_v23, %v2549_v18  ;;  %v1001_v26 = vmul.f32 %v937_v17, %v937_v17  ;;  %v940_v29 = vsub.f32 %v2361_v32, %v2549_v18  ;;  %v942_v45 = vsub.f32 %v2368_v38, %v2549_v18 }
 0x185   :  { %v1059_v47 = vadd.f32 %v1058_v54, %v1057_v43  ;;  %v1070_v43 = vsel %vm652_vm3, %v995_v39, 0.0  ;;  %v1072_v54 = vsel %vm652_vm3, %v996_v55, 0.0  ;;  %v1002_v39 = vmul.f32 %v938_v24, %v938_v24 }
 0x186   :  { %v1003_v55 = vmul.f32 %v939_v22, %v939_v22  ;;  %v943_v42 = vsub.f32 %v2377_v51, %v2549_v18  ;;  %v944_v17 = vsub.f32 %v2385_v60, %v2549_v18  ;;  %v945_v24 = vsub.f32 %v2383_v58, %v2549_v18 }
 0x187   :  { %v1061_v44 = vadd.f32 %v1060_v46, %v1059_v47  ;;  %v1074_v46 = vsel %vm652_vm3, %v997_v33, 0.0  ;;  %v1004_v33 = vmul.f32 %v940_v29, %v940_v29  ;;  %v946_v22 = vsub.f32 %v2392_v6, %v2549_v18 }
 0x188   :  { %v947_v29 = vsub.f32 %v2401_v16, %v2549_v18 }
 0x189   :  { %v1063_v61 = vadd.f32 %v1062_v12, %v1061_v44  ;;  %v1076_v12 = vsel %vm652_vm3, %v998_v21, 0.0  ;;  %v1005_v21 = vmul.f32 %v941_v37, %v941_v37  ;;  %v948_v37 = vsub.f32 %v2407_v25, %v2549_v18 }
 0x18b   :  { %v1065_v4 = vadd.f32 %v1064_v0, %v1063_v61  ;;  %v1078_v0 = vsel %vm652_vm3, %v999_v8, 0.0  ;;  %v1006_v8 = vmul.f32 %v942_v45, %v942_v45  ;;  %v949_v45 = vsub.f32 %v2405_v20, %v2549_v18 }
 0x18d   :  { %v1067_v57 = vadd.f32 %v1066_v27, %v1065_v4  ;;  %v1080_v27 = vsel %vm652_vm3, %v1000_v53, 0.0  ;;  %v1007_v53 = vmul.f32 %v943_v42, %v943_v42  ;;  %v950_v42 = vsub.f32 %v2412_v31, %v2549_v18 }
 0x18f   :  { %v1069_v63 = vadd.f32 %v1068_v2, %v1067_v57  ;;  %v1082_v2 = vsel %vm652_vm3, %v1001_v26, 0.0  ;;  %v1008_v26 = vmul.f32 %v944_v17, %v944_v17  ;;  %v951_v17 = vsub.f32 %v2414_v34, %v2549_v18 }
 0x191   :  { %v1071_v9 = vadd.f32 %v1070_v43, %v1069_v63  ;;  %v1084_v43 = vsel %vm652_vm3, %v1002_v39, 0.0  ;;  %v1009_v39 = vmul.f32 %v945_v24, %v945_v24  ;;  %v952_v24 = vsub.f32 %v2425_v49, %v2549_v18 }
 0x193   :  { %v1073_v47 = vadd.f32 %v1072_v54, %v1071_v9  ;;  %v1086_v54 = vsel %vm652_vm3, %v1003_v55, 0.0  ;;  %v1010_v55 = vmul.f32 %v946_v22, %v946_v22  ;;  %v953_v22 = vsub.f32 %v2427_v50, %v2549_v18 }
 0x195   :  { %v1075_v44 = vadd.f32 %v1074_v46, %v1073_v47  ;;  %v1088_v46 = vsel %vm652_vm3, %v1004_v33, 0.0  ;;  %v1011_v33 = vmul.f32 %v947_v29, %v947_v29  ;;  %v954_v29 = vsub.f32 %v2431_v56, %v2549_v18 }
 0x197   :  { %v1077_v61 = vadd.f32 %v1076_v12, %v1075_v44  ;;  %v1090_v12 = vsel %vm652_vm3, %v1005_v21, 0.0  ;;  %v1012_v21 = vmul.f32 %v948_v37, %v948_v37  ;;  %v955_v37 = vsub.f32 %v2433_v59, %v2549_v18 }
 0x199   :  { %v1079_v4 = vadd.f32 %v1078_v0, %v1077_v61  ;;  %v1092_v0 = vsel %vm652_vm3, %v1006_v8, 0.0  ;;  %v1013_v8 = vmul.f32 %v949_v45, %v949_v45  ;;  %v956_v45 = vsub.f32 %v2441_v10, %v2549_v18 }
 0x19b   :  { %v1081_v57 = vadd.f32 %v1080_v27, %v1079_v4  ;;  %v1094_v27 = vsel %vm652_vm3, %v1007_v53, 0.0  ;;  %v1014_v53 = vmul.f32 %v950_v42, %v950_v42  ;;  %v957_v42 = vsub.f32 %v2443_v11, %v2549_v18 }
 0x19d   :  { %v1083_v63 = vadd.f32 %v1082_v2, %v1081_v57  ;;  %v1096_v2 = vsel %vm652_vm3, %v1008_v26, 0.0  ;;  %v1015_v26 = vmul.f32 %v951_v17, %v951_v17  ;;  %v958_v17 = vsub.f32 %v2447_v15, %v2549_v18 }
 0x19f   :  { %v1085_v9 = vadd.f32 %v1084_v43, %v1083_v63  ;;  %v1098_v43 = vsel %vm652_vm3, %v1009_v39, 0.0  ;;  %v1016_v39 = vmul.f32 %v952_v24, %v952_v24  ;;  %v959_v24 = vsub.f32 %v2449_v19, %v2549_v18 }
 0x1a1   :  { %v1087_v47 = vadd.f32 %v1086_v54, %v1085_v9  ;;  %v1100_v54 = vsel %vm652_vm3, %v1010_v55, 0.0  ;;  %v1017_v55 = vmul.f32 %v953_v22, %v953_v22  ;;  %v960_v22 = vsub.f32 %v2457_v35, %v2549_v18 }
 0x1a3   :  { %v1089_v44 = vadd.f32 %v1088_v46, %v1087_v47  ;;  %v1102_v46 = vsel %vm652_vm3, %v1011_v33, 0.0  ;;  %v1018_v33 = vmul.f32 %v954_v29, %v954_v29  ;;  %v961_v29 = vsub.f32 %v2459_v36, %v2549_v18 }
 0x1a5   :  { %v1091_v61 = vadd.f32 %v1090_v12, %v1089_v44  ;;  %v1104_v12 = vsel %vm652_vm3, %v1012_v21, 0.0  ;;  %v1019_v21 = vmul.f32 %v955_v37, %v955_v37  ;;  %v962_v37 = vsub.f32 %v2463_v41, %v2549_v18 }
 0x1a7   :  { %v1093_v4 = vadd.f32 %v1092_v0, %v1091_v61  ;;  %v1106_v0 = vsel %vm652_vm3, %v1013_v8, 0.0  ;;  %v1020_v8 = vmul.f32 %v956_v45, %v956_v45  ;;  %v963_v45 = vsub.f32 %v2465_v48, %v2549_v18 }
 0x1a9   :  { %v1095_v57 = vadd.f32 %v1094_v27, %v1093_v4  ;;  %v1108_v27 = vsel %vm652_vm3, %v1014_v53, 0.0  ;;  %v1021_v53 = vmul.f32 %v957_v42, %v957_v42  ;;  %v964_v42 = vsub.f32 %v2473_v1, %v2549_v18 }
 0x1ab   :  { %v1097_v63 = vadd.f32 %v1096_v2, %v1095_v57  ;;  %v1110_v2 = vsel %vm652_vm3, %v1015_v26, 0.0  ;;  %v1022_v26 = vmul.f32 %v958_v17, %v958_v17  ;;  %v965_v17 = vsub.f32 %v2475_v3, %v2549_v18 }
 0x1ad   :  { %v1099_v9 = vadd.f32 %v1098_v43, %v1097_v63  ;;  %v1112_v43 = vsel %vm652_vm3, %v1016_v39, 0.0  ;;  %v1023_v39 = vmul.f32 %v959_v24, %v959_v24  ;;  %v966_v24 = vsub.f32 %v2479_v14, %v2549_v18 }
 0x1af   :  { %v1101_v47 = vadd.f32 %v1100_v54, %v1099_v9  ;;  %v1114_v54 = vsel %vm652_vm3, %v1017_v55, 0.0  ;;  %v1024_v55 = vmul.f32 %v960_v22, %v960_v22  ;;  %v3848_v22 = vld [vmem:[#allocation3_spill] sm:$0xff] }
 0x1b1   :  { %v1103_v44 = vadd.f32 %v1102_v46, %v1101_v47  ;;  %v1116_v46 = vsel %vm652_vm3, %v1018_v33, 0.0  ;;  %v1025_v33 = vmul.f32 %v961_v29, %v961_v29 }
 0x1b3   :  { %v1105_v61 = vadd.f32 %v1104_v12, %v1103_v44  ;;  %v1118_v12 = vsel %vm652_vm3, %v1019_v21, 0.0  ;;  %v1026_v21 = vmul.f32 %v962_v37, %v962_v37 }
 0x1b5   :  { %v1107_v4 = vadd.f32 %v1106_v0, %v1105_v61  ;;  %v1120_v0 = vsel %vm652_vm3, %v1020_v8, 0.0  ;;  %v1027_v8 = vmul.f32 %v963_v45, %v963_v45 }
 0x1b7   :  { %v1109_v57 = vadd.f32 %v1108_v27, %v1107_v4  ;;  %v1122_v27 = vsel %vm652_vm3, %v1021_v53, 0.0  ;;  %v1028_v53 = vmul.f32 %v964_v42, %v964_v42 }
 0x1b9   :  { %v1111_v63 = vadd.f32 %v1110_v2, %v1109_v57  ;;  %v1124_v2 = vsel %vm652_vm3, %v1022_v26, 0.0  ;;  %v967_v26 = vsub.f32 %v3848_v22, %v2549_v18  ;;  %v1136_v37 = vsel %vm652_vm3, %v1028_v53, 0.0  ;;  %v3853_v53 = vld [vmem:[#allocation8_spill] sm:$0xff] }
 0x1bb   :  { %v1113_v9 = vadd.f32 %v1112_v43, %v1111_v63  ;;  %v1126_v43 = vsel %vm652_vm3, %v1023_v39, 0.0  ;;  %v3849_v39 = vld [vmem:[#allocation4_spill] sm:$0xff]  ;;  %v1031_v45 = vmul.f32 %v967_v26, %v967_v26 }
 0x1bd   :  { %v1115_v47 = vadd.f32 %v1114_v54, %v1113_v9  ;;  %v1128_v54 = vsel %vm652_vm3, %v1024_v55, 0.0 }
 0x1bf   :  { %v1117_v44 = vadd.f32 %v1116_v46, %v1115_v47  ;;  %v1130_v46 = vsel %vm652_vm3, %v1025_v33, 0.0 }
 0x1c1   :  { %v1119_v61 = vadd.f32 %v1118_v12, %v1117_v44  ;;  %v1132_v12 = vsel %vm652_vm3, %v1026_v21, 0.0 }
 0x1c3   :  { %v1121_v4 = vadd.f32 %v1120_v0, %v1119_v61  ;;  %v1029_v0 = vmul.f32 %v965_v17, %v965_v17  ;;  %v3852_v17 = vld [vmem:[#allocation7_spill] sm:$0xff] }
 0x1c5   :  { %v1123_v57 = vadd.f32 %v1122_v27, %v1121_v4  ;;  %v1134_v4 = vsel %vm652_vm3, %v1027_v8, 0.0  ;;  %v968_v27 = vsub.f32 %v3849_v39, %v2549_v18  ;;  %v1138_v33 = vsel %vm652_vm3, %v1029_v0, 0.0 }
 0x1c6   :  { %v971_v8 = vsub.f32 %v3852_v17, %v2549_v18 }
 0x1c7   :  { %v1125_v63 = vadd.f32 %v1124_v2, %v1123_v57  ;;  %v1030_v57 = vmul.f32 %v966_v24, %v966_v24  ;;  %v3850_v2 = vld [vmem:[#allocation5_spill] sm:$0xff]  ;;  %v1032_v21 = vmul.f32 %v968_v27, %v968_v27 }
 0x1c8   :  { %v1035_v27 = vmul.f32 %v971_v8, %v971_v8 }
 0x1c9   :  { %v1127_v9 = vadd.f32 %v1126_v43, %v1125_v63  ;;  %v969_v63 = vsub.f32 %v3850_v2, %v2549_v18  ;;  %v1144_v26 = vsel %vm652_vm3, %v1032_v21, 0.0 }
 0x1ca   :  { %v1150_v21 = vsel %vm652_vm3, %v1035_v27, 0.0 }
 0x1cb   :  { %v1129_v47 = vadd.f32 %v1128_v54, %v1127_v9  ;;  %v3851_v9 = vld [vmem:[#allocation6_spill] sm:$0xff]  ;;  %v1140_v54 = vsel %vm652_vm3, %v1030_v57, 0.0 }
 0x1cc   :  { %v970_v42 = vsub.f32 %v3851_v9, %v2549_v18 }
 0x1cd   :  { %v1131_v44 = vadd.f32 %v1130_v46, %v1129_v47  ;;  %v1033_v46 = vmul.f32 %v969_v63, %v969_v63 }
 0x1cf   :  { %v1133_v61 = vadd.f32 %v1132_v12, %v1131_v44  ;;  %v1142_v44 = vsel %vm652_vm3, %v1031_v45, 0.0  ;;  %v972_v12 = vsub.f32 %v3853_v53, %v2549_v18  ;;  %v1146_v57 = vsel %vm652_vm3, %v1033_v46, 0.0 }
 0x1d1   :  { %v1135_v29 = vadd.f32 %v1134_v4, %v1133_v61  ;;  %v1034_v61 = vmul.f32 %v970_v42, %v970_v42  ;;  %v3854_v4 = vld [vmem:[#allocation9_spill] sm:$0xff] }
 0x1d3   :  { %v1137_v55 = vadd.f32 %v1136_v37, %v1135_v29  ;;  %v973_v29 = vsub.f32 %v3854_v4, %v2549_v18  ;;  %v1148_v45 = vsel %vm652_vm3, %v1034_v61, 0.0 }
 0x1d5   :  { %v1139_v43 = vadd.f32 %v1138_v33, %v1137_v55  ;;  %v3855_v55 = vld [vmem:[#allocation10_spill] sm:$0xff]  ;;  %v1036_v33 = vmul.f32 %v972_v12, %v972_v12 }
 0x1d6   :  { %v974_v63 = vsub.f32 %v3855_v55, %v2549_v18 }
 0x1d7   :  { %v1141_v47 = vadd.f32 %v1140_v54, %v1139_v43  ;;  %v3856_v54 = vld [vmem:[#allocation11_spill] sm:$0xff]  ;;  %v1152_v46 = vsel %vm652_vm3, %v1036_v33, 0.0 }
 0x1d8   :  { %v975_v42 = vsub.f32 %v3856_v54, %v2549_v18 }
 0x1d9   :  { %v1143_v24 = vadd.f32 %v1142_v44, %v1141_v47  ;;  %v1037_v47 = vmul.f32 %v973_v29, %v973_v29 }
 0x1da   :  { %v1039_v55 = vmul.f32 %v975_v42, %v975_v42 }
 0x1db   :  { %v1145_v0 = vadd.f32 %v1144_v26, %v1143_v24  ;;  %v3857_v24 = vld [vmem:[#allocation12_spill] sm:$0xff]  ;;  %v1038_v26 = vmul.f32 %v974_v63, %v974_v63  ;;  %v1154_v61 = vsel %vm652_vm3, %v1037_v47, 0.0 }
 0x1dc   :  { %v976_v8 = vsub.f32 %v3857_v24, %v2549_v18  ;;  %v1158_v33 = vsel %vm652_vm3, %v1039_v55, 0.0 }
 0x1dd   :  { %v1147_v37 = vadd.f32 %v1146_v57, %v1145_v0  ;;  %v3858_v57 = vld [vmem:[#allocation13_spill] sm:$0xff]  ;;  %v1156_v27 = vsel %vm652_vm3, %v1038_v26, 0.0 }
 0x1de   :  { %v977_v12 = vsub.f32 %v3858_v57, %v2549_v18  ;;  %v1040_v54 = vmul.f32 %v976_v8, %v976_v8  ;;  %v981_v8 = vsub.f32 %v2541_v28, %v2549_v18 }
 0x1df   :  { %v1149_v43 = vadd.f32 %v1148_v45, %v1147_v37  ;;  %v3859_v45 = vld [vmem:[#allocation14_spill] sm:$0xff] }
 0x1e0   :  { %v978_v29 = vsub.f32 %v3859_v45, %v2549_v18  ;;  %v1041_v24 = vmul.f32 %v977_v12, %v977_v12  ;;  %v1160_v47 = vsel %vm652_vm3, %v1040_v54, 0.0  ;;  %v982_v12 = vsub.f32 %v2545_v40, %v2549_v18 }
 0x1e1   :  { %v1151_v44 = vadd.f32 %v1150_v21, %v1149_v43  ;;  %v3860_v21 = vld [vmem:[#allocation15_spill] sm:$0xff] }
 0x1e2   :  { %v979_v63 = vsub.f32 %v3860_v21, %v2549_v18  ;;  %v1042_v57 = vmul.f32 %v978_v29, %v978_v29  ;;  %v1162_v26 = vsel %vm652_vm3, %v1041_v24, 0.0  ;;  %v1046_v54 = vmul.f32 %v982_v12, %v982_v12 }
 0x1e3   :  { %v1153_v0 = vadd.f32 %v1152_v46, %v1151_v44  ;;  %v3861_v46 = vld [vmem:[#allocation16_spill] sm:$0xff] }
 0x1e4   :  { %v980_v42 = vsub.f32 %v3861_v46, %v2549_v18  ;;  %v1164_v55 = vsel %vm652_vm3, %v1042_v57, 0.0  ;;  %v1172_v24 = vsel %vm652_vm3, %v1046_v54, 0.0  ;;  %v2054_v54 = vld [vmem:[#allocation2] sm:$0xff] }
 0x1e5   :  { %v1155_v37 = vadd.f32 %v1154_v61, %v1153_v0  ;;  %v1043_v61 = vmul.f32 %v979_v63, %v979_v63 }
 0x1e7   :  { %v1157_v43 = vadd.f32 %v1156_v27, %v1155_v37  ;;  %v1044_v27 = vmul.f32 %v980_v42, %v980_v42  ;;  %v1166_v29 = vsel %vm652_vm3, %v1043_v61, 0.0  ;;  %v1189_v61 = vlaneseq }
 0x1e9   :  { %v1159_v44 = vadd.f32 %v1158_v33, %v1157_v43  ;;  %v1045_v33 = vmul.f32 %v981_v8, %v981_v8  ;;  %v2743_v12 = vshrl.u32 %v1189_v61, 7 }
 0x1eb   :  { %v1161_v0 = vadd.f32 %v1160_v47, %v1159_v44  ;;  %v1168_v44 = vsel %vm652_vm3, %v1044_v27, 0.0  ;;  %v1170_v63 = vsel %vm652_vm3, %v1045_v33, 0.0  ;;  %v3814_v27 = vsub.s32 0, %v2743_v12 }
 0x1ed   :  { %v1163_v37 = vadd.f32 %v1162_v26, %v1161_v0 }
 0x1ef   :  { %v1165_v43 = vadd.f32 %v1164_v55, %v1163_v37 }
 0x1f1   :  { %v1167_v46 = vadd.f32 %v1166_v29, %v1165_v43  ;;  %v2066_v29 = vld [vmem:[#allocation2 + $0x60] sm:$0xff] }
 0x1f3   :  { %v1169_v47 = vadd.f32 %v1168_v44, %v1167_v46  ;;  %v1181_v46 = vld [vmem:[%s3781_s2] sm:$0x1] }
 0x1f5   :  { %v1171_v28 = vadd.f32 %v1170_v63, %v1169_v47  ;;  %v2055_v47 = vld [vmem:[#allocation2 + $0x8] sm:$0xff] }
 0x1f7   :  { %v1173_v0 = vadd.f32 %v1172_v24, %v1171_v28  ;;  %v2056_v24 = vld [vmem:[#allocation2 + $0x10] sm:$0xff] }
 0x1f9   :  { %v1174_v26 = vrot.slane %v1173_v0, 4 }
 0x1fb   :  { %v1175_v40 = vadd.f32 %v1174_v26, %v1173_v0 }
 0x1fd   :  { %v1176_v42 = vrot.slane %v1175_v40, 2 }
 0x1ff   :  { %v1177_v21 = vadd.f32 %v1176_v42, %v1175_v40  ;;  %v2752_v40 = vld [vmem:[%s3782_s3] sm:$0x1] }
 0x200   :  { %v2058_v42 = vld [vmem:[#allocation2 + $0x20] sm:$0xff] }
 0x201   :  { %v1178_v57 = vrot.slane %v1177_v21, 1 }
 0x203   :  { %v1179_v37 = vadd.f32 %v1178_v57, %v1177_v21 }
 0x205   :  { %v1180_v8 = vmul.f32 0.001953125, %v1179_v37  ;;  %v2059_v37 = vld [vmem:[#allocation2 + $0x28] sm:$0xff] }
 0x207   :  { %v1182_v55 = vadd.f32 1e-05, %v1180_v8 }
 0x209   :  { %2052 = vrsqrt.f32 %v1182_v55  ;;  %v2060_v55 = vld [vmem:[#allocation2 + $0x30] sm:$0xff] }
 0x213   :  { %v2053_v43 = vpop.eup %2052 }
 0x214   :  { %v1184_v28 = vmul.f32 %v2053_v43, %v1181_v46  ;;  %v2061_v46 = vld [vmem:[#allocation2 + $0x38] sm:$0xff] }
 0x216   :  { %v2755_v21 = vmul.f32 %v1184_v28, %v2549_v18  ;;  %v2759_v33 = vrot.slane %v1184_v28, %v3814_v27  ;;  %v2057_v18 = vld [vmem:[#allocation2 + $0x18] sm:$0xff]  ;;  %v2062_v28 = vld [vmem:[#allocation2 + $0x40] sm:$0xff]  ;;  %v2067_v27 = vld [vmem:[#allocation2 + $0x68] sm:$0xff] }
 0x218   :  { %v2764_v44 = vmul.f32 %v2054_v54, %v2759_v33  ;;  %v2767_v63 = vmul.f32 %v2055_v47, %v2759_v33  ;;  %v2770_v0 = vmul.f32 %v2056_v24, %v2759_v33  ;;  %v2773_v26 = vmul.f32 %v2057_v18, %v2759_v33  ;;  %v2063_v47 = vld [vmem:[#allocation2 + $0x48] sm:$0xff]  ;;  %v2064_v18 = vld [vmem:[#allocation2 + $0x50] sm:$0xff] }
 0x219   :  { %v2776_v57 = vmul.f32 %v2058_v42, %v2759_v33  ;;  %v2779_v8 = vmul.f32 %v2059_v37, %v2759_v33  ;;  %v2782_v61 = vmul.f32 %v2060_v55, %v2759_v33  ;;  %v2785_v43 = vmul.f32 %v2061_v46, %v2759_v33  ;;  %v2065_v37 = vld [vmem:[#allocation2 + $0x58] sm:$0xff] }
 0x21a   :  { %v2788_v54 = vmul.f32 %v2062_v28, %v2759_v33  ;;  %v2791_v24 = vmul.f32 %v2063_v47, %v2759_v33  ;;  %v2794_v42 = vmul.f32 %v2064_v18, %v2759_v33  ;;  %v2797_v55 = vmul.f32 %v2065_v37, %v2759_v33 }
 0x21b   :  { %v2800_v46 = vmul.f32 %v2066_v29, %v2759_v33  ;;  %v2803_v28 = vmul.f32 %v2067_v27, %v2759_v33  ;;  %v2810_v18 = vmul.f32 %v2759_v33, %v2320_v52  ;;  %v2814_v37 = vmul.f32 %v2759_v33, %v2329_v62 }
 0x21c   :  { %3862 = vst [vmem:[#allocation3_spill] sm:$0xff] %v2788_v54  ;;  %v2068_v54 = vld [vmem:[#allocation2 + $0x70] sm:$0xff]  ;;  %v2818_v29 = vmul.f32 %v2759_v33, %v2337_v7  ;;  %v2822_v27 = vmul.f32 %v2759_v33, %v2335_v5  ;;  %v2830_v52 = vmul.f32 %v2759_v33, %v2353_v23  ;;  %v2834_v62 = vmul.f32 %v2759_v33, %v2361_v32 }
 0x21d   :  { %v2806_v47 = vmul.f32 %v2068_v54, %v2759_v33  ;;  %v2826_v54 = vmul.f32 %v2759_v33, %v2344_v13  ;;  %v2838_v7 = vmul.f32 %v2759_v33, %v2359_v30  ;;  %v2842_v5 = vmul.f32 %v2759_v33, %v2368_v38 }
 0x21e   :  { %v2846_v13 = vmul.f32 %v2759_v33, %v2377_v51  ;;  %v2850_v23 = vmul.f32 %v2759_v33, %v2385_v60  ;;  %v2854_v32 = vmul.f32 %v2759_v33, %v2383_v58  ;;  %v2858_v30 = vmul.f32 %v2759_v33, %v2392_v6 }
 0x21f   :  { %v2862_v38 = vmul.f32 %v2759_v33, %v2401_v16  ;;  %v2866_v51 = vmul.f32 %v2759_v33, %v2407_v25  ;;  %v2870_v60 = vmul.f32 %v2759_v33, %v2405_v20  ;;  %v2874_v58 = vmul.f32 %v2759_v33, %v2412_v31 }
 0x220   :  { %v2878_v6 = vmul.f32 %v2759_v33, %v2414_v34  ;;  %v2882_v16 = vmul.f32 %v2759_v33, %v2425_v49  ;;  %v2886_v25 = vmul.f32 %v2759_v33, %v2427_v50  ;;  %v2890_v20 = vmul.f32 %v2759_v33, %v2431_v56 }
 0x221   :  { %v2894_v31 = vmul.f32 %v2759_v33, %v2433_v59  ;;  %v2898_v34 = vmul.f32 %v2759_v33, %v2441_v10  ;;  %v2902_v49 = vmul.f32 %v2759_v33, %v2443_v11  ;;  %v2906_v50 = vmul.f32 %v2759_v33, %v2447_v15 }
 0x222   :  { %v2910_v56 = vmul.f32 %v2759_v33, %v2449_v19  ;;  %v2914_v59 = vmul.f32 %v2759_v33, %v2457_v35  ;;  %v2918_v10 = vmul.f32 %v2759_v33, %v2459_v36  ;;  %v2922_v11 = vmul.f32 %v2759_v33, %v2463_v41 }
 0x223   :  { %v2926_v15 = vmul.f32 %v2759_v33, %v2465_v48  ;;  %v2930_v19 = vmul.f32 %v2759_v33, %v2473_v1  ;;  %v2934_v35 = vmul.f32 %v2759_v33, %v2475_v3  ;;  %v2938_v36 = vmul.f32 %v2759_v33, %v2479_v14 }
 0x224   :  { %v2942_v41 = vmul.f32 %v2759_v33, %v3848_v22  ;;  %v2946_v48 = vmul.f32 %v2759_v33, %v3849_v39  ;;  %v2950_v1 = vmul.f32 %v2759_v33, %v3850_v2  ;;  %v2954_v3 = vmul.f32 %v2759_v33, %v3851_v9 }
 0x225   :  { %v2958_v14 = vmul.f32 %v2759_v33, %v3852_v17  ;;  %v2962_v22 = vmul.f32 %v2759_v33, %v3853_v53  ;;  %v2966_v39 = vmul.f32 %v2759_v33, %v3854_v4  ;;  %v2986_v4 = vmul.f32 %v2759_v33, %v3859_v45  ;;  %v3881_v45 = vld [vmem:[#allocation18_spill] sm:$0xff] }
 0x226   :  { %3863 = vst [vmem:[#allocation4_spill] sm:$0xff] %v2946_v48  ;;  %3864 = vst [vmem:[#allocation5_spill] sm:$0xff] %v2950_v1  ;;  %v3868_v48 = vld [vmem:[#allocation10_spill] sm:$0xff]  ;;  %v3870_v1 = vld [vmem:[#allocation11_spill] sm:$0xff] }
 0x227   :  { %3865 = vst [vmem:[#allocation6_spill] sm:$0xff] %v2954_v3  ;;  %3866 = vst [vmem:[#allocation7_spill] sm:$0xff] %v2958_v14  ;;  %v2970_v2 = vmul.f32 %v2759_v33, %v3868_v48  ;;  %v2974_v9 = vmul.f32 %v2759_v33, %v3870_v1  ;;  %v3872_v3 = vld [vmem:[#allocation12_spill] sm:$0xff]  ;;  %v3874_v14 = vld [vmem:[#allocation13_spill] sm:$0xff]  ;;  %v3877_v48 = vsub.f32 %v2752_v40, %v2755_v21 }
 0x228   :  { %3867 = vst [vmem:[#allocation8_spill] sm:$0xff] %v2966_v39  ;;  %v2978_v17 = vmul.f32 %v2759_v33, %v3872_v3  ;;  %v2982_v53 = vmul.f32 %v2759_v33, %v3874_v14  ;;  %v3876_v39 = vsub.s32 0, %v2743_v12  ;;  %v3878_v1 = vld [vmem:[#allocation15_spill] sm:$0xff]  ;;  %v3879_v3 = vld [vmem:[#allocation16_spill] sm:$0xff]  ;;  %v3880_v14 = vld [vmem:[#allocation17_spill] sm:$0xff]  ;;  %v3009_v12 = vmul.f32 %v2759_v33, %v3881_v45 }
 0x229   :  { %3869 = vst [vmem:[#allocation9_spill] sm:$0xff] %v2970_v2  ;;  %3871 = vst [vmem:[#allocation14_spill] sm:$0xff] %v2974_v9  ;;  %v2997_v9 = vmul.f32 %v2759_v33, %v3878_v1  ;;  %v3882_v1 = vld [vmem:[#allocation3_spill] sm:$0xff] }
 0x22a   :  { %3873 = vst [vmem:[#allocation10_spill] sm:$0xff] %v2978_v17  ;;  %3875 = vst [vmem:[#allocation11_spill] sm:$0xff] %v2982_v53  ;;  %v2993_v2 = vrot.slane %v3877_v48, %v3876_v39  ;;  %v3001_v17 = vmul.f32 %v2759_v33, %v3879_v3  ;;  %v3005_v53 = vmul.f32 %v2759_v33, %v3880_v14 }
 0x22c   :  { %v3013_v40 = vadd.f32 %v2993_v2, %v2764_v44  ;;  %v3017_v21 = vadd.f32 %v2993_v2, %v2767_v63  ;;  %v3021_v39 = vadd.f32 %v2993_v2, %v2770_v0  ;;  %v3025_v48 = vadd.f32 %v2993_v2, %v2773_v26 }
 0x22d   :  { %v3029_v33 = vadd.f32 %v2993_v2, %v2776_v57  ;;  %v3033_v44 = vadd.f32 %v2993_v2, %v2779_v8  ;;  %v3037_v63 = vadd.f32 %v2993_v2, %v2782_v61  ;;  %v3041_v0 = vadd.f32 %v2993_v2, %v2785_v43  ;;  %v3891_v14 = vld [vmem:[#allocation4_spill] sm:$0xff]  ;;  %v3893_v45 = vld [vmem:[#allocation5_spill] sm:$0xff] }
 0x22e   :  { %v3045_v26 = vadd.f32 %v2993_v2, %v3882_v1  ;;  %v3049_v57 = vadd.f32 %v2993_v2, %v2791_v24  ;;  %v3053_v8 = vadd.f32 %v2993_v2, %v2794_v42  ;;  %v3057_v61 = vadd.f32 %v2993_v2, %v2797_v55  ;;  %v3895_v1 = vld [vmem:[#allocation6_spill] sm:$0xff] }
 0x22f   :  { %v3061_v43 = vadd.f32 %v2993_v2, %v2800_v46  ;;  %v3065_v3 = vadd.f32 %v2993_v2, %v2803_v28  ;;  %v3069_v24 = vadd.f32 %v2993_v2, %v2806_v47  ;;  %v3073_v42 = vadd.f32 %v2993_v2, %v2810_v18 }
 0x230   :  { %v3077_v55 = vadd.f32 %v2993_v2, %v2814_v37  ;;  %v3081_v46 = vadd.f32 %v2993_v2, %v2818_v29  ;;  %v3085_v28 = vadd.f32 %v2993_v2, %v2822_v27  ;;  %v3089_v47 = vadd.f32 %v2993_v2, %v2826_v54 }
 0x231   :  { %v3093_v18 = vadd.f32 %v2993_v2, %v2830_v52  ;;  %v3097_v37 = vadd.f32 %v2993_v2, %v2834_v62  ;;  %v3101_v29 = vadd.f32 %v2993_v2, %v2838_v7  ;;  %v3105_v27 = vadd.f32 %v2993_v2, %v2842_v5 }
 0x232   :  { %v3109_v54 = vadd.f32 %v2993_v2, %v2846_v13  ;;  %v3113_v52 = vadd.f32 %v2993_v2, %v2850_v23  ;;  %v3117_v62 = vadd.f32 %v2993_v2, %v2854_v32  ;;  %v3121_v7 = vadd.f32 %v2993_v2, %v2858_v30 }
 0x233   :  { %v3125_v5 = vadd.f32 %v2993_v2, %v2862_v38  ;;  %v3129_v13 = vadd.f32 %v2993_v2, %v2866_v51  ;;  %v3133_v23 = vadd.f32 %v2993_v2, %v2870_v60  ;;  %v3137_v32 = vadd.f32 %v2993_v2, %v2874_v58 }
 0x234   :  { %v3141_v30 = vadd.f32 %v2993_v2, %v2878_v6  ;;  %v3145_v38 = vadd.f32 %v2993_v2, %v2882_v16  ;;  %v3149_v51 = vadd.f32 %v2993_v2, %v2886_v25  ;;  %v3153_v60 = vadd.f32 %v2993_v2, %v2890_v20 }
 0x235   :  { %v3157_v58 = vadd.f32 %v2993_v2, %v2894_v31  ;;  %v3161_v6 = vadd.f32 %v2993_v2, %v2898_v34  ;;  %v3165_v16 = vadd.f32 %v2993_v2, %v2902_v49  ;;  %v3169_v25 = vadd.f32 %v2993_v2, %v2906_v50 }
 0x236   :  { %v3173_v20 = vadd.f32 %v2993_v2, %v2910_v56  ;;  %v3177_v31 = vadd.f32 %v2993_v2, %v2914_v59  ;;  %v3181_v34 = vadd.f32 %v2993_v2, %v2918_v10  ;;  %v3185_v49 = vadd.f32 %v2993_v2, %v2922_v11 }
 0x237   :  { %3883 = vst [vmem:[#allocation12_spill] sm:$0xff] %v3161_v6  ;;  %3884 = vst [vmem:[#allocation13_spill] sm:$0xff] %v3165_v16  ;;  %v3189_v50 = vadd.f32 %v2993_v2, %v2926_v15  ;;  %v3193_v56 = vadd.f32 %v2993_v2, %v2930_v19  ;;  %v3197_v59 = vadd.f32 %v2993_v2, %v2934_v35 }
 0x238   :  { %3885 = vst [vmem:[#allocation15_spill] sm:$0xff] %v3169_v25  ;;  %3886 = vst [vmem:[#allocation16_spill] sm:$0xff] %v3173_v20  ;;  %v3201_v10 = vadd.f32 %v2993_v2, %v2938_v36  ;;  %v3205_v11 = vadd.f32 %v2993_v2, %v2942_v41  ;;  %v3209_v15 = vadd.f32 %v2993_v2, %v3891_v14 }
 0x239   :  { %3887 = vst [vmem:[#allocation17_spill] sm:$0xff] %v3177_v31  ;;  %3888 = vst [vmem:[#allocation18_spill] sm:$0xff] %v3197_v59  ;;  %v3213_v19 = vadd.f32 %v2993_v2, %v3893_v45  ;;  %v3217_v35 = vadd.f32 %v2993_v2, %v3895_v1  ;;  %v3897_v59 = vld [vmem:[#allocation7_spill] sm:$0xff]  ;;  %v3225_v41 = vadd.f32 %v2993_v2, %v2962_v22 }
 0x23a   :  { %3889 = vst [vmem:[#allocation3_spill] sm:$0xff] %v3201_v10  ;;  %3890 = vst [vmem:[#allocation19_spill] sm:$0xff] %v3205_v11  ;;  %v3221_v36 = vadd.f32 %v2993_v2, %v3897_v59  ;;  %v3899_v11 = vld [vmem:[#allocation8_spill] sm:$0xff] }
 0x23b   :  { %3892 = vst [vmem:[#allocation4_spill] sm:$0xff] %v3209_v15  ;;  %3894 = vst [vmem:[#allocation5_spill] sm:$0xff] %v3213_v19  ;;  %v3229_v14 = vadd.f32 %v2993_v2, %v3899_v11  ;;  %v3900_v15 = vld [vmem:[#allocation9_spill] sm:$0xff]  ;;  %v3901_v19 = vld [vmem:[#allocation14_spill] sm:$0xff]  ;;  %v3249_v11 = vadd.f32 %v2993_v2, %v2986_v4 }
 0x23c   :  { %3896 = vst [vmem:[#allocation6_spill] sm:$0xff] %v3217_v35  ;;  %3898 = vst [vmem:[#allocation7_spill] sm:$0xff] %v3221_v36  ;;  %v3233_v45 = vadd.f32 %v2993_v2, %v3900_v15  ;;  %v3237_v1 = vadd.f32 %v2993_v2, %v3901_v19  ;;  %v3902_v35 = vld [vmem:[#allocation10_spill] sm:$0xff]  ;;  %v3903_v36 = vld [vmem:[#allocation11_spill] sm:$0xff]  ;;  %v3253_v15 = vadd.f32 %v2993_v2, %v2997_v9 }
 0x23d   :  { %v3241_v59 = vadd.f32 %v2993_v2, %v3902_v35  ;;  %v3245_v22 = vadd.f32 %v2993_v2, %v3903_v36  ;;  %3905 = vst [vmem:[#allocation9_spill] sm:$0xff] %v3249_v11  ;;  %v3257_v19 = vadd.f32 %v2993_v2, %v3001_v17  ;;  %v3261_v35 = vadd.f32 %v2993_v2, %v3005_v53 }
 0x23e   :  { %3906 = vst [vmem:[#allocation14_spill] sm:$0xff] %v3253_v15  ;;  %v3265_v36 = vadd.f32 %v2993_v2, %v3009_v12  ;;  %v3916_v6 = vmov %v3249_v11  ;;  %v3917_v16 = vmov %v3253_v15  ;;  %v3920_v15 = vmax.f32 %v3013_v40, 0.0 }
 0x23f   :  { %3904 = vst [vmem:[#allocation8_spill] sm:$0xff] %v3245_v22  ;;  %3907 = vst [vmem:[#allocation10_spill] sm:$0xff] %v3257_v19  ;;  %v3918_v25 = vmov %v3257_v19  ;;  %v3919_v20 = vmov %v3261_v35  ;;  %v3921_v19 = vmax.f32 %v3017_v21, 0.0  ;;  %v3923_v12 = vmax.f32 %v3025_v48, 0.0 }
 0x240   :  { %3908 = vst [vmem:[#allocation11_spill] sm:$0xff] %v3261_v35  ;;  %v3909_v22 = vld [vmem:[#allocation18_spill] sm:$0xff]  ;;  %v1847_v17 = vpack.c.bf16 %v3920_v15, %v3920_v15  ;;  %v3922_v35 = vmax.f32 %v3021_v39, 0.0  ;;  %v3924_v11 = vmax.f32 %v3029_v33, 0.0  ;;  %v3925_v40 = vmax.f32 %v3033_v44, 0.0 }
 0x241   :  { %v1848_v53 = vpack.c.bf16 %v3921_v19, %v3921_v19  ;;  %v1850_v4 = vpack.c.bf16 %v3923_v12, %v3923_v12  ;;  %v3926_v21 = vmax.f32 %v3037_v63, 0.0  ;;  %v3927_v39 = vmax.f32 %v3041_v0, 0.0 }
 0x242   :  { %v1849_v2 = vpack.c.bf16 %v3922_v35, %v3922_v35  ;;  %v1851_v9 = vpack.c.bf16 %v3924_v11, %v3924_v11  ;;  %v1852_v15 = vpack.c.bf16 %v3925_v40, %v3925_v40  ;;  %v3928_v48 = vmax.f32 %v3045_v26, 0.0  ;;  %1649 = vst.msk [vmem:[%s3783_s4] sm:$0xf] %vm1648_vm4, %v1847_v17 }
 0x243   :  { %v3914_v31 = vld [vmem:[#allocation7_spill] sm:$0xff]  ;;  %v1853_v19 = vpack.c.bf16 %v3926_v21, %v3926_v21  ;;  %v1854_v35 = vpack.c.bf16 %v3927_v39, %v3927_v39  ;;  %v3929_v33 = vmax.f32 %v3049_v57, 0.0  ;;  %v3930_v44 = vmax.f32 %v3053_v8, 0.0  ;;  %1650 = vst.msk [vmem:[%s3783_s4 + $0x4] sm:$0xf] %vm1648_vm4, %v1848_v53 }
 0x244   :  { %v1855_v12 = vpack.c.bf16 %v3928_v48, %v3928_v48  ;;  %v3931_v63 = vmax.f32 %v3057_v61, 0.0  ;;  %1651 = vst.msk [vmem:[%s3783_s4 + $0x8] sm:$0xf] %vm1648_vm4, %v1849_v2  ;;  %1652 = vst.msk [vmem:[%s3783_s4 + $0xc] sm:$0xf] %vm1648_vm4, %v1850_v4  ;;  %v3932_v0 = vmax.f32 %v3061_v43, 0.0 }
 0x245   :  { %v1856_v11 = vpack.c.bf16 %v3929_v33, %v3929_v33  ;;  %v1857_v40 = vpack.c.bf16 %v3930_v44, %v3930_v44  ;;  %v3933_v57 = vmax.f32 %v3065_v3, 0.0  ;;  %v3934_v61 = vmax.f32 %v3069_v24, 0.0  ;;  %1653 = vst.msk [vmem:[%s3783_s4 + $0x10] sm:$0xf] %vm1648_vm4, %v1851_v9  ;;  %1654 = vst.msk [vmem:[%s3783_s4 + $0x14] sm:$0xf] %vm1648_vm4, %v1852_v15 }
 0x246   :  { %v3915_v10 = vld [vmem:[#allocation8_spill] sm:$0xff]  ;;  %v1858_v21 = vpack.c.bf16 %v3931_v63, %v3931_v63  ;;  %v1859_v26 = vpack.c.bf16 %v3932_v0, %v3932_v0  ;;  %v3935_v53 = vmax.f32 %v3073_v42, 0.0  ;;  %1655 = vst.msk [vmem:[%s3783_s4 + $0x18] sm:$0xf] %vm1648_vm4, %v1853_v19  ;;  %1656 = vst.msk [vmem:[%s3783_s4 + $0x1c] sm:$0xf] %vm1648_vm4, %v1854_v35 }
 0x247   :  { %v1860_v8 = vpack.c.bf16 %v3933_v57, %v3933_v57  ;;  %v1861_v17 = vpack.c.bf16 %v3934_v61, %v3934_v61  ;;  %v3936_v43 = vmax.f32 %v3077_v55, 0.0  ;;  %v3937_v24 = vmax.f32 %v3081_v46, 0.0  ;;  %1657 = vst.msk [vmem:[%s3783_s4 + $0x20] sm:$0xf] %vm1648_vm4, %v1855_v12  ;;  %1658 = vst.msk [vmem:[%s3783_s4 + $0x24] sm:$0xf] %vm1648_vm4, %v1856_v11 }
 0x248   :  { %v1862_v2 = vpack.c.bf16 %v3935_v53, %v3935_v53  ;;  %v3938_v4 = vmax.f32 %v3085_v28, 0.0  ;;  %v3939_v15 = vmax.f32 %v3089_v47, 0.0  ;;  %1659 = vst.msk [vmem:[%s3783_s4 + $0x28] sm:$0xf] %vm1648_vm4, %v1857_v40  ;;  %1660 = vst.msk [vmem:[%s3783_s4 + $0x2c] sm:$0xf] %vm1648_vm4, %v1858_v21 }
 0x249   :  { %v1863_v3 = vpack.c.bf16 %v3936_v43, %v3936_v43  ;;  %v1864_v42 = vpack.c.bf16 %v3937_v24, %v3937_v24  ;;  %v3940_v55 = vmax.f32 %v3093_v18, 0.0  ;;  %v3941_v28 = vmax.f32 %v3097_v37, 0.0  ;;  %1661 = vst.msk [vmem:[%s3783_s4 + $0x30] sm:$0xf] %vm1648_vm4, %v1859_v26  ;;  %1662 = vst.msk [vmem:[%s3783_s4 + $0x34] sm:$0xf] %vm1648_vm4, %v1860_v8 }
 0x24a   :  { %v1865_v9 = vpack.c.bf16 %v3938_v4, %v3938_v4  ;;  %v1866_v19 = vpack.c.bf16 %v3939_v15, %v3939_v15  ;;  %v3942_v39 = vmax.f32 %v3101_v29, 0.0  ;;  %v3943_v48 = vmax.f32 %v3105_v27, 0.0  ;;  %1663 = vst.msk [vmem:[%s3783_s4 + $0x38] sm:$0xf] %vm1648_vm4, %v1861_v17  ;;  %1664 = vst.msk [vmem:[%s3783_s4 + $0x3c] sm:$0xf] %vm1648_vm4, %v1862_v2 }
 0x24b   :  { %v1867_v46 = vpack.c.bf16 %v3940_v55, %v3940_v55  ;;  %v1868_v47 = vpack.c.bf16 %v3941_v28, %v3941_v28  ;;  %v3944_v18 = vmax.f32 %v3109_v54, 0.0  ;;  %v3945_v29 = vmax.f32 %v3113_v52, 0.0  ;;  %1665 = vst.msk [vmem:[%s3783_s4 + $0x40] sm:$0xf] %vm1648_vm4, %v1863_v3  ;;  %1666 = vst.msk [vmem:[%s3783_s4 + $0x44] sm:$0xf] %vm1648_vm4, %v1864_v42 }
 0x24c   :  { %v1869_v35 = vpack.c.bf16 %v3942_v39, %v3942_v39  ;;  %v1870_v12 = vpack.c.bf16 %v3943_v48, %v3943_v48  ;;  %v3946_v33 = vmax.f32 %v3117_v62, 0.0  ;;  %v3947_v44 = vmax.f32 %v3121_v7, 0.0  ;;  %1667 = vst.msk [vmem:[%s3783_s4 + $0x48] sm:$0xf] %vm1648_vm4, %v1865_v9  ;;  %1668 = vst.msk [vmem:[%s3783_s4 + $0x4c] sm:$0xf] %vm1648_vm4, %v1866_v19 }
 0x24d   :  { %v1871_v37 = vpack.c.bf16 %v3944_v18, %v3944_v18  ;;  %v1872_v27 = vpack.c.bf16 %v3945_v29, %v3945_v29  ;;  %v3948_v54 = vmax.f32 %v3125_v5, 0.0  ;;  %v3949_v62 = vmax.f32 %v3129_v13, 0.0  ;;  %1669 = vst.msk [vmem:[%s3783_s4 + $0x50] sm:$0xf] %vm1648_vm4, %v1867_v46  ;;  %1670 = vst.msk [vmem:[%s3783_s4 + $0x54] sm:$0xf] %vm1648_vm4, %v1868_v47 }
 0x24e   :  { %v1873_v11 = vpack.c.bf16 %v3946_v33, %v3946_v33  ;;  %v1874_v40 = vpack.c.bf16 %v3947_v44, %v3947_v44  ;;  %v3950_v63 = vmax.f32 %v3133_v23, 0.0  ;;  %v3951_v0 = vmax.f32 %v3137_v32, 0.0  ;;  %1671 = vst.msk [vmem:[%s3783_s4 + $0x58] sm:$0xf] %vm1648_vm4, %v1869_v35  ;;  %1672 = vst.msk [vmem:[%s3783_s4 + $0x5c] sm:$0xf] %vm1648_vm4, %v1870_v12 }
 0x24f   :  { %v1875_v52 = vpack.c.bf16 %v3948_v54, %v3948_v54  ;;  %v1876_v7 = vpack.c.bf16 %v3949_v62, %v3949_v62  ;;  %v3952_v5 = vmax.f32 %v3141_v30, 0.0  ;;  %v3953_v23 = vmax.f32 %v3145_v38, 0.0  ;;  %1673 = vst.msk [vmem:[%s3783_s4 + $0x60] sm:$0xf] %vm1648_vm4, %v1871_v37  ;;  %1674 = vst.msk [vmem:[%s3783_s4 + $0x64] sm:$0xf] %vm1648_vm4, %v1872_v27 }
 0x250   :  { %v1877_v21 = vpack.c.bf16 %v3950_v63, %v3950_v63  ;;  %v1878_v26 = vpack.c.bf16 %v3951_v0, %v3951_v0  ;;  %v3954_v57 = vmax.f32 %v3149_v51, 0.0  ;;  %v3955_v61 = vmax.f32 %v3153_v60, 0.0  ;;  %1675 = vst.msk [vmem:[%s3783_s4 + $0x68] sm:$0xf] %vm1648_vm4, %v1873_v11  ;;  %1676 = vst.msk [vmem:[%s3783_s4 + $0x6c] sm:$0xf] %vm1648_vm4, %v1874_v40 }
 0x251   :  { %v1879_v13 = vpack.c.bf16 %v3952_v5, %v3952_v5  ;;  %v1880_v32 = vpack.c.bf16 %v3953_v23, %v3953_v23  ;;  %v3956_v30 = vmax.f32 %v3157_v58, 0.0  ;;  %v3957_v51 = vld [vmem:[#allocation12_spill] sm:$0xff]  ;;  %v3959_v2 = vld [vmem:[#allocation13_spill] sm:$0xff]  ;;  %v3961_v24 = vld [vmem:[#allocation15_spill] sm:$0xff]  ;;  %1677 = vst.msk [vmem:[%s3783_s4 + $0x70] sm:$0xf] %vm1648_vm4, %v1875_v52 }
 0x252   :  { %v1881_v8 = vpack.c.bf16 %v3954_v57, %v3954_v57  ;;  %v1882_v17 = vpack.c.bf16 %v3955_v61, %v3955_v61  ;;  %v3958_v60 = vmax.f32 %v3957_v51, 0.0  ;;  %v3960_v43 = vmax.f32 %v3959_v2, 0.0  ;;  %1678 = vst.msk [vmem:[%s3783_s4 + $0x74] sm:$0xf] %vm1648_vm4, %v1876_v7  ;;  %1679 = vst.msk [vmem:[%s3783_s4 + $0x78] sm:$0xf] %vm1648_vm4, %v1877_v21 }
 0x253   :  { %v1883_v38 = vpack.c.bf16 %v3956_v30, %v3956_v30  ;;  %v3962_v42 = vmax.f32 %v3961_v24, 0.0  ;;  %1680 = vst.msk [vmem:[%s3783_s4 + $0x7c] sm:$0xf] %vm1648_vm4, %v1878_v26  ;;  %v3963_v58 = vld [vmem:[#allocation16_spill] sm:$0xff]  ;;  %v3965_v19 = vld [vmem:[#allocation17_spill] sm:$0xff]  ;;  %v3967_v28 = vmax.f32 %v3181_v34, 0.0 }
 0x254   :  { %v1884_v53 = vpack.c.bf16 %v3958_v60, %v3958_v60  ;;  %v1885_v3 = vpack.c.bf16 %v3960_v43, %v3960_v43  ;;  %v3964_v9 = vmax.f32 %v3963_v58, 0.0  ;;  %v3966_v55 = vmax.f32 %v3965_v19, 0.0  ;;  %1681 = vst.msk [vmem:[%s3783_s4 + $0x80] sm:$0xf] %vm1648_vm4, %v1879_v13  ;;  %1682 = vst.msk [vmem:[%s3783_s4 + $0x84] sm:$0xf] %vm1648_vm4, %v1880_v32 }
 0x255   :  { %v1886_v4 = vpack.c.bf16 %v3962_v42, %v3962_v42  ;;  %v1889_v47 = vpack.c.bf16 %v3967_v28, %v3967_v28  ;;  %v3968_v39 = vmax.f32 %v3185_v49, 0.0  ;;  %1683 = vst.msk [vmem:[%s3783_s4 + $0x88] sm:$0xf] %vm1648_vm4, %v1881_v8  ;;  %1684 = vst.msk [vmem:[%s3783_s4 + $0x8c] sm:$0xf] %vm1648_vm4, %v1882_v17  ;;  %v3969_v34 = vmax.f32 %v3189_v50, 0.0 }
 0x256   :  { %v1887_v15 = vpack.c.bf16 %v3964_v9, %v3964_v9  ;;  %v1888_v46 = vpack.c.bf16 %v3966_v55, %v3966_v55  ;;  %v3970_v48 = vmax.f32 %v3193_v56, 0.0  ;;  %v3971_v18 = vmax.f32 %v3909_v22, 0.0  ;;  %v3972_v29 = vld [vmem:[#allocation3_spill] sm:$0xff]  ;;  %1685 = vst.msk [vmem:[%s3783_s4 + $0x90] sm:$0xf] %vm1648_vm4, %v1883_v38  ;;  %v3976_v11 = vld [vmem:[#allocation4_spill] sm:$0xff] }
 0x257   :  { %v1890_v35 = vpack.c.bf16 %v3968_v39, %v3968_v39  ;;  %v1891_v49 = vpack.c.bf16 %v3969_v34, %v3969_v34  ;;  %v3973_v27 = vmax.f32 %v3972_v29, 0.0  ;;  %1686 = vst.msk [vmem:[%s3783_s4 + $0x94] sm:$0xf] %vm1648_vm4, %v1884_v53  ;;  %1687 = vst.msk [vmem:[%s3783_s4 + $0x98] sm:$0xf] %vm1648_vm4, %v1885_v3  ;;  %v3974_v50 = vld [vmem:[#allocation19_spill] sm:$0xff] }
 0x258   :  { %v1892_v12 = vpack.c.bf16 %v3970_v48, %v3970_v48  ;;  %v1893_v37 = vpack.c.bf16 %v3971_v18, %v3971_v18  ;;  %1688 = vst.msk [vmem:[%s3783_s4 + $0x9c] sm:$0xf] %vm1648_vm4, %v1886_v4  ;;  %v3975_v56 = vmax.f32 %v3974_v50, 0.0  ;;  %v3977_v44 = vmax.f32 %v3976_v11, 0.0  ;;  %v3978_v54 = vld [vmem:[#allocation5_spill] sm:$0xff]  ;;  %v3980_v7 = vld [vmem:[#allocation6_spill] sm:$0xff] }
 0x259   :  { %v1894_v33 = vpack.c.bf16 %v3973_v27, %v3973_v27  ;;  %v3979_v52 = vmax.f32 %v3978_v54, 0.0  ;;  %v3981_v63 = vmax.f32 %v3980_v7, 0.0  ;;  %1689 = vst.msk [vmem:[%s3783_s4 + $0xa0] sm:$0xf] %vm1648_vm4, %v1887_v15  ;;  %1690 = vst.msk [vmem:[%s3783_s4 + $0xa4] sm:$0xf] %vm1648_vm4, %v1888_v46 }
 0x25a   :  { %v1895_v22 = vpack.c.bf16 %v3975_v56, %v3975_v56  ;;  %v1896_v40 = vpack.c.bf16 %v3977_v44, %v3977_v44  ;;  %1691 = vst.msk [vmem:[%s3783_s4 + $0xa8] sm:$0xf] %vm1648_vm4, %v1889_v47  ;;  %1692 = vst.msk [vmem:[%s3783_s4 + $0xac] sm:$0xf] %vm1648_vm4, %v1890_v35  ;;  %v3982_v0 = vmax.f32 %v3914_v31, 0.0  ;;  %v3983_v5 = vmax.f32 %v3225_v41, 0.0 }
 0x25b   :  { %v1897_v62 = vpack.c.bf16 %v3979_v52, %v3979_v52  ;;  %v1898_v21 = vpack.c.bf16 %v3981_v63, %v3981_v63  ;;  %v3984_v23 = vmax.f32 %v3229_v14, 0.0  ;;  %v3985_v57 = vmax.f32 %v3233_v45, 0.0  ;;  %1693 = vst.msk [vmem:[%s3783_s4 + $0xb0] sm:$0xf] %vm1648_vm4, %v1891_v49  ;;  %1694 = vst.msk [vmem:[%s3783_s4 + $0xb4] sm:$0xf] %vm1648_vm4, %v1892_v12 }
 0x25c   :  { %v1899_v26 = vpack.c.bf16 %v3982_v0, %v3982_v0  ;;  %v1900_v13 = vpack.c.bf16 %v3983_v5, %v3983_v5  ;;  %1695 = vst.msk [vmem:[%s3783_s4 + $0xb8] sm:$0xf] %vm1648_vm4, %v1893_v37  ;;  %1696 = vst.msk [vmem:[%s3783_s4 + $0xbc] sm:$0xf] %vm1648_vm4, %v1894_v33  ;;  %v3986_v31 = vmax.f32 %v3237_v1, 0.0  ;;  %v3987_v14 = vmax.f32 %v3241_v59, 0.0 }
 0x25d   :  { %v1901_v32 = vpack.c.bf16 %v3984_v23, %v3984_v23  ;;  %v1902_v8 = vpack.c.bf16 %v3985_v57, %v3985_v57  ;;  %v3988_v61 = vmax.f32 %v3915_v10, 0.0  ;;  %v3989_v30 = vmax.f32 %v3916_v6, 0.0  ;;  %1697 = vst.msk [vmem:[%s3783_s4 + $0xc0] sm:$0xf] %vm1648_vm4, %v1895_v22  ;;  %1698 = vst.msk [vmem:[%s3783_s4 + $0xc4] sm:$0xf] %vm1648_vm4, %v1896_v40 }
 0x25e   :  { %v1903_v41 = vpack.c.bf16 %v3986_v31, %v3986_v31  ;;  %v1904_v45 = vpack.c.bf16 %v3987_v14, %v3987_v14  ;;  %1699 = vst.msk [vmem:[%s3783_s4 + $0xc8] sm:$0xf] %vm1648_vm4, %v1897_v62  ;;  %1700 = vst.msk [vmem:[%s3783_s4 + $0xcc] sm:$0xf] %vm1648_vm4, %v1898_v21  ;;  %v3990_v6 = vmax.f32 %v3917_v16, 0.0  ;;  %v3991_v1 = vmax.f32 %v3918_v25, 0.0 }
 0x25f   :  { %v1905_v17 = vpack.c.bf16 %v3988_v61, %v3988_v61  ;;  %v1906_v38 = vpack.c.bf16 %v3989_v30, %v3989_v30  ;;  %v3992_v51 = vmax.f32 %v3919_v20, 0.0  ;;  %v3993_v53 = vmax.f32 %v3265_v36, 0.0  ;;  %1701 = vst.msk [vmem:[%s3783_s4 + $0xd0] sm:$0xf] %vm1648_vm4, %v1899_v26  ;;  %1702 = vst.msk [vmem:[%s3783_s4 + $0xd4] sm:$0xf] %vm1648_vm4, %v1900_v13 }
 0x260   :  { %v1907_v10 = vpack.c.bf16 %v3990_v6, %v3990_v6  ;;  %v1908_v59 = vpack.c.bf16 %v3991_v1, %v3991_v1  ;;  %1703 = vst.msk [vmem:[%s3783_s4 + $0xd8] sm:$0xf] %vm1648_vm4, %v1901_v32  ;;  %1704 = vst.msk [vmem:[%s3783_s4 + $0xdc] sm:$0xf] %vm1648_vm4, %v1902_v8 }
 0x261   :  { %v1909_v60 = vpack.c.bf16 %v3992_v51, %v3992_v51  ;;  %v1910_v2 = vpack.c.bf16 %v3993_v53, %v3993_v53  ;;  %1705 = vst.msk [vmem:[%s3783_s4 + $0xe0] sm:$0xf] %vm1648_vm4, %v1903_v41  ;;  %1706 = vst.msk [vmem:[%s3783_s4 + $0xe4] sm:$0xf] %vm1648_vm4, %v1904_v45 }
 0x262   :  { %1707 = vst.msk [vmem:[%s3783_s4 + $0xe8] sm:$0xf] %vm1648_vm4, %v1905_v17  ;;  %1708 = vst.msk [vmem:[%s3783_s4 + $0xec] sm:$0xf] %vm1648_vm4, %v1906_v38 }
 0x263   :  { %1709 = vst.msk [vmem:[%s3783_s4 + $0xf0] sm:$0xf] %vm1648_vm4, %v1907_v10  ;;  %1710 = vst.msk [vmem:[%s3783_s4 + $0xf4] sm:$0xf] %vm1648_vm4, %v1908_v59 }
 0x264   :  { %1711 = vst.msk [vmem:[%s3783_s4 + $0xf8] sm:$0xf] %vm1648_vm4, %v1909_v60  ;;  %1712 = vst.msk [vmem:[%s3783_s4 + $0xfc] sm:$0xf] %vm1648_vm4, %v1910_v2 }

// kernel: encoder_forward.6
= control target key start
LH: loop header
LB: loop body
LE: loop exit
PB: predicated region body
PF: predicated region fallthrough
CT: control target
= control target key end

     0   :  { %vm314_vm0 = vcmask 261120   ;;  %vm535_vm1 = vcmask 523264   ;;  %vm811_vm2 = vcmask 519168   ;;  %s1464_s1 = inlined_call_operand.vmem [shape: bf16[288,64], index: 1, kind: input, shape index: {}]   ;;  %s1465_s0 = inlined_call_operand.vmem [shape: bf16[128,288], index: 0, kind: input, shape index: {}]   ;;  %s1466_s2 = inlined_call_operand.vmem [shape: f32[1,64], index: 2, kind: input, shape index: {}]   ;;  %s1467_s3 = inlined_call_operand.vmem [shape: f32[1,64], index: 3, kind: input, shape index: {}]   ;;  %s1468_s4 = inlined_call_operand.vmem [shape: bf16[128,64], index: 4, kind: output, shape index: {}]  }
   0x1   :  { %v1024_v0 = vld [vmem:[%s1464_s1 + $0x40] sm:$0xff]   ;;  %v1026_v2 = vld [vmem:[%s1464_s1 + $0x48] sm:$0xff]   ;;  %v1028_v4 = vld [vmem:[%s1464_s1 + $0x50] sm:$0xff]  }
   0x2   :  { %v1025_v1 = vld [vmem:[%s1464_s1] sm:$0xff]   ;;  %914 = vmatprep.subr.bf16.mxu0 %v1024_v0  ;;  %1008 = vmatprep.subr.bf16.mxu1 %v1024_v0  ;;  %v1027_v3 = vld [vmem:[%s1464_s1 + $0x8] sm:$0xff]   ;;  %v1029_v5 = vld [vmem:[%s1464_s1 + $0x10] sm:$0xff]  }
   0x3   :  { %915 = vmatpush3.bf16.msra.mxu0 %v1025_v1  ;;  %1016 = vmatpush3.bf16.msra.mxu1 %v1025_v1  ;;  %v1030_v6 = vld [vmem:[%s1464_s1 + $0x58] sm:$0xff]   ;;  %v1032_v8 = vld [vmem:[%s1464_s1 + $0x60] sm:$0xff]   ;;  %v1034_v10 = vld [vmem:[%s1464_s1 + $0x68] sm:$0xff]  }
   0x4   :  { %916 = vmatprep.subr.bf16.mxu0 %v1026_v2  ;;  %1009 = vmatprep.subr.bf16.mxu1 %v1026_v2  ;;  %v1031_v7 = vld [vmem:[%s1464_s1 + $0x18] sm:$0xff]   ;;  %v1033_v9 = vld [vmem:[%s1464_s1 + $0x20] sm:$0xff]   ;;  %v1035_v13 = vld [vmem:[%s1464_s1 + $0x28] sm:$0xff]  }
   0x5   :  { %v1042_v11 = vld [vmem:[%s1465_s0 + $0x4] ss:$12 sps:$4 sm:$0xff]   ;;  %v1045_v12 = vld [vmem:[%s1465_s0 + $0x94] ss:$12 sps:$4 sm:$0xff]   ;;  %v1038_v16 = vld [vmem:[%s1464_s1 + $0x78] sm:$0xff]  }
   0x6   :  { %v1036_v14 = vld [vmem:[%s1464_s1 + $0x70] sm:$0xff]   ;;  %371 = vmatprep.mubr.bf16.mxu0 %v1042_v11  ;;  %419 = vmatprep.mubr.bf16.mxu1 %v1045_v12  ;;  %v1039_v17 = vld [vmem:[%s1464_s1 + $0x38] sm:$0xff]   ;;  %v1040_v18 = vld [vmem:[%s1465_s0] ss:$12 sps:$4 sm:$0xff]  }
   0x7   :  { %917 = vmatpush3.bf16.msra.mxu0 %v1027_v3  ;;  %1017 = vmatpush3.bf16.msra.mxu1 %v1027_v3  ;;  %v1037_v15 = vld [vmem:[%s1464_s1 + $0x30] sm:$0xff]   ;;  %v1046_v19 = vld [vmem:[%s1464_s1 + $0x80] sm:$0xff]   ;;  %v1047_v21 = vld [vmem:[%s1465_s0 + $0x1c] ss:$12 sps:$4 sm:$0xff]  }
   0x8   :  { %918 = vmatprep.subr.bf16.mxu0 %v1028_v4  ;;  %1010 = vmatprep.subr.bf16.mxu1 %v1028_v4  ;;  %v1043_v20 = vld [vmem:[%s1465_s0 + $0x90] ss:$12 sps:$4 sm:$0xff]   ;;  %v1049_v22 = vld [vmem:[%s1465_s0 + $0xac] ss:$12 sps:$4 sm:$0xff]   ;;  %v1052_v25 = vld [vmem:[%s1465_s0 + $0xa8] ss:$12 sps:$4 sm:$0xff]  }
   0x9   :  { %v1053_v23 = vld [vmem:[%s1464_s1 + $0x88] sm:$0xff]   ;;  %v1051_v24 = vld [vmem:[%s1465_s0 + $0x18] ss:$12 sps:$4 sm:$0xff]   ;;  %v1054_v26 = vld [vmem:[%s1465_s0 + $0x34] ss:$12 sps:$4 sm:$0xff]  }
   0xa   :  { %v1056_v27 = vld [vmem:[%s1465_s0 + $0x8] ss:$12 sps:$4 sm:$0xff]   ;;  %v1057_v28 = vld [vmem:[%s1465_s0 + $0x30] ss:$12 sps:$4 sm:$0xff]   ;;  %v1058_v29 = vld [vmem:[%s1465_s0 + $0x20] ss:$12 sps:$4 sm:$0xff]  }
   0xb   :  { %919 = vmatpush3.bf16.msra.mxu0 %v1029_v5  ;;  %1018 = vmatpush3.bf16.msra.mxu1 %v1029_v5  ;;  %v1059_v30 = vld [vmem:[%s1465_s0 + $0x4c] ss:$12 sps:$4 sm:$0xff]   ;;  %v1062_v32 = vld [vmem:[%s1465_s0 + $0x48] ss:$12 sps:$4 sm:$0xff]   ;;  %v1063_v33 = vld [vmem:[%s1465_s0 + $0x50] ss:$12 sps:$4 sm:$0xff]  }
   0xc   :  { %920 = vmatprep.subr.bf16.mxu0 %v1030_v6  ;;  %1011 = vmatprep.subr.bf16.mxu1 %v1030_v6  ;;  %v1061_v31 = vld [vmem:[%s1465_s0 + $0x38] ss:$12 sps:$4 sm:$0xff]   ;;  %v1066_v35 = vld [vmem:[%s1465_s0 + $0x68] ss:$12 sps:$4 sm:$0xff]   ;;  %v1067_v36 = vld [vmem:[%s1465_s0 + $0x60] ss:$12 sps:$4 sm:$0xff]  }
   0xd   :  { %v1064_v34 = vld [vmem:[%s1465_s0 + $0x64] ss:$12 sps:$4 sm:$0xff]   ;;  %v1068_v37 = vld [vmem:[%s1465_s0 + $0x80] ss:$12 sps:$4 sm:$0xff]   ;;  %v1069_v38 = vld [vmem:[%s1465_s0 + $0x7c] ss:$12 sps:$4 sm:$0xff]  }
   0xe   :  { %v1071_v39 = vld [vmem:[%s1465_s0 + $0x98] ss:$12 sps:$4 sm:$0xff]   ;;  %v1073_v41 = vld [vmem:[%s1465_s0 + $0xb0] ss:$12 sps:$4 sm:$0xff]  }
   0xf   :  { %921 = vmatpush3.bf16.msra.mxu0 %v1031_v7  ;;  %1019 = vmatpush3.bf16.msra.mxu1 %v1031_v7  ;;  %v1072_v40 = vld [vmem:[%s1465_s0 + $0x78] ss:$12 sps:$4 sm:$0xff]  }
  0x10   :  { %922 = vmatprep.subr.bf16.mxu0 %v1032_v8  ;;  %1012 = vmatprep.subr.bf16.mxu1 %v1032_v8 }
  0x13   :  { %923 = vmatpush3.bf16.msra.mxu0 %v1033_v9  ;;  %1020 = vmatpush3.bf16.msra.mxu1 %v1033_v9 }
  0x14   :  { %924 = vmatprep.subr.bf16.mxu0 %v1034_v10  ;;  %1013 = vmatprep.subr.bf16.mxu1 %v1034_v10 }
  0x17   :  { %925 = vmatpush3.bf16.msra.mxu0 %v1035_v13  ;;  %1021 = vmatpush3.bf16.msra.mxu1 %v1035_v13 }
  0x18   :  { %926 = vmatprep.subr.bf16.mxu0 %v1036_v14  ;;  %1014 = vmatprep.subr.bf16.mxu1 %v1036_v14 }
  0x1b   :  { %927 = vmatpush3.bf16.msra.mxu0 %v1037_v15  ;;  %1022 = vmatpush3.bf16.msra.mxu1 %v1037_v15 }
  0x1c   :  { %928 = vmatprep.subr.bf16.mxu0 %v1038_v16  ;;  %1015 = vmatprep.subr.bf16.mxu1 %v1038_v16 }
  0x1f   :  { %929 = vmatpush3.bf16.msra.mxu0 %v1039_v17  ;;  %1023 = vmatpush3.bf16.msra.mxu1 %v1039_v17 }
  0x20   :  { %988 = vmatprep.subr.bf16.mxu1 %v1046_v19 }
  0x22   :  { %372 = vmatmul.mubr.bf16.vlgmr.msra.gmra.mrb[0].mxu0 %v1040_v18  ;;  %420 = vmatmul.mubr.bf16.vlgmr.msra.gmra.mrb[0].mxu1 %v1043_v20 }
  0x23   :  { %989 = vmatpush3.bf16.msra.mxu1 %v1046_v19  ;;  %379 = vmatprep.mubr.bf16.mxu0 %v1047_v21 }
  0x24   :  { %427 = vmatprep.mubr.bf16.mxu1 %v1049_v22  ;;  %990 = vmatprep.subr.bf16.mxu1 %v1053_v23 }
  0x27   :  { %991 = vmatpush3.bf16.msra.mxu1 %v1053_v23 }
  0x2a   :  { %380 = vmatmul.mubr.bf16.gmra.mrb[4].mxu0 %v1051_v24  ;;  %428 = vmatmul.mubr.bf16.gmra.mrb[4].mxu1 %v1052_v25 }
  0x2b   :  { %387 = vmatprep.mubr.bf16.mxu0 %v1054_v26  ;;  %992 = vmatprep.mubr.msk.bf16.mxu1 %vm314_vm0, %v1056_v27 }
  0x32   :  { %388 = vmatmul.mubr.bf16.gmra.mrb[8].mxu0 %v1057_v28  ;;  %993 = vmatmul.mubr.msk.bf16.vlgmr.msra.gmra.mrb[8].mxu1 %vm314_vm0, %v1058_v29 }
  0x33   :  { %395 = vmatprep.mubr.bf16.mxu0 %v1059_v30  ;;  %996 = vmatprep.mubr.msk.bf16.mxu1 %vm314_vm0, %v1061_v31 }
  0x3a   :  { %396 = vmatmul.mubr.bf16.gmra.mrb[12].mxu0 %v1062_v32  ;;  %997 = vmatmul.mubr.msk.bf16.gmra.mrb[12].mxu1 %vm314_vm0, %v1063_v33 }
  0x3b   :  { %403 = vmatprep.mubr.bf16.mxu0 %v1064_v34  ;;  %1000 = vmatprep.mubr.msk.bf16.mxu1 %vm314_vm0, %v1066_v35 }
  0x42   :  { %404 = vmatmul.mubr.bf16.gmra.mrb[16].mxu0 %v1067_v36  ;;  %1001 = vmatmul.mubr.msk.bf16.gmra.mrb[16].mxu1 %vm314_vm0, %v1068_v37 }
  0x43   :  { %411 = vmatprep.mubr.bf16.mxu0 %v1069_v38  ;;  %1004 = vmatprep.mubr.msk.bf16.mxu1 %vm314_vm0, %v1071_v39 }
  0x4a   :  { %412 = vmatmul.mubr.bf16.gmra.mrb[20].mxu0 %v1072_v40  ;;  %1005 = vmatmul.mubr.msk.bf16.gmra.mrb[20].mxu1 %vm314_vm0, %v1073_v41 }
  0xf5   :  { %v930_v42 = vpop.f32.mrb[0].mxu0  ;;  %v966_v43 = vpop.f32.mrb[0].mxu1 }
  0xf6   :  { %v931_v44 = vpop.f32.mrb[1].mxu0  ;;  %v967_v45 = vpop.f32.mrb[1].mxu1 }
  0xf7   :  { %v932_v46 = vadd.f32 %v931_v44, %v930_v42  ;;  %v933_v47 = vpop.f32.mrb[2].mxu0  ;;  %v1235_v48 = vadd.f32 %v967_v45, %v966_v43  ;;  %v969_v49 = vpop.f32.mrb[2].mxu1 }
  0xf8   :  { %v934_v50 = vpop.f32.mrb[3].mxu0  ;;  %v970_v51 = vpop.f32.mrb[3].mxu1 }
  0xf9   :  { %v935_v52 = vadd.f32 %v934_v50, %v933_v47  ;;  %v1237_v53 = vadd.f32 %v970_v51, %v969_v49 }
  0xfd   :  { %v936_v54 = vpop.f32.mrb[4].mxu0  ;;  %v972_v55 = vpop.f32.mrb[4].mxu1 }
  0xfe   :  { %v937_v56 = vpop.f32.mrb[5].mxu0  ;;  %v973_v57 = vpop.f32.mrb[5].mxu1 }
  0xff   :  { %v938_v58 = vadd.f32 %v937_v56, %v936_v54  ;;  %v939_v59 = vpop.f32.mrb[6].mxu0  ;;  %v1239_v60 = vadd.f32 %v973_v57, %v972_v55  ;;  %v975_v61 = vpop.f32.mrb[6].mxu1 }
 0x100   :  { %v940_v62 = vpop.f32.mrb[7].mxu0  ;;  %v976_v63 = vpop.f32.mrb[7].mxu1 }
 0x101   :  { %v941_v0 = vadd.f32 %v940_v62, %v939_v59  ;;  %v1241_v1 = vadd.f32 %v976_v63, %v975_v61 }
 0x105   :  { %v942_v2 = vpop.f32.mrb[8].mxu0  ;;  %v994_v3 = vpop.f32.mrb[8].mxu1 }
 0x106   :  { %v479_v4 = vadd.f32 %v994_v3, %v938_v58  ;;  %v943_v5 = vpop.f32.mrb[9].mxu0  ;;  %v470_v6 = vpop.f32.mrb[9].mxu1 }
 0x107   :  { %v944_v7 = vadd.f32 %v943_v5, %v942_v2  ;;  %v471_v8 = vadd.f32 %v932_v46, %v470_v6  ;;  %v945_v9 = vpop.f32.mrb[10].mxu0  ;;  %v995_v10 = vpop.f32.mrb[10].mxu1 }
 0x108   :  { %538 = vst.msk [vmem:[#allocation2 + $0x10] sm:$0xff] %vm535_vm1, %v479_v4  ;;  %v482_v11 = vadd.f32 %v995_v10, %v941_v0  ;;  %v946_v12 = vpop.f32.mrb[11].mxu0  ;;  %v473_v13 = vpop.f32.mrb[11].mxu1 }
 0x109   :  { %536 = vst.msk [vmem:[#allocation2] sm:$0xff] %vm535_vm1, %v471_v8  ;;  %v947_v14 = vadd.f32 %v946_v12, %v945_v9  ;;  %v474_v15 = vadd.f32 %v935_v52, %v473_v13 }
 0x10a   :  { %539 = vst.msk [vmem:[#allocation2 + $0x18] sm:$0xff] %vm535_vm1, %v482_v11 }
 0x10b   :  { %537 = vst.msk [vmem:[#allocation2 + $0x8] sm:$0xff] %vm535_vm1, %v474_v15 }
 0x10d   :  { %v948_v16 = vpop.f32.mrb[12].mxu0  ;;  %v998_v17 = vpop.f32.mrb[12].mxu1 }
 0x10e   :  { %v949_v18 = vpop.f32.mrb[13].mxu0  ;;  %v486_v19 = vpop.f32.mrb[13].mxu1 }
 0x10f   :  { %v950_v20 = vadd.f32 %v949_v18, %v948_v16  ;;  %v487_v21 = vadd.f32 %v944_v7, %v486_v19  ;;  %v951_v22 = vpop.f32.mrb[14].mxu0  ;;  %v999_v23 = vpop.f32.mrb[14].mxu1  ;;  %v1250_v30 = vld [vmem:[#allocation2 + $0x10] sm:$0xff] }
 0x110   :  { %v1247_v24 = vld [vmem:[#allocation2] sm:$0xff]  ;;  %v952_v25 = vpop.f32.mrb[15].mxu0  ;;  %v489_v26 = vpop.f32.mrb[15].mxu1  ;;  %v575_v37 = vsel %vm535_vm1, %v1250_v30, 0.0 }
 0x111   :  { %v495_v27 = vadd.f32 %v998_v17, %v950_v20  ;;  %540 = vst.msk [vmem:[#allocation2 + $0x20] sm:$0xff] %vm535_vm1, %v487_v21  ;;  %v953_v28 = vadd.f32 %v952_v25, %v951_v22  ;;  %v490_v29 = vadd.f32 %v947_v14, %v489_v26  ;;  %v572_v32 = vsel %vm535_vm1, %v1247_v24, 0.0  ;;  %v1260_v35 = vld [vmem:[#allocation2 + $0x18] sm:$0xff] }
 0x112   :  { %v1252_v31 = vld [vmem:[#allocation2 + $0x8] sm:$0xff]  ;;  %v577_v43 = vsel %vm535_vm1, %v1260_v35, 0.0 }
 0x113   :  { %v573_v33 = vsel %vm535_vm1, %v1252_v31, 0.0  ;;  %542 = vst.msk [vmem:[#allocation2 + $0x30] sm:$0xff] %vm535_vm1, %v495_v27  ;;  %v498_v34 = vadd.f32 %v999_v23, %v953_v28  ;;  %541 = vst.msk [vmem:[#allocation2 + $0x28] sm:$0xff] %vm535_vm1, %v490_v29 }
 0x114   :  { %v574_v36 = vadd.f32 %v573_v33, %v572_v32 }
 0x115   :  { %543 = vst.msk [vmem:[#allocation2 + $0x38] sm:$0xff] %vm535_vm1, %v498_v34  ;;  %v954_v38 = vpop.f32.mrb[16].mxu0  ;;  %v1002_v39 = vpop.f32.mrb[16].mxu1 }
 0x116   :  { %v576_v40 = vadd.f32 %v575_v37, %v574_v36  ;;  %v955_v41 = vpop.f32.mrb[17].mxu0  ;;  %v502_v42 = vpop.f32.mrb[17].mxu1 }
 0x117   :  { %v956_v44 = vadd.f32 %v955_v41, %v954_v38  ;;  %v957_v45 = vpop.f32.mrb[18].mxu0  ;;  %v1003_v46 = vpop.f32.mrb[18].mxu1 }
 0x118   :  { %v1267_v47 = vld [vmem:[#allocation2 + $0x20] sm:$0xff]  ;;  %v578_v49 = vadd.f32 %v577_v43, %v576_v40  ;;  %v958_v50 = vpop.f32.mrb[19].mxu0  ;;  %v505_v51 = vpop.f32.mrb[19].mxu1 }
 0x119   :  { %v579_v52 = vsel %vm535_vm1, %v1267_v47, 0.0  ;;  %v959_v54 = vadd.f32 %v958_v50, %v957_v45  ;;  %v503_v55 = vadd.f32 %v956_v44, %v502_v42 }
 0x11a   :  { %v580_v56 = vadd.f32 %v579_v52, %v578_v49  ;;  %v1271_v57 = vld [vmem:[#allocation2 + $0x28] sm:$0xff]  ;;  %v1276_v61 = vld [vmem:[#allocation2 + $0x30] sm:$0xff] }
 0x11b   :  { %v581_v58 = vsel %vm535_vm1, %v1271_v57, 0.0  ;;  %544 = vst.msk [vmem:[#allocation2 + $0x40] sm:$0xff] %vm535_vm1, %v503_v55  ;;  %v506_v59 = vadd.f32 %v959_v54, %v505_v51  ;;  %v583_v5 = vsel %vm535_vm1, %v1276_v61, 0.0 }
 0x11c   :  { %v582_v62 = vadd.f32 %v581_v58, %v580_v56  ;;  %v1283_v10 = vld [vmem:[#allocation2 + $0x38] sm:$0xff] }
 0x11d   :  { %545 = vst.msk [vmem:[#allocation2 + $0x48] sm:$0xff] %vm535_vm1, %v506_v59  ;;  %v960_v63 = vpop.f32.mrb[20].mxu0  ;;  %v1006_v0 = vpop.f32.mrb[20].mxu1 }
 0x11e   :  { %v527_v2 = vadd.f32 %v1006_v0, %v1239_v60  ;;  %v961_v3 = vpop.f32.mrb[21].mxu0  ;;  %v518_v4 = vpop.f32.mrb[21].mxu1  ;;  %v584_v11 = vadd.f32 %v583_v5, %v582_v62 }
 0x11f   :  { %v962_v6 = vadd.f32 %v961_v3, %v960_v63  ;;  %v519_v7 = vadd.f32 %v1235_v48, %v518_v4  ;;  %v963_v8 = vpop.f32.mrb[22].mxu0  ;;  %v1007_v9 = vpop.f32.mrb[22].mxu1  ;;  %v585_v48 = vsel %vm535_vm1, %v1283_v10, 0.0 }
 0x120   :  { %550 = vst.msk [vmem:[#allocation2 + $0x70] sm:$0xff] %vm535_vm1, %v527_v2  ;;  %v530_v12 = vadd.f32 %v1007_v9, %v1241_v1  ;;  %v964_v13 = vpop.f32.mrb[23].mxu0  ;;  %v521_v14 = vpop.f32.mrb[23].mxu1  ;;  %v586_v19 = vadd.f32 %v585_v48, %v584_v11 }
 0x121   :  { %v511_v60 = vadd.f32 %v1002_v39, %v962_v6  ;;  %548 = vst.msk [vmem:[#allocation2 + $0x60] sm:$0xff] %vm535_vm1, %v519_v7  ;;  %v965_v15 = vadd.f32 %v964_v13, %v963_v8  ;;  %v522_v16 = vadd.f32 %v1237_v53, %v521_v14 }
 0x122   :  { %v1289_v17 = vld [vmem:[#allocation2 + $0x40] sm:$0xff]  ;;  %551 = vst.msk [vmem:[#allocation2 + $0x78] sm:$0xff] %vm535_vm1, %v530_v12 }
 0x123   :  { %v587_v18 = vsel %vm535_vm1, %v1289_v17, 0.0  ;;  %546 = vst.msk [vmem:[#allocation2 + $0x50] sm:$0xff] %vm535_vm1, %v511_v60  ;;  %v514_v1 = vadd.f32 %v1003_v46, %v965_v15  ;;  %549 = vst.msk [vmem:[#allocation2 + $0x68] sm:$0xff] %vm535_vm1, %v522_v16 }
 0x124   :  { %v1298_v20 = vld [vmem:[#allocation2 + $0x48] sm:$0xff]  ;;  %v588_v53 = vadd.f32 %v587_v18, %v586_v19 }
 0x125   :  { %547 = vst.msk [vmem:[#allocation2 + $0x58] sm:$0xff] %vm535_vm1, %v514_v1  ;;  %v589_v21 = vsel %vm535_vm1, %v1298_v20, 0.0 }
 0x126   :  { %v590_v22 = vadd.f32 %v589_v21, %v588_v53 }
 0x127   :  { %v1317_v36 = vld [vmem:[#allocation2 + $0x70] sm:$0xff] }
 0x128   :  { %v1307_v27 = vld [vmem:[#allocation2 + $0x60] sm:$0xff]  ;;  %v599_v41 = vsel %vm535_vm1, %v1317_v36, 0.0 }
 0x129   :  { %v595_v34 = vsel %vm535_vm1, %v1307_v27, 0.0  ;;  %v1321_v39 = vld [vmem:[#allocation2 + $0x78] sm:$0xff] }
 0x12a   :  { %v1303_v23 = vld [vmem:[#allocation2 + $0x50] sm:$0xff]  ;;  %v1313_v33 = vld [vmem:[#allocation2 + $0x68] sm:$0xff]  ;;  %v601_v43 = vsel %vm535_vm1, %v1321_v39, 0.0 }
 0x12b   :  { %v591_v25 = vsel %vm535_vm1, %v1303_v23, 0.0  ;;  %v597_v38 = vsel %vm535_vm1, %v1313_v33, 0.0 }
 0x12c   :  { %v592_v26 = vadd.f32 %v591_v25, %v590_v22  ;;  %v1309_v28 = vld [vmem:[#allocation2 + $0x58] sm:$0xff] }
 0x12d   :  { %v593_v29 = vsel %vm535_vm1, %v1309_v28, 0.0 }
 0x12e   :  { %v594_v32 = vadd.f32 %v593_v29, %v592_v26 }
 0x130   :  { %v596_v37 = vadd.f32 %v595_v34, %v594_v32 }
 0x132   :  { %v598_v40 = vadd.f32 %v597_v38, %v596_v37 }
 0x134   :  { %v600_v42 = vadd.f32 %v599_v41, %v598_v40 }
 0x136   :  { %v602_v44 = vadd.f32 %v601_v43, %v600_v42 }
 0x138   :  { %v603_v45 = vrot.slane %v602_v44, 4 }
 0x13a   :  { %v604_v46 = vadd.f32 %v603_v45, %v602_v44 }
 0x13c   :  { %v605_v49 = vrot.slane %v604_v46, 2 }
 0x13e   :  { %v606_v50 = vadd.f32 %v605_v49, %v604_v46 }
 0x140   :  { %v607_v51 = vrot.slane %v606_v50, 1 }
 0x142   :  { %v608_v52 = vadd.f32 %v607_v51, %v606_v50 }
 0x144   :  { %v1327_v54 = vmul.f32 0.0078125, %v608_v52 }
 0x146   :  { %v610_v55 = vsub.f32 %v1247_v24, %v1327_v54  ;;  %v611_v56 = vsub.f32 %v1252_v31, %v1327_v54  ;;  %v612_v58 = vsub.f32 %v1250_v30, %v1327_v54  ;;  %v613_v59 = vsub.f32 %v1260_v35, %v1327_v54 }
 0x147   :  { %v614_v0 = vsub.f32 %v1267_v47, %v1327_v54  ;;  %v615_v3 = vsub.f32 %v1271_v57, %v1327_v54  ;;  %v616_v8 = vsub.f32 %v1276_v61, %v1327_v54  ;;  %v617_v13 = vsub.f32 %v1283_v10, %v1327_v54 }
 0x148   :  { %v626_v62 = vmul.f32 %v610_v55, %v610_v55  ;;  %v627_v63 = vmul.f32 %v611_v56, %v611_v56  ;;  %v628_v2 = vmul.f32 %v612_v58, %v612_v58  ;;  %v629_v4 = vmul.f32 %v613_v59, %v613_v59 }
 0x149   :  { %v630_v9 = vmul.f32 %v614_v0, %v614_v0  ;;  %v631_v14 = vmul.f32 %v615_v3, %v615_v3  ;;  %v618_v16 = vsub.f32 %v1289_v17, %v1327_v54  ;;  %v632_v48 = vmul.f32 %v616_v8, %v616_v8 }
 0x14a   :  { %v642_v5 = vsel %vm535_vm1, %v626_v62, 0.0  ;;  %v643_v6 = vsel %vm535_vm1, %v627_v63, 0.0  ;;  %v645_v11 = vsel %vm535_vm1, %v628_v2, 0.0  ;;  %v647_v60 = vsel %vm535_vm1, %v629_v4, 0.0 }
 0x14b   :  { %v644_v7 = vadd.f32 %v643_v6, %v642_v5  ;;  %v649_v18 = vsel %vm535_vm1, %v630_v9, 0.0  ;;  %v619_v19 = vsub.f32 %v1298_v20, %v1327_v54  ;;  %v633_v53 = vmul.f32 %v617_v13, %v617_v13 }
 0x14c   :  { %v651_v21 = vsel %vm535_vm1, %v631_v14, 0.0  ;;  %v620_v25 = vsub.f32 %v1303_v23, %v1327_v54  ;;  %v634_v26 = vmul.f32 %v618_v16, %v618_v16  ;;  %v653_v29 = vsel %vm535_vm1, %v632_v48, 0.0 }
 0x14d   :  { %v646_v12 = vadd.f32 %v645_v11, %v644_v7  ;;  %v621_v34 = vsub.f32 %v1309_v28, %v1327_v54  ;;  %v635_v37 = vmul.f32 %v619_v19, %v619_v19  ;;  %v655_v38 = vsel %vm535_vm1, %v633_v53, 0.0  ;;  %v680_v53 = vld [vmem:[%s1466_s2] sm:$0x1] }
 0x14e   :  { %v622_v41 = vsub.f32 %v1307_v27, %v1327_v54  ;;  %v636_v42 = vmul.f32 %v620_v25, %v620_v25  ;;  %v657_v43 = vsel %vm535_vm1, %v634_v26, 0.0  ;;  %v623_v45 = vsub.f32 %v1313_v33, %v1327_v54  ;;  %v684_v26 = vld [vmem:[%s1467_s3] sm:$0x1] }
 0x14f   :  { %v648_v15 = vadd.f32 %v647_v60, %v646_v12  ;;  %v637_v46 = vmul.f32 %v621_v34, %v621_v34  ;;  %v659_v49 = vsel %vm535_vm1, %v635_v37, 0.0  ;;  %v624_v51 = vsub.f32 %v1317_v36, %v1327_v54 }
 0x150   :  { %v638_v52 = vmul.f32 %v622_v41, %v622_v41  ;;  %v661_v55 = vsel %vm535_vm1, %v636_v42, 0.0  ;;  %v625_v58 = vsub.f32 %v1321_v39, %v1327_v54  ;;  %v639_v59 = vmul.f32 %v623_v45, %v623_v45 }
 0x151   :  { %v650_v1 = vadd.f32 %v649_v18, %v648_v15  ;;  %v663_v62 = vsel %vm535_vm1, %v637_v46, 0.0  ;;  %v640_v0 = vmul.f32 %v624_v51, %v624_v51 }
 0x152   :  { %v665_v2 = vsel %vm535_vm1, %v638_v52, 0.0  ;;  %v641_v4 = vmul.f32 %v625_v58, %v625_v58  ;;  %v667_v5 = vsel %vm535_vm1, %v639_v59, 0.0 }
 0x153   :  { %v652_v22 = vadd.f32 %v651_v21, %v650_v1  ;;  %v669_v7 = vsel %vm535_vm1, %v640_v0, 0.0  ;;  %v688_v1 = vlaneseq }
 0x154   :  { %v671_v9 = vsel %vm535_vm1, %v641_v4, 0.0 }
 0x155   :  { %v654_v32 = vadd.f32 %v653_v29, %v652_v22  ;;  %v689_v19 = vshrl.u32 %v688_v1, 7 }
 0x157   :  { %v656_v40 = vadd.f32 %v655_v38, %v654_v32  ;;  %v690_v21 = vsub.s32 0, %v689_v19 }
 0x159   :  { %v658_v44 = vadd.f32 %v657_v43, %v656_v40 }
 0x15b   :  { %v660_v50 = vadd.f32 %v659_v49, %v658_v44 }
 0x15d   :  { %v662_v56 = vadd.f32 %v661_v55, %v660_v50 }
 0x15f   :  { %v664_v63 = vadd.f32 %v663_v62, %v662_v56 }
 0x161   :  { %v666_v3 = vadd.f32 %v665_v2, %v664_v63 }
 0x163   :  { %v668_v6 = vadd.f32 %v667_v5, %v666_v3 }
 0x165   :  { %v670_v8 = vadd.f32 %v669_v7, %v668_v6 }
 0x167   :  { %v672_v11 = vadd.f32 %v671_v9, %v670_v8 }
 0x169   :  { %v673_v12 = vrot.slane %v672_v11, 4 }
 0x16b   :  { %v674_v13 = vadd.f32 %v673_v12, %v672_v11 }
 0x16d   :  { %v675_v14 = vrot.slane %v674_v13, 2 }
 0x16f   :  { %v676_v60 = vadd.f32 %v675_v14, %v674_v13 }
 0x171   :  { %v677_v15 = vrot.slane %v676_v60, 1 }
 0x173   :  { %v678_v16 = vadd.f32 %v677_v15, %v676_v60 }
 0x175   :  { %v679_v48 = vmul.f32 0.0078125, %v678_v16 }
 0x177   :  { %v681_v18 = vadd.f32 1e-05, %v679_v48 }
 0x179   :  { %1074 = vrsqrt.f32 %v681_v18 }
 0x183   :  { %v1075_v22 = vpop.eup %1074 }
 0x184   :  { %v683_v25 = vmul.f32 %v1075_v22, %v680_v53 }
 0x186   :  { %v685_v29 = vmul.f32 %v683_v25, %v1327_v54  ;;  %v691_v32 = vrot.slane %v683_v25, %v690_v21 }
 0x188   :  { %v686_v34 = vsub.f32 %v684_v26, %v685_v29  ;;  %v693_v37 = vmul.f32 %v691_v32, %v1247_v24  ;;  %v694_v38 = vmul.f32 %v691_v32, %v1252_v31  ;;  %v695_v40 = vmul.f32 %v691_v32, %v1250_v30 }
 0x189   :  { %v696_v41 = vmul.f32 %v691_v32, %v1260_v35  ;;  %v697_v42 = vmul.f32 %v691_v32, %v1267_v47  ;;  %v698_v43 = vmul.f32 %v691_v32, %v1271_v57  ;;  %v699_v44 = vmul.f32 %v691_v32, %v1276_v61 }
 0x18a   :  { %v700_v45 = vmul.f32 %v691_v32, %v1283_v10  ;;  %v701_v54 = vmul.f32 %v691_v32, %v1289_v17  ;;  %v702_v46 = vmul.f32 %v691_v32, %v1298_v20  ;;  %v703_v24 = vmul.f32 %v691_v32, %v1303_v23 }
 0x18b   :  { %v704_v31 = vmul.f32 %v691_v32, %v1309_v28  ;;  %v713_v49 = vrot.slane %v686_v34, %v690_v21  ;;  %v705_v30 = vmul.f32 %v691_v32, %v1307_v27  ;;  %v706_v35 = vmul.f32 %v691_v32, %v1313_v33 }
 0x18c   :  { %v707_v47 = vmul.f32 %v691_v32, %v1317_v36  ;;  %v708_v57 = vmul.f32 %v691_v32, %v1321_v39 }
 0x18d   :  { %v715_v61 = vadd.f32 %v713_v49, %v693_v37  ;;  %v716_v10 = vadd.f32 %v713_v49, %v694_v38  ;;  %v717_v50 = vadd.f32 %v713_v49, %v695_v40  ;;  %v718_v17 = vadd.f32 %v713_v49, %v696_v41 }
 0x18e   :  { %v719_v51 = vadd.f32 %v713_v49, %v697_v42  ;;  %v720_v20 = vadd.f32 %v713_v49, %v698_v43  ;;  %v721_v52 = vadd.f32 %v713_v49, %v699_v44  ;;  %v722_v23 = vadd.f32 %v713_v49, %v700_v45 }
 0x18f   :  { %v723_v55 = vadd.f32 %v713_v49, %v701_v54  ;;  %v724_v28 = vadd.f32 %v713_v49, %v702_v46  ;;  %v725_v56 = vadd.f32 %v713_v49, %v703_v24  ;;  %v726_v58 = vadd.f32 %v713_v49, %v704_v31 }
 0x190   :  { %v727_v27 = vadd.f32 %v713_v49, %v705_v30  ;;  %v728_v59 = vadd.f32 %v713_v49, %v706_v35  ;;  %v729_v33 = vadd.f32 %v713_v49, %v707_v47  ;;  %v730_v62 = vadd.f32 %v713_v49, %v708_v57 }
 0x191   :  { %v731_v36 = vmax.f32 %v715_v61, 0.0  ;;  %v732_v63 = vmax.f32 %v716_v10, 0.0  ;;  %v733_v39 = vmax.f32 %v717_v50, 0.0  ;;  %v734_v0 = vmax.f32 %v718_v17, 0.0 }
 0x192   :  { %v735_v2 = vmax.f32 %v719_v51, 0.0  ;;  %v736_v3 = vmax.f32 %v720_v20, 0.0  ;;  %v737_v4 = vmax.f32 %v721_v52, 0.0  ;;  %v738_v5 = vmax.f32 %v722_v23, 0.0 }
 0x193   :  { %v739_v6 = vmax.f32 %v723_v55, 0.0  ;;  %v740_v7 = vmax.f32 %v724_v28, 0.0  ;;  %v741_v8 = vmax.f32 %v725_v56, 0.0  ;;  %v742_v9 = vmax.f32 %v726_v58, 0.0 }
 0x194   :  { %v743_v11 = vmax.f32 %v727_v27, 0.0  ;;  %v744_v12 = vmax.f32 %v728_v59, 0.0  ;;  %v745_v13 = vmax.f32 %v729_v33, 0.0  ;;  %v746_v14 = vmax.f32 %v730_v62, 0.0 }
 0x195   :  { %v898_v60 = vpack.c.bf16 %v731_v36, %v731_v36  ;;  %v899_v15 = vpack.c.bf16 %v732_v63, %v732_v63  ;;  %v900_v16 = vpack.c.bf16 %v733_v39, %v733_v39  ;;  %v901_v48 = vpack.c.bf16 %v734_v0, %v734_v0 }
 0x196   :  { %v902_v18 = vpack.c.bf16 %v735_v2, %v735_v2  ;;  %v903_v1 = vpack.c.bf16 %v736_v3, %v736_v3  ;;  %v904_v19 = vpack.c.bf16 %v737_v4, %v737_v4  ;;  %v905_v53 = vpack.c.bf16 %v738_v5, %v738_v5 }
 0x197   :  { %v906_v21 = vpack.c.bf16 %v739_v6, %v739_v6  ;;  %v907_v22 = vpack.c.bf16 %v740_v7, %v740_v7  ;;  %v908_v25 = vpack.c.bf16 %v741_v8, %v741_v8  ;;  %v909_v26 = vpack.c.bf16 %v742_v9, %v742_v9  ;;  %812 = vst.msk [vmem:[%s1468_s4] sm:$0xf] %vm811_vm2, %v898_v60 }
 0x198   :  { %813 = vst.msk [vmem:[%s1468_s4 + $0x4] sm:$0xf] %vm811_vm2, %v899_v15  ;;  %814 = vst.msk [vmem:[%s1468_s4 + $0x8] sm:$0xf] %vm811_vm2, %v900_v16  ;;  %v910_v29 = vpack.c.bf16 %v743_v11, %v743_v11  ;;  %v911_v32 = vpack.c.bf16 %v744_v12, %v744_v12  ;;  %v912_v34 = vpack.c.bf16 %v745_v13, %v745_v13 }
 0x199   :  { %815 = vst.msk [vmem:[%s1468_s4 + $0xc] sm:$0xf] %vm811_vm2, %v901_v48  ;;  %v913_v37 = vpack.c.bf16 %v746_v14, %v746_v14  ;;  %816 = vst.msk [vmem:[%s1468_s4 + $0x10] sm:$0xf] %vm811_vm2, %v902_v18 }
 0x19a   :  { %817 = vst.msk [vmem:[%s1468_s4 + $0x14] sm:$0xf] %vm811_vm2, %v903_v1  ;;  %818 = vst.msk [vmem:[%s1468_s4 + $0x18] sm:$0xf] %vm811_vm2, %v904_v19 }
 0x19b   :  { %819 = vst.msk [vmem:[%s1468_s4 + $0x1c] sm:$0xf] %vm811_vm2, %v905_v53  ;;  %820 = vst.msk [vmem:[%s1468_s4 + $0x20] sm:$0xf] %vm811_vm2, %v906_v21 }
 0x19c   :  { %821 = vst.msk [vmem:[%s1468_s4 + $0x24] sm:$0xf] %vm811_vm2, %v907_v22  ;;  %822 = vst.msk [vmem:[%s1468_s4 + $0x28] sm:$0xf] %vm811_vm2, %v908_v25 }
 0x19d   :  { %823 = vst.msk [vmem:[%s1468_s4 + $0x2c] sm:$0xf] %vm811_vm2, %v909_v26  ;;  %824 = vst.msk [vmem:[%s1468_s4 + $0x30] sm:$0xf] %vm811_vm2, %v910_v29 }
 0x19e   :  { %825 = vst.msk [vmem:[%s1468_s4 + $0x34] sm:$0xf] %vm811_vm2, %v911_v32  ;;  %826 = vst.msk [vmem:[%s1468_s4 + $0x38] sm:$0xf] %vm811_vm2, %v912_v34 }
 0x19f   :  { %827 = vst.msk [vmem:[%s1468_s4 + $0x3c] sm:$0xf] %vm811_vm2, %v913_v37 }

// kernel: encoder_forward.7
= control target key start
LH: loop header
LB: loop body
LE: loop exit
PB: predicated region body
PF: predicated region fallthrough
CT: control target
= control target key end

     0   :  { %vm368_vm0 = vcmask 523264   ;;  %s987_s1 = inlined_call_operand.vmem [shape: bf16[576,128], index: 1, kind: input, shape index: {}]   ;;  %s988_s0 = inlined_call_operand.vmem [shape: bf16[32,576], index: 0, kind: input, shape index: {}]   ;;  %s989_s2 = inlined_call_operand.vmem [shape: f32[1,128], index: 2, kind: input, shape index: {}]   ;;  %s990_s3 = inlined_call_operand.vmem [shape: f32[1,128], index: 3, kind: input, shape index: {}]   ;;  %s991_s4 = inlined_call_operand.vmem [shape: bf16[32,128], index: 4, kind: output, shape index: {}]  }
   0x1   :  { %v760_v0 = vld [vmem:[%s987_s1 + $0x40] sm:$0xff]   ;;  %v764_v4 = vld [vmem:[%s987_s1 + $0x48] sm:$0xff]   ;;  %v768_v8 = vld [vmem:[%s987_s1 + $0x50] sm:$0xff]  }
   0x2   :  { %v761_v1 = vld [vmem:[%s987_s1 + $0xc0] sm:$0xff]   ;;  %686 = vmatprep.subr.bf16.mxu0 %v760_v0  ;;  %v765_v5 = vld [vmem:[%s987_s1 + $0xc8] sm:$0xff]   ;;  %v769_v9 = vld [vmem:[%s987_s1 + $0xd0] sm:$0xff]  }
   0x3   :  { %v762_v2 = vld [vmem:[%s987_s1] sm:$0xff]   ;;  %714 = vmatprep.subr.bf16.mxu1 %v761_v1  ;;  %v766_v6 = vld [vmem:[%s987_s1 + $0x8] sm:$0xff]   ;;  %v770_v10 = vld [vmem:[%s987_s1 + $0x10] sm:$0xff]  }
   0x4   :  { %v763_v3 = vld [vmem:[%s987_s1 + $0x80] sm:$0xff]   ;;  %687 = vmatpush3.bf16.msra.mxu0 %v762_v2  ;;  %v767_v7 = vld [vmem:[%s987_s1 + $0x88] sm:$0xff]   ;;  %v771_v11 = vld [vmem:[%s987_s1 + $0x90] sm:$0xff]  }
   0x5   :  { %715 = vmatpush3.bf16.msra.mxu1 %v763_v3  ;;  %688 = vmatprep.subr.bf16.mxu0 %v764_v4  ;;  %v772_v12 = vld [vmem:[%s987_s1 + $0x58] sm:$0xff]   ;;  %v776_v16 = vld [vmem:[%s987_s1 + $0x60] sm:$0xff]   ;;  %v780_v20 = vld [vmem:[%s987_s1 + $0x68] sm:$0xff]  }
   0x6   :  { %716 = vmatprep.subr.bf16.mxu1 %v765_v5  ;;  %v773_v13 = vld [vmem:[%s987_s1 + $0xd8] sm:$0xff]   ;;  %v777_v17 = vld [vmem:[%s987_s1 + $0xe0] sm:$0xff]   ;;  %v781_v21 = vld [vmem:[%s987_s1 + $0xe8] sm:$0xff]  }
   0x7   :  { %v774_v14 = vld [vmem:[%s987_s1 + $0x18] sm:$0xff]   ;;  %v778_v18 = vld [vmem:[%s987_s1 + $0x20] sm:$0xff]   ;;  %v782_v22 = vld [vmem:[%s987_s1 + $0x28] sm:$0xff]  }
   0x8   :  { %689 = vmatpush3.bf16.msra.mxu0 %v766_v6  ;;  %v775_v15 = vld [vmem:[%s987_s1 + $0x98] sm:$0xff]   ;;  %v779_v19 = vld [vmem:[%s987_s1 + $0xa0] sm:$0xff]   ;;  %v783_v23 = vld [vmem:[%s987_s1 + $0xa8] sm:$0xff]  }
   0x9   :  { %717 = vmatpush3.bf16.msra.mxu1 %v767_v7  ;;  %690 = vmatprep.subr.bf16.mxu0 %v768_v8  ;;  %v784_v24 = vld [vmem:[%s987_s1 + $0x70] sm:$0xff]   ;;  %v788_v28 = vld [vmem:[%s987_s1 + $0x78] sm:$0xff]   ;;  %v797_v35 = vld [vmem:[%s988_s0 + $0xc] ss:$20 sps:$4 sm:$0xff]  }
   0xa   :  { %718 = vmatprep.subr.bf16.mxu1 %v769_v9  ;;  %v785_v25 = vld [vmem:[%s987_s1 + $0xf0] sm:$0xff]   ;;  %v789_v29 = vld [vmem:[%s987_s1 + $0xf8] sm:$0xff]   ;;  %v798_v36 = vld [vmem:[%s987_s1 + $0x100] sm:$0xff]   ;;  %456 = vmatprep.mubr.bf16.mxu1 %v797_v35 }
   0xb   :  { %v786_v26 = vld [vmem:[%s987_s1 + $0x30] sm:$0xff]   ;;  %v790_v30 = vld [vmem:[%s987_s1 + $0x38] sm:$0xff]   ;;  %v799_v37 = vld [vmem:[%s987_s1 + $0x108] sm:$0xff]  }
   0xc   :  { %691 = vmatpush3.bf16.msra.mxu0 %v770_v10  ;;  %v787_v27 = vld [vmem:[%s987_s1 + $0xb0] sm:$0xff]   ;;  %v791_v31 = vld [vmem:[%s987_s1 + $0xb8] sm:$0xff]   ;;  %v800_v38 = vld [vmem:[%s988_s0 + $0x2c] ss:$20 sps:$4 sm:$0xff]  }
   0xd   :  { %719 = vmatpush3.bf16.msra.mxu1 %v771_v11  ;;  %692 = vmatprep.subr.bf16.mxu0 %v772_v12  ;;  %v792_v32 = vld [vmem:[%s988_s0] ss:$20 sps:$4 sm:$0xff]   ;;  %v794_v33 = vld [vmem:[%s988_s0 + $0x4] ss:$20 sps:$4 sm:$0xff]   ;;  %v795_v34 = vld [vmem:[%s988_s0 + $0x8] ss:$20 sps:$4 sm:$0xff]  }
   0xe   :  { %720 = vmatprep.subr.bf16.mxu1 %v773_v13  ;;  %407 = vmatprep.mubr.bf16.mxu0 %v794_v33  ;;  %v802_v39 = vld [vmem:[%s988_s0 + $0x34] ss:$20 sps:$4 sm:$0xff]   ;;  %v805_v42 = vld [vmem:[%s988_s0 + $0x30] ss:$20 sps:$4 sm:$0xff]   ;;  %v807_v44 = vld [vmem:[%s987_s1 + $0x118] sm:$0xff]  }
   0xf   :  { %v804_v40 = vld [vmem:[%s988_s0 + $0x28] ss:$20 sps:$4 sm:$0xff]   ;;  %v806_v41 = vld [vmem:[%s987_s1 + $0x110] sm:$0xff]   ;;  %v809_v45 = vld [vmem:[%s988_s0 + $0x38] ss:$20 sps:$4 sm:$0xff]  }
  0x10   :  { %693 = vmatpush3.bf16.msra.mxu0 %v774_v14  ;;  %v808_v43 = vld [vmem:[%s988_s0 + $0x10] ss:$20 sps:$4 sm:$0xff]  }
  0x11   :  { %721 = vmatpush3.bf16.msra.mxu1 %v775_v15  ;;  %694 = vmatprep.subr.bf16.mxu0 %v776_v16 }
  0x12   :  { %722 = vmatprep.subr.bf16.mxu1 %v777_v17 }
  0x14   :  { %695 = vmatpush3.bf16.msra.mxu0 %v778_v18 }
  0x15   :  { %723 = vmatpush3.bf16.msra.mxu1 %v779_v19  ;;  %696 = vmatprep.subr.bf16.mxu0 %v780_v20 }
  0x16   :  { %724 = vmatprep.subr.bf16.mxu1 %v781_v21 }
  0x18   :  { %697 = vmatpush3.bf16.msra.mxu0 %v782_v22 }
  0x19   :  { %725 = vmatpush3.bf16.msra.mxu1 %v783_v23  ;;  %698 = vmatprep.subr.bf16.mxu0 %v784_v24 }
  0x1a   :  { %726 = vmatprep.subr.bf16.mxu1 %v785_v25 }
  0x1c   :  { %699 = vmatpush3.bf16.msra.mxu0 %v786_v26 }
  0x1d   :  { %727 = vmatpush3.bf16.msra.mxu1 %v787_v27  ;;  %700 = vmatprep.subr.bf16.mxu0 %v788_v28 }
  0x1e   :  { %728 = vmatprep.subr.bf16.mxu1 %v789_v29 }
  0x20   :  { %701 = vmatpush3.bf16.msra.mxu0 %v790_v30 }
  0x21   :  { %729 = vmatpush3.bf16.msra.mxu1 %v791_v31  ;;  %748 = vmatprep.subr.bf16.mxu0 %v798_v36 }
  0x23   :  { %408 = vmatmul.mubr.bf16.vlgmr.msra.gmra.mrb[0].mxu0 %v792_v32 }
  0x24   :  { %457 = vmatmul.mubr.bf16.vlgmr.msra.gmra.mrb[0].mxu1 %v795_v34  ;;  %749 = vmatpush3.bf16.msra.mxu0 %v798_v36 }
  0x25   :  { %750 = vmatprep.subr.bf16.mxu0 %v799_v37  ;;  %415 = vmatprep.mubr.bf16.mxu0 %v800_v38 }
  0x26   :  { %464 = vmatprep.mubr.bf16.mxu1 %v802_v39 }
  0x28   :  { %751 = vmatpush3.bf16.msra.mxu0 %v799_v37 }
  0x29   :  { %752 = vmatprep.subr.bf16.mxu0 %v806_v41 }
  0x2b   :  { %416 = vmatmul.mubr.bf16.gmra.mrb[4].mxu0 %v804_v40 }
  0x2c   :  { %465 = vmatmul.mubr.bf16.gmra.mrb[4].mxu1 %v805_v42  ;;  %756 = vmatprep.mubr.msk.bf16.mxu0 %vm368_vm0, %v808_v43 }
  0x2d   :  { %753 = vmatpush3.bf16.msra.mxu0 %v806_v41 }
  0x2e   :  { %754 = vmatprep.subr.bf16.mxu0 %v807_v44 }
  0x31   :  { %755 = vmatpush3.bf16.msra.mxu0 %v807_v44 }
  0x34   :  { %757 = vmatmul.mubr.msk.bf16.vlgmr.msra.gmra.mrb[8].mxu0 %vm368_vm0, %v809_v45 }
  0xf6   :  { %v702_v46 = vpop.f32.mrb[0].mxu0 }
  0xf7   :  { %v730_v47 = vpop.f32.mrb[0].mxu1  ;;  %v703_v48 = vpop.f32.mrb[1].mxu0 }
  0xf8   :  { %v704_v49 = vadd.f32 %v703_v48, %v702_v46  ;;  %v731_v50 = vpop.f32.mrb[1].mxu1  ;;  %v705_v51 = vpop.f32.mrb[2].mxu0 }
  0xf9   :  { %v732_v52 = vadd.f32 %v731_v50, %v730_v47  ;;  %v733_v53 = vpop.f32.mrb[2].mxu1  ;;  %v706_v54 = vpop.f32.mrb[3].mxu0  ;;  %v572_v47 = vlaneseq }
  0xfa   :  { %v707_v55 = vadd.f32 %v706_v54, %v705_v51  ;;  %v734_v56 = vpop.f32.mrb[3].mxu1 }
  0xfb   :  { %v735_v57 = vadd.f32 %v734_v56, %v733_v53  ;;  %v459_v58 = vadd.f32 %v732_v52, %v704_v49  ;;  %v573_v48 = vshrl.u32 %v572_v47, 7  ;;  %v564_v49 = vld [vmem:[%s989_s2] sm:$0x1] }
  0xfc   :  { %v568_v53 = vld [vmem:[%s990_s3] sm:$0x1] }
  0xfd   :  { %v462_v59 = vadd.f32 %v735_v57, %v707_v55  ;;  %v574_v50 = vsub.s32 0, %v573_v48 }
  0xfe   :  { %v708_v60 = vpop.f32.mrb[4].mxu0 }
  0xff   :  { %v736_v61 = vpop.f32.mrb[4].mxu1  ;;  %v709_v62 = vpop.f32.mrb[5].mxu0 }
 0x100   :  { %v710_v63 = vadd.f32 %v709_v62, %v708_v60  ;;  %v737_v0 = vpop.f32.mrb[5].mxu1  ;;  %v711_v1 = vpop.f32.mrb[6].mxu0 }
 0x101   :  { %v738_v2 = vadd.f32 %v737_v0, %v736_v61  ;;  %v739_v3 = vpop.f32.mrb[6].mxu1  ;;  %v712_v4 = vpop.f32.mrb[7].mxu0 }
 0x102   :  { %v713_v5 = vadd.f32 %v712_v4, %v711_v1  ;;  %v740_v6 = vpop.f32.mrb[7].mxu1 }
 0x103   :  { %v741_v7 = vadd.f32 %v740_v6, %v739_v3  ;;  %v467_v8 = vadd.f32 %v738_v2, %v710_v63 }
 0x105   :  { %v470_v9 = vadd.f32 %v741_v7, %v713_v5 }
 0x107   :  { %v758_v10 = vpop.f32.mrb[8].mxu0 }
 0x108   :  { %v516_v11 = vadd.f32 %v758_v10, %v467_v8  ;;  %v507_v12 = vpop.f32.mrb[9].mxu0 }
 0x109   :  { %v508_v13 = vadd.f32 %v507_v12, %v459_v58  ;;  %v759_v14 = vpop.f32.mrb[10].mxu0 }
 0x10a   :  { %v519_v15 = vadd.f32 %v759_v14, %v470_v9  ;;  %v510_v16 = vpop.f32.mrb[11].mxu0 }
 0x10b   :  { %v511_v17 = vadd.f32 %v510_v16, %v462_v59 }
 0x10d   :  { %v536_v18 = vadd.f32 %v511_v17, %v508_v13 }
 0x10f   :  { %v537_v19 = vadd.f32 %v536_v18, %v516_v11 }
 0x111   :  { %v538_v20 = vadd.f32 %v537_v19, %v519_v15 }
 0x113   :  { %v539_v21 = vrot.slane %v538_v20, 4 }
 0x115   :  { %v540_v22 = vadd.f32 %v539_v21, %v538_v20 }
 0x117   :  { %v541_v23 = vrot.slane %v540_v22, 2 }
 0x119   :  { %v542_v24 = vadd.f32 %v541_v23, %v540_v22 }
 0x11b   :  { %v543_v25 = vrot.slane %v542_v24, 1 }
 0x11d   :  { %v544_v26 = vadd.f32 %v543_v25, %v542_v24 }
 0x11f   :  { %v545_v27 = vmul.f32 0.03125, %v544_v26 }
 0x121   :  { %v546_v28 = vsub.f32 %v508_v13, %v545_v27  ;;  %v547_v29 = vsub.f32 %v511_v17, %v545_v27  ;;  %v548_v30 = vsub.f32 %v516_v11, %v545_v27  ;;  %v549_v31 = vsub.f32 %v519_v15, %v545_v27 }
 0x123   :  { %v550_v32 = vmul.f32 %v546_v28, %v546_v28  ;;  %v551_v33 = vmul.f32 %v547_v29, %v547_v29  ;;  %v552_v34 = vmul.f32 %v548_v30, %v548_v30  ;;  %v553_v36 = vmul.f32 %v549_v31, %v549_v31 }
 0x125   :  { %v554_v35 = vadd.f32 %v551_v33, %v550_v32 }
 0x127   :  { %v555_v37 = vadd.f32 %v554_v35, %v552_v34 }
 0x129   :  { %v556_v38 = vadd.f32 %v555_v37, %v553_v36 }
 0x12b   :  { %v557_v39 = vrot.slane %v556_v38, 4 }
 0x12d   :  { %v558_v40 = vadd.f32 %v557_v39, %v556_v38 }
 0x12f   :  { %v559_v41 = vrot.slane %v558_v40, 2 }
 0x131   :  { %v560_v42 = vadd.f32 %v559_v41, %v558_v40 }
 0x133   :  { %v561_v43 = vrot.slane %v560_v42, 1 }
 0x135   :  { %v562_v44 = vadd.f32 %v561_v43, %v560_v42 }
 0x137   :  { %v563_v45 = vmul.f32 0.03125, %v562_v44 }
 0x139   :  { %v565_v46 = vadd.f32 1e-05, %v563_v45 }
 0x13b   :  { %810 = vrsqrt.f32 %v565_v46 }
 0x145   :  { %v811_v51 = vpop.eup %810 }
 0x146   :  { %v567_v52 = vmul.f32 %v811_v51, %v564_v49 }
 0x148   :  { %v569_v54 = vmul.f32 %v567_v52, %v545_v27  ;;  %v575_v55 = vrot.slane %v567_v52, %v574_v50 }
 0x14a   :  { %v570_v56 = vsub.f32 %v568_v53, %v569_v54  ;;  %v577_v57 = vmul.f32 %v575_v55, %v508_v13  ;;  %v578_v58 = vmul.f32 %v575_v55, %v511_v17  ;;  %v579_v59 = vmul.f32 %v575_v55, %v516_v11 }
 0x14b   :  { %v580_v60 = vmul.f32 %v575_v55, %v519_v15 }
 0x14c   :  { %v585_v61 = vrot.slane %v570_v56, %v574_v50 }
 0x14e   :  { %v587_v62 = vadd.f32 %v585_v61, %v577_v57  ;;  %v588_v63 = vadd.f32 %v585_v61, %v578_v58  ;;  %v589_v0 = vadd.f32 %v585_v61, %v579_v59  ;;  %v590_v1 = vadd.f32 %v585_v61, %v580_v60 }
 0x150   :  { %v591_v2 = vmax.f32 %v587_v62, 0.0  ;;  %v592_v3 = vmax.f32 %v588_v63, 0.0  ;;  %v593_v4 = vmax.f32 %v589_v0, 0.0  ;;  %v594_v5 = vmax.f32 %v590_v1, 0.0 }
 0x152   :  { %v678_v6 = vpack.c.bf16 %v592_v3, %v591_v2  ;;  %v683_v7 = vpack.c.bf16 %v594_v5, %v593_v4 }
 0x154   :  { %679 = vst [vmem:[%s991_s4] sm:$0xff] %v678_v6   ;;  %685 = vst [vmem:[%s991_s4 + $0x8] sm:$0xff] %v683_v7  }

// kernel: encoder_forward.9
= control target key start
LH: loop header
LB: loop body
LE: loop exit
PB: predicated region body
PF: predicated region fallthrough
CT: control target
= control target key end

     0   :  { %10 = vsyncpa [#allocation3], 0  ;;  %v149_v36 = vlaneseq  ;;  %v1435_v37 = vmov 1966171168   ;;  %s1892_s0 = inlined_call_operand.vmem [shape: bf16[2,1024], index: 0, kind: input, shape index: {}]   ;;  %s1893_s1 = inlined_call_operand.vmem [shape: bf16[1024,256], index: 1, kind: input, shape index: {}]   ;;  %s1894_s2 = inlined_call_operand.vmem [shape: f32[1,256], index: 2, kind: input, shape index: {}]   ;;  %s1895_s3 = inlined_call_operand.hbm [shape: f32[2,128], index: 3, kind: output, shape index: {0}]   ;;  %s1896_s4 = inlined_call_operand.hbm [shape: f32[2,128], index: 4, kind: output, shape index: {1}]  }
   0x1   :  { %v1194_v0 = vld [vmem:[%s1893_s1 + $0x4] ss:$8 sps:$4 sm:$0xff]   ;;  %v1198_v2 = vld [vmem:[%s1893_s1] ss:$8 sps:$4 sm:$0xff]   ;;  %v1200_v4 = vld [vmem:[%s1893_s1 + $0x14] ss:$8 sps:$4 sm:$0xff]   ;;  %v162_v38 = vunpack.c.l.s4 %v1435_v37 }
   0x2   :  { %v1196_v1 = vld [vmem:[%s1893_s1 + $0x204] ss:$8 sps:$4 sm:$0xff]   ;;  %857 = vmatprep.subr.bf16.mxu1 %v1194_v0  ;;  %v1199_v3 = vld [vmem:[%s1893_s1 + $0x200] ss:$8 sps:$4 sm:$0xff]   ;;  %v1202_v5 = vld [vmem:[%s1893_s1 + $0x214] ss:$8 sps:$4 sm:$0xff]  }
   0x3   :  { %939 = vmatprep.subr.bf16.mxu0 %v1196_v1  ;;  %858 = vmatpush1.bf16.msra.mxu1 %v1198_v2  ;;  %v1204_v6 = vld [vmem:[%s1893_s1 + $0x10] ss:$8 sps:$4 sm:$0xff]   ;;  %v1206_v8 = vld [vmem:[%s1893_s1 + $0x24] ss:$8 sps:$4 sm:$0xff]   ;;  %v1210_v10 = vld [vmem:[%s1893_s1 + $0x20] ss:$8 sps:$4 sm:$0xff]   ;;  %v163_v43 = vunpack.c.0.s8 %v162_v38 }
   0x4   :  { %940 = vmatpush1.bf16.msra.mxu0 %v1199_v3  ;;  %859 = vmatprep.subr.bf16.mxu1 %v1200_v4  ;;  %v1205_v7 = vld [vmem:[%s1893_s1 + $0x210] ss:$8 sps:$4 sm:$0xff]   ;;  %v1208_v9 = vld [vmem:[%s1893_s1 + $0x224] ss:$8 sps:$4 sm:$0xff]   ;;  %v1211_v11 = vld [vmem:[%s1893_s1 + $0x220] ss:$8 sps:$4 sm:$0xff]  }
   0x5   :  { %941 = vmatprep.subr.bf16.mxu0 %v1202_v5  ;;  %v1212_v12 = vld [vmem:[%s1893_s1 + $0x34] ss:$8 sps:$4 sm:$0xff]   ;;  %v1216_v14 = vld [vmem:[%s1893_s1 + $0x30] ss:$8 sps:$4 sm:$0xff]   ;;  %v1218_v16 = vld [vmem:[%s1893_s1 + $0x44] ss:$8 sps:$4 sm:$0xff]  }
   0x6   :  { %v1214_v13 = vld [vmem:[%s1893_s1 + $0x234] ss:$8 sps:$4 sm:$0xff]   ;;  %v1217_v15 = vld [vmem:[%s1893_s1 + $0x230] ss:$8 sps:$4 sm:$0xff]   ;;  %v1220_v17 = vld [vmem:[%s1893_s1 + $0x244] ss:$8 sps:$4 sm:$0xff]  }
   0x7   :  { %860 = vmatpush1.bf16.msra.mxu1 %v1204_v6  ;;  %v1222_v18 = vld [vmem:[%s1893_s1 + $0x40] ss:$8 sps:$4 sm:$0xff]   ;;  %v1224_v20 = vld [vmem:[%s1893_s1 + $0x54] ss:$8 sps:$4 sm:$0xff]   ;;  %v1228_v22 = vld [vmem:[%s1893_s1 + $0x50] ss:$8 sps:$4 sm:$0xff]  }
   0x8   :  { %942 = vmatpush1.bf16.msra.mxu0 %v1205_v7  ;;  %861 = vmatprep.subr.bf16.mxu1 %v1206_v8  ;;  %v1223_v19 = vld [vmem:[%s1893_s1 + $0x240] ss:$8 sps:$4 sm:$0xff]   ;;  %v1226_v21 = vld [vmem:[%s1893_s1 + $0x254] ss:$8 sps:$4 sm:$0xff]   ;;  %v1229_v23 = vld [vmem:[%s1893_s1 + $0x250] ss:$8 sps:$4 sm:$0xff]  }
   0x9   :  { %943 = vmatprep.subr.bf16.mxu0 %v1208_v9  ;;  %v1230_v24 = vld [vmem:[%s1893_s1 + $0x64] ss:$8 sps:$4 sm:$0xff]   ;;  %v1234_v26 = vld [vmem:[%s1893_s1 + $0x60] ss:$8 sps:$4 sm:$0xff]   ;;  %v1236_v28 = vld [vmem:[%s1893_s1 + $0x74] ss:$8 sps:$4 sm:$0xff]  }
   0xa   :  { %v1232_v25 = vld [vmem:[%s1893_s1 + $0x264] ss:$8 sps:$4 sm:$0xff]   ;;  %v1235_v27 = vld [vmem:[%s1893_s1 + $0x260] ss:$8 sps:$4 sm:$0xff]   ;;  %v1238_v29 = vld [vmem:[%s1893_s1 + $0x274] ss:$8 sps:$4 sm:$0xff]  }
   0xb   :  { %862 = vmatpush1.bf16.msra.mxu1 %v1210_v10  ;;  %v1240_v30 = vld [vmem:[%s1893_s1 + $0x70] ss:$8 sps:$4 sm:$0xff]   ;;  %v1242_v32 = vld [vmem:[%s1893_s1 + $0x84] ss:$8 sps:$4 sm:$0xff]   ;;  %v1246_v34 = vld [vmem:[%s1893_s1 + $0x80] ss:$8 sps:$4 sm:$0xff]  }
   0xc   :  { %944 = vmatpush1.bf16.msra.mxu0 %v1211_v11  ;;  %863 = vmatprep.subr.bf16.mxu1 %v1212_v12  ;;  %v1241_v31 = vld [vmem:[%s1893_s1 + $0x270] ss:$8 sps:$4 sm:$0xff]   ;;  %v1244_v33 = vld [vmem:[%s1893_s1 + $0x284] ss:$8 sps:$4 sm:$0xff]   ;;  %v1247_v35 = vld [vmem:[%s1893_s1 + $0x280] ss:$8 sps:$4 sm:$0xff]  }
   0xd   :  { %945 = vmatprep.subr.bf16.mxu0 %v1214_v13  ;;  %v1248_v39 = vld [vmem:[%s1893_s1 + $0x94] ss:$8 sps:$4 sm:$0xff]   ;;  %v1252_v41 = vld [vmem:[%s1893_s1 + $0x90] ss:$8 sps:$4 sm:$0xff]   ;;  %v1580_v42 = vshrl.u32 %v149_v36, 7  ;;  %v18_v52 = vld [vmem:[%s1892_s0] sm:$0xff] }
   0xe   :  { %v1250_v40 = vld [vmem:[%s1893_s1 + $0x294] ss:$8 sps:$4 sm:$0xff]   ;;  %v1253_v44 = vld [vmem:[%s1893_s1 + $0x290] ss:$8 sps:$4 sm:$0xff]   ;;  %v1254_v45 = vld [vmem:[%s1893_s1 + $0xa4] ss:$8 sps:$4 sm:$0xff]   ;;  %v160_v55 = vcombine.high %v18_v52, %v18_v52 }
   0xf   :  { %864 = vmatpush1.bf16.msra.mxu1 %v1216_v14  ;;  %v1256_v46 = vld [vmem:[%s1893_s1 + $0x2a4] ss:$8 sps:$4 sm:$0xff]   ;;  %v1258_v47 = vld [vmem:[%s1893_s1 + $0xa0] ss:$8 sps:$4 sm:$0xff]   ;;  %v166_v49 = vsub.s32 %v163_v43, %v1580_v42  ;;  %v1260_v50 = vld [vmem:[%s1893_s1 + $0xb4] ss:$8 sps:$4 sm:$0xff]  }
  0x10   :  { %946 = vmatpush1.bf16.msra.mxu0 %v1217_v15  ;;  %865 = vmatprep.subr.bf16.mxu1 %v1218_v16  ;;  %v1259_v48 = vld [vmem:[%s1893_s1 + $0x2a0] ss:$8 sps:$4 sm:$0xff]   ;;  %v1262_v51 = vld [vmem:[%s1893_s1 + $0x2b4] ss:$8 sps:$4 sm:$0xff]   ;;  %v1264_v53 = vld [vmem:[%s1893_s1 + $0xb0] ss:$8 sps:$4 sm:$0xff]  }
  0x11   :  { %947 = vmatprep.subr.bf16.mxu0 %v1220_v17  ;;  %v167_v54 = vrot.slane %v18_v52, %v166_v49  ;;  %v1265_v56 = vld [vmem:[%s1893_s1 + $0x2b0] ss:$8 sps:$4 sm:$0xff]   ;;  %v1266_v57 = vld [vmem:[%s1893_s1 + $0xc4] ss:$8 sps:$4 sm:$0xff]   ;;  %v174_v60 = vrot.slane %v160_v55, %v166_v49  ;;  %v1270_v61 = vld [vmem:[%s1893_s1 + $0xc0] ss:$8 sps:$4 sm:$0xff]  }
  0x12   :  { %v1268_v58 = vld [vmem:[%s1893_s1 + $0x2c4] ss:$8 sps:$4 sm:$0xff]   ;;  %v1271_v0 = vld [vmem:[%s1893_s1 + $0x2c0] ss:$8 sps:$4 sm:$0xff]   ;;  %v1272_v1 = vld [vmem:[%s1893_s1 + $0xd4] ss:$8 sps:$4 sm:$0xff]  }
  0x13   :  { %866 = vmatpush1.bf16.msra.mxu1 %v1222_v18  ;;  %v175_v59 = vcombine.high %v167_v54, %v167_v54  ;;  %v176_v63 = vcombine.high %v174_v60, %v174_v60  ;;  %v1274_v2 = vld [vmem:[%s1893_s1 + $0x2d4] ss:$8 sps:$4 sm:$0xff]   ;;  %v1276_v4 = vld [vmem:[%s1893_s1 + $0xd0] ss:$8 sps:$4 sm:$0xff]   ;;  %v1278_v6 = vld [vmem:[%s1893_s1 + $0xe4] ss:$8 sps:$4 sm:$0xff]   ;;  %v1670_v17 = vrot.slane %v167_v54, %v166_v49  ;;  %v1672_v18 = vrot.slane %v174_v60, %v166_v49 }
  0x14   :  { %948 = vmatpush1.bf16.msra.mxu0 %v1223_v19  ;;  %867 = vmatprep.subr.bf16.mxu1 %v1224_v20  ;;  %v1277_v5 = vld [vmem:[%s1893_s1 + $0x2d0] ss:$8 sps:$4 sm:$0xff]   ;;  %v1280_v7 = vld [vmem:[%s1893_s1 + $0x2e4] ss:$8 sps:$4 sm:$0xff]   ;;  %v1282_v8 = vld [vmem:[%s1893_s1 + $0xe0] ss:$8 sps:$4 sm:$0xff]  }
  0x15   :  { %949 = vmatprep.subr.bf16.mxu0 %v1226_v21  ;;  %v197_v62 = vrot.slane %v175_v59, %v166_v49  ;;  %v204_v3 = vrot.slane %v176_v63, %v166_v49  ;;  %v1283_v9 = vld [vmem:[%s1893_s1 + $0x2e0] ss:$8 sps:$4 sm:$0xff]   ;;  %v1284_v10 = vld [vmem:[%s1893_s1 + $0xf4] ss:$8 sps:$4 sm:$0xff]   ;;  %v1288_v12 = vld [vmem:[%s1893_s1 + $0xf0] ss:$8 sps:$4 sm:$0xff]  }
  0x16   :  { %v1286_v11 = vld [vmem:[%s1893_s1 + $0x2f4] ss:$8 sps:$4 sm:$0xff]   ;;  %v1289_v13 = vld [vmem:[%s1893_s1 + $0x2f0] ss:$8 sps:$4 sm:$0xff]   ;;  %v1292_v14 = vld [vmem:[%s1893_s1 + $0x104] ss:$8 sps:$4 sm:$0xff]  }
  0x17   :  { %868 = vmatpush1.bf16.msra.mxu1 %v1228_v22  ;;  %889 = vmatprep.mubr.bf16.mxu1 %v197_v62  ;;  %v1296_v15 = vld [vmem:[%s1893_s1 + $0x304] ss:$8 sps:$4 sm:$0xff]   ;;  %v1290_v16 = vld [vmem:[%s1893_s1 + $0x100] ss:$8 sps:$4 sm:$0xff]   ;;  %v1299_v20 = vld [vmem:[%s1893_s1 + $0x114] ss:$8 sps:$4 sm:$0xff]   ;;  %v207_v22 = vcombine.high %v197_v62, %v197_v62 }
  0x18   :  { %950 = vmatpush1.bf16.msra.mxu0 %v1229_v23  ;;  %869 = vmatprep.subr.bf16.mxu1 %v1230_v24  ;;  %v1294_v19 = vld [vmem:[%s1893_s1 + $0x300] ss:$8 sps:$4 sm:$0xff]   ;;  %v1302_v21 = vld [vmem:[%s1893_s1 + $0x314] ss:$8 sps:$4 sm:$0xff]   ;;  %v208_v23 = vcombine.high %v204_v3, %v204_v3  ;;  %v1297_v24 = vld [vmem:[%s1893_s1 + $0x110] ss:$8 sps:$4 sm:$0xff]  }
  0x19   :  { %951 = vmatprep.subr.bf16.mxu0 %v1232_v25  ;;  %971 = vmatprep.mubr.bf16.mxu0 %v204_v3  ;;  %v1300_v25 = vld [vmem:[%s1893_s1 + $0x310] ss:$8 sps:$4 sm:$0xff]   ;;  %v1315_v36 = vld [vmem:[%s1893_s1 + $0x140] ss:$8 sps:$4 sm:$0xff]   ;;  %v1323_v38 = vld [vmem:[%s1893_s1 + $0x154] ss:$8 sps:$4 sm:$0xff]  }
  0x1a   :  { %v1318_v37 = vld [vmem:[%s1893_s1 + $0x340] ss:$8 sps:$4 sm:$0xff]   ;;  %v1329_v43 = vld [vmem:[%s1893_s1 + $0x164] ss:$8 sps:$4 sm:$0xff]  }
  0x1b   :  { %870 = vmatpush1.bf16.msra.mxu1 %v1234_v26  ;;  %v1305_v26 = vld [vmem:[%s1893_s1 + $0x124] ss:$8 sps:$4 sm:$0xff]  }
  0x1c   :  { %952 = vmatpush1.bf16.msra.mxu0 %v1235_v27  ;;  %871 = vmatprep.subr.bf16.mxu1 %v1236_v28  ;;  %v1308_v27 = vld [vmem:[%s1893_s1 + $0x324] ss:$8 sps:$4 sm:$0xff]   ;;  %v1303_v28 = vld [vmem:[%s1893_s1 + $0x120] ss:$8 sps:$4 sm:$0xff]  }
  0x1d   :  { %953 = vmatprep.subr.bf16.mxu0 %v1238_v29  ;;  %v1306_v29 = vld [vmem:[%s1893_s1 + $0x320] ss:$8 sps:$4 sm:$0xff]  }
  0x1f   :  { %872 = vmatpush1.bf16.msra.mxu1 %v1240_v30  ;;  %v1311_v30 = vld [vmem:[%s1893_s1 + $0x134] ss:$8 sps:$4 sm:$0xff]  }
  0x20   :  { %954 = vmatpush1.bf16.msra.mxu0 %v1241_v31  ;;  %873 = vmatprep.subr.bf16.mxu1 %v1242_v32  ;;  %v1314_v31 = vld [vmem:[%s1893_s1 + $0x334] ss:$8 sps:$4 sm:$0xff]   ;;  %v1309_v32 = vld [vmem:[%s1893_s1 + $0x130] ss:$8 sps:$4 sm:$0xff]  }
  0x21   :  { %955 = vmatprep.subr.bf16.mxu0 %v1244_v33  ;;  %v1312_v33 = vld [vmem:[%s1893_s1 + $0x330] ss:$8 sps:$4 sm:$0xff]  }
  0x23   :  { %874 = vmatpush1.bf16.msra.mxu1 %v1246_v34  ;;  %v1317_v34 = vld [vmem:[%s1893_s1 + $0x144] ss:$8 sps:$4 sm:$0xff]  }
  0x24   :  { %956 = vmatpush1.bf16.msra.mxu0 %v1247_v35  ;;  %875 = vmatprep.subr.bf16.mxu1 %v1248_v39  ;;  %v1320_v35 = vld [vmem:[%s1893_s1 + $0x344] ss:$8 sps:$4 sm:$0xff]   ;;  %v1326_v39 = vld [vmem:[%s1893_s1 + $0x354] ss:$8 sps:$4 sm:$0xff]  }
  0x25   :  { %957 = vmatprep.subr.bf16.mxu0 %v1250_v40  ;;  %v1321_v40 = vld [vmem:[%s1893_s1 + $0x150] ss:$8 sps:$4 sm:$0xff]  }
  0x27   :  { %876 = vmatpush1.bf16.msra.mxu1 %v1252_v41  ;;  %v1324_v41 = vld [vmem:[%s1893_s1 + $0x350] ss:$8 sps:$4 sm:$0xff]  }
  0x28   :  { %958 = vmatpush1.bf16.msra.mxu0 %v1253_v44  ;;  %877 = vmatprep.subr.bf16.mxu1 %v1254_v45  ;;  %v1332_v44 = vld [vmem:[%s1893_s1 + $0x364] ss:$8 sps:$4 sm:$0xff]  }
  0x29   :  { %959 = vmatprep.subr.bf16.mxu0 %v1256_v46 }
  0x2b   :  { %878 = vmatpush1.bf16.msra.mxu1 %v1258_v47 }
  0x2c   :  { %960 = vmatpush1.bf16.msra.mxu0 %v1259_v48  ;;  %879 = vmatprep.subr.bf16.mxu1 %v1260_v50 }
  0x2d   :  { %961 = vmatprep.subr.bf16.mxu0 %v1262_v51 }
  0x2f   :  { %880 = vmatpush1.bf16.msra.mxu1 %v1264_v53 }
  0x30   :  { %962 = vmatpush1.bf16.msra.mxu0 %v1265_v56  ;;  %881 = vmatprep.subr.bf16.mxu1 %v1266_v57 }
  0x31   :  { %963 = vmatprep.subr.bf16.mxu0 %v1268_v58 }
  0x33   :  { %882 = vmatpush1.bf16.msra.mxu1 %v1270_v61 }
  0x34   :  { %964 = vmatpush1.bf16.msra.mxu0 %v1271_v0  ;;  %883 = vmatprep.subr.bf16.mxu1 %v1272_v1 }
  0x35   :  { %965 = vmatprep.subr.bf16.mxu0 %v1274_v2 }
  0x37   :  { %884 = vmatpush1.bf16.msra.mxu1 %v1276_v4 }
  0x38   :  { %966 = vmatpush1.bf16.msra.mxu0 %v1277_v5  ;;  %885 = vmatprep.subr.bf16.mxu1 %v1278_v6 }
  0x39   :  { %967 = vmatprep.subr.bf16.mxu0 %v1280_v7 }
  0x3b   :  { %886 = vmatpush1.bf16.msra.mxu1 %v1282_v8 }
  0x3c   :  { %968 = vmatpush1.bf16.msra.mxu0 %v1283_v9  ;;  %887 = vmatprep.subr.bf16.mxu1 %v1284_v10 }
  0x3d   :  { %969 = vmatprep.subr.bf16.mxu0 %v1286_v11 }
  0x3f   :  { %888 = vmatpush1.bf16.msra.mxu1 %v1288_v12 }
  0x40   :  { %970 = vmatpush1.bf16.msra.mxu0 %v1289_v13  ;;  %898 = vmatprep.subr.bf16.mxu1 %v1292_v14 }
  0x41   :  { %980 = vmatprep.subr.bf16.mxu0 %v1296_v15 }
  0x42   :  { %890 = vmatmul.mubr.bf16.vlgmr.msra.gmra.mrb[0].mxu1 %v1670_v17 }
  0x43   :  { %972 = vmatmul.mubr.bf16.vlgmr.msra.gmra.mrb[0].mxu0 %v1672_v18  ;;  %899 = vmatpush1.bf16.msra.mxu1 %v1290_v16 }
  0x44   :  { %981 = vmatpush1.bf16.msra.mxu0 %v1294_v19  ;;  %900 = vmatprep.subr.bf16.mxu1 %v1299_v20 }
  0x45   :  { %982 = vmatprep.subr.bf16.mxu0 %v1302_v21  ;;  %930 = vmatprep.mubr.bf16.mxu1 %v207_v22 }
  0x46   :  { %1012 = vmatprep.mubr.bf16.mxu0 %v208_v23 }
  0x47   :  { %901 = vmatpush1.bf16.msra.mxu1 %v1297_v24 }
  0x48   :  { %983 = vmatpush1.bf16.msra.mxu0 %v1300_v25  ;;  %902 = vmatprep.subr.bf16.mxu1 %v1305_v26 }
  0x49   :  { %984 = vmatprep.subr.bf16.mxu0 %v1308_v27 }
  0x4b   :  { %903 = vmatpush1.bf16.msra.mxu1 %v1303_v28 }
  0x4c   :  { %985 = vmatpush1.bf16.msra.mxu0 %v1306_v29  ;;  %904 = vmatprep.subr.bf16.mxu1 %v1311_v30 }
  0x4d   :  { %986 = vmatprep.subr.bf16.mxu0 %v1314_v31 }
  0x4f   :  { %905 = vmatpush1.bf16.msra.mxu1 %v1309_v32 }
  0x50   :  { %987 = vmatpush1.bf16.msra.mxu0 %v1312_v33  ;;  %906 = vmatprep.subr.bf16.mxu1 %v1317_v34 }
  0x51   :  { %988 = vmatprep.subr.bf16.mxu0 %v1320_v35 }
  0x53   :  { %907 = vmatpush1.bf16.msra.mxu1 %v1315_v36 }
  0x54   :  { %989 = vmatpush1.bf16.msra.mxu0 %v1318_v37  ;;  %908 = vmatprep.subr.bf16.mxu1 %v1323_v38 }
  0x55   :  { %990 = vmatprep.subr.bf16.mxu0 %v1326_v39 }
  0x56   :  { %11 = vsyncpa [#allocation5], 0  ;;  %v1327_v45 = vld [vmem:[%s1893_s1 + $0x160] ss:$8 sps:$4 sm:$0xff]   ;;  %v1335_v47 = vld [vmem:[%s1893_s1 + $0x174] ss:$8 sps:$4 sm:$0xff]   ;;  %v205_v21 = vcombine.high %v1670_v17, %v1670_v17  ;;  %v206_v22 = vcombine.high %v1672_v18, %v1672_v18 }
  0x57   :  { %909 = vmatpush1.bf16.msra.mxu1 %v1321_v40  ;;  %v1330_v46 = vld [vmem:[%s1893_s1 + $0x360] ss:$8 sps:$4 sm:$0xff]   ;;  %v1338_v48 = vld [vmem:[%s1893_s1 + $0x374] ss:$8 sps:$4 sm:$0xff]   ;;  %v1333_v49 = vld [vmem:[%s1893_s1 + $0x170] ss:$8 sps:$4 sm:$0xff]  }
  0x58   :  { %991 = vmatpush1.bf16.msra.mxu0 %v1324_v41  ;;  %910 = vmatprep.subr.bf16.mxu1 %v1329_v43  ;;  %v1336_v50 = vld [vmem:[%s1893_s1 + $0x370] ss:$8 sps:$4 sm:$0xff]   ;;  %v1341_v51 = vld [vmem:[%s1893_s1 + $0x184] ss:$8 sps:$4 sm:$0xff]   ;;  %v1339_v53 = vld [vmem:[%s1893_s1 + $0x180] ss:$8 sps:$4 sm:$0xff]  }
  0x59   :  { %992 = vmatprep.subr.bf16.mxu0 %v1332_v44  ;;  %v1344_v52 = vld [vmem:[%s1893_s1 + $0x384] ss:$8 sps:$4 sm:$0xff]   ;;  %v1342_v54 = vld [vmem:[%s1893_s1 + $0x380] ss:$8 sps:$4 sm:$0xff]   ;;  %v1347_v55 = vld [vmem:[%s1893_s1 + $0x194] ss:$8 sps:$4 sm:$0xff]  }
  0x5a   :  { %v1350_v56 = vld [vmem:[%s1893_s1 + $0x394] ss:$8 sps:$4 sm:$0xff]   ;;  %v1345_v57 = vld [vmem:[%s1893_s1 + $0x190] ss:$8 sps:$4 sm:$0xff]   ;;  %v1353_v59 = vld [vmem:[%s1893_s1 + $0x1a4] ss:$8 sps:$4 sm:$0xff]  }
  0x5b   :  { %911 = vmatpush1.bf16.msra.mxu1 %v1327_v45  ;;  %v1348_v58 = vld [vmem:[%s1893_s1 + $0x390] ss:$8 sps:$4 sm:$0xff]   ;;  %v1356_v60 = vld [vmem:[%s1893_s1 + $0x3a4] ss:$8 sps:$4 sm:$0xff]   ;;  %v1351_v61 = vld [vmem:[%s1893_s1 + $0x1a0] ss:$8 sps:$4 sm:$0xff]  }
  0x5c   :  { %993 = vmatpush1.bf16.msra.mxu0 %v1330_v46  ;;  %912 = vmatprep.subr.bf16.mxu1 %v1335_v47  ;;  %v1354_v62 = vld [vmem:[%s1893_s1 + $0x3a0] ss:$8 sps:$4 sm:$0xff]   ;;  %v1359_v63 = vld [vmem:[%s1893_s1 + $0x1b4] ss:$8 sps:$4 sm:$0xff]   ;;  %v1357_v1 = vld [vmem:[%s1893_s1 + $0x1b0] ss:$8 sps:$4 sm:$0xff]  }
  0x5d   :  { %994 = vmatprep.subr.bf16.mxu0 %v1338_v48  ;;  %v1362_v0 = vld [vmem:[%s1893_s1 + $0x3b4] ss:$8 sps:$4 sm:$0xff]   ;;  %v1360_v2 = vld [vmem:[%s1893_s1 + $0x3b0] ss:$8 sps:$4 sm:$0xff]   ;;  %v1365_v3 = vld [vmem:[%s1893_s1 + $0x1c4] ss:$8 sps:$4 sm:$0xff]  }
  0x5e   :  { %v1368_v4 = vld [vmem:[%s1893_s1 + $0x3c4] ss:$8 sps:$4 sm:$0xff]   ;;  %v1363_v5 = vld [vmem:[%s1893_s1 + $0x1c0] ss:$8 sps:$4 sm:$0xff]   ;;  %v1371_v7 = vld [vmem:[%s1893_s1 + $0x1d4] ss:$8 sps:$4 sm:$0xff]  }
  0x5f   :  { %913 = vmatpush1.bf16.msra.mxu1 %v1333_v49  ;;  %v1366_v6 = vld [vmem:[%s1893_s1 + $0x3c0] ss:$8 sps:$4 sm:$0xff]   ;;  %v1374_v8 = vld [vmem:[%s1893_s1 + $0x3d4] ss:$8 sps:$4 sm:$0xff]   ;;  %v1369_v9 = vld [vmem:[%s1893_s1 + $0x1d0] ss:$8 sps:$4 sm:$0xff]  }
  0x60   :  { %995 = vmatpush1.bf16.msra.mxu0 %v1336_v50  ;;  %914 = vmatprep.subr.bf16.mxu1 %v1341_v51  ;;  %v1372_v10 = vld [vmem:[%s1893_s1 + $0x3d0] ss:$8 sps:$4 sm:$0xff]   ;;  %v1377_v11 = vld [vmem:[%s1893_s1 + $0x1e4] ss:$8 sps:$4 sm:$0xff]   ;;  %v1375_v13 = vld [vmem:[%s1893_s1 + $0x1e0] ss:$8 sps:$4 sm:$0xff]  }
  0x61   :  { %996 = vmatprep.subr.bf16.mxu0 %v1344_v52  ;;  %v1380_v12 = vld [vmem:[%s1893_s1 + $0x3e4] ss:$8 sps:$4 sm:$0xff]   ;;  %v1378_v14 = vld [vmem:[%s1893_s1 + $0x3e0] ss:$8 sps:$4 sm:$0xff]   ;;  %v1383_v15 = vld [vmem:[%s1893_s1 + $0x1f4] ss:$8 sps:$4 sm:$0xff]  }
  0x62   :  { %v1386_v16 = vld [vmem:[%s1893_s1 + $0x3f4] ss:$8 sps:$4 sm:$0xff]   ;;  %v1381_v19 = vld [vmem:[%s1893_s1 + $0x1f0] ss:$8 sps:$4 sm:$0xff]   ;;  %v151_v23 = vsub.s32 0, %v1580_v42  ;;  %v155_v25 = vsub.s32 1, %v1580_v42 }
  0x63   :  { %915 = vmatpush1.bf16.msra.mxu1 %v1339_v53  ;;  %v1384_v20 = vld [vmem:[%s1893_s1 + $0x3f0] ss:$8 sps:$4 sm:$0xff]   ;;  %v147_v24 = vld [vmem:[%s1894_s2] sm:$0x3]  ;;  %s1436_s1 = smov [#allocation2]   ;;  %s1437_s10 = smov [#allocation4]  }
  0x64   :  { %997 = vmatpush1.bf16.msra.mxu0 %v1342_v54  ;;  %916 = vmatprep.subr.bf16.mxu1 %v1347_v55  ;;  %v152_v26 = vrot.slane %v147_v24, %v151_v23  ;;  %v156_v27 = vrot.slane %v147_v24, %v155_v25  ;;  %s1029_s9 = sshll.u32 %s1436_s1, 4  ;;  %s1039_s11 = sshll.u32 %s1437_s10, 4  ;;  %s1030_s9 = int_to_ptr.vmem [resolvable:$true] %s1029_s9  ;;  %s1040_s11 = int_to_ptr.vmem [resolvable:$true] %s1039_s11 }
  0x65   :  { %998 = vmatprep.subr.bf16.mxu0 %v1350_v56  ;;  %s1387_s2 = scalar_lea.vmem %s1030_s9, 32  ;;  %p1392_p1 = scmp.lt.s32.totalorder %s1030_s9, %s1030_s9 }
  0x66   :  { %p1388_p0 = scmp.ne.s32.totalorder %s1030_s9, %s1387_s2  ;;  %p1393_p2 = scmp.lt.s32.totalorder %s1387_s2, %s1387_s2 }
  0x67   :  { %917 = vmatpush1.bf16.msra.mxu1 %v1345_v57 }
  0x68   :  { %999 = vmatpush1.bf16.msra.mxu0 %v1348_v58  ;;  %918 = vmatprep.subr.bf16.mxu1 %v1353_v59  ;;  %p1394_p3 = por %p1393_p2, %p1392_p1 }
  0x69   :  { %1000 = vmatprep.subr.bf16.mxu0 %v1356_v60 }
  0x6a   :  { %p1395_p4 = pnand %p1394_p3, %p1388_p0 }
  0x6b   :  { %919 = vmatpush1.bf16.msra.mxu1 %v1351_v61 }
  0x6c   :  { %1001 = vmatpush1.bf16.msra.mxu0 %v1354_v62  ;;  %920 = vmatprep.subr.bf16.mxu1 %v1359_v63 }
  0x6d   :  { %1002 = vmatprep.subr.bf16.mxu0 %v1362_v0 }
  0x6f   :  { %921 = vmatpush1.bf16.msra.mxu1 %v1357_v1 }
  0x70   :  { %1003 = vmatpush1.bf16.msra.mxu0 %v1360_v2  ;;  %922 = vmatprep.subr.bf16.mxu1 %v1365_v3 }
  0x71   :  { %1004 = vmatprep.subr.bf16.mxu0 %v1368_v4 }
  0x73   :  { %923 = vmatpush1.bf16.msra.mxu1 %v1363_v5 }
  0x74   :  { %1005 = vmatpush1.bf16.msra.mxu0 %v1366_v6  ;;  %924 = vmatprep.subr.bf16.mxu1 %v1371_v7 }
  0x75   :  { %1006 = vmatprep.subr.bf16.mxu0 %v1374_v8 }
  0x77   :  { %925 = vmatpush1.bf16.msra.mxu1 %v1369_v9 }
  0x78   :  { %1007 = vmatpush1.bf16.msra.mxu0 %v1372_v10  ;;  %926 = vmatprep.subr.bf16.mxu1 %v1377_v11 }
  0x79   :  { %1008 = vmatprep.subr.bf16.mxu0 %v1380_v12 }
  0x7b   :  { %927 = vmatpush1.bf16.msra.mxu1 %v1375_v13 }
  0x7c   :  { %1009 = vmatpush1.bf16.msra.mxu0 %v1378_v14  ;;  %928 = vmatprep.subr.bf16.mxu1 %v1383_v15 }
  0x7d   :  { %1010 = vmatprep.subr.bf16.mxu0 %v1386_v16 }
  0x7f   :  { %929 = vmatpush1.bf16.msra.mxu1 %v1381_v19 }
  0x80   :  { %1011 = vmatpush1.bf16.msra.mxu0 %v1384_v20 }
  0x82   :  { %931 = vmatmul.mubr.bf16.vlgmr.msra.gmra.mrb[0].mxu1 %v205_v21 }
  0x83   :  { %1013 = vmatmul.mubr.bf16.vlgmr.msra.gmra.mrb[0].mxu0 %v206_v22 }
 0x155   :  { %v932_v28 = vpop.f32.mrb[0].mxu1 }
 0x156   :  { %v1014_v29 = vpop.f32.mrb[0].mxu0  ;;  %v1179_v17 = vadd.f32 %v932_v28, %v152_v26  ;;  %v934_v18 = vpop.f32.mrb[1].mxu1 }
 0x157   :  { %v1016_v30 = vpop.f32.mrb[1].mxu0  ;;  %v1181_v31 = vadd.f32 %v934_v18, %v156_v27  ;;  %v936_v32 = vpop.f32.mrb[2].mxu1 }
 0x158   :  { %v1018_v33 = vpop.f32.mrb[2].mxu0  ;;  %v1180_v34 = vadd.f32 %v1179_v17, %v1014_v29  ;;  %v937_v35 = vpop.f32.mrb[3].mxu1 }
 0x159   :  { %v1019_v36 = vpop.f32.mrb[3].mxu0  ;;  %v1182_v37 = vadd.f32 %v1181_v31, %v1016_v30 }
 0x15a   :  { %1021 = vst [vmem:[#allocation2] sm:$0x3] %v1180_v34 }
 0x15b   :  { %1022 = vst [vmem:[#allocation4] sm:$0x3] %v1182_v37 }
 0x15c   :  { %1398 = shalt.err (!%p1395_p4)
}
 0x15d   :  { %s1399_s13 = scalar_lea.hbm %s1895_s3, 32 }
 0x15e   :  { %p1400_p5 = scmp.ne.s32.totalorder %s1895_s3, %s1399_s13  ;;  %p1403_p6 = scmp.lt.u32.totalorder %s1399_s13, %s1895_s3 }
 0x160   :  { %p1405_p7 = pnand %p1403_p6, %p1400_p5 }
 0x162   :  { %1408 = shalt.err (!%p1405_p7)
}
 0x163   :  { %1032 = dma.vmem_to_hbm [thread:$0]  %s1030_s9, 32, %s1895_s3, [#allocation3]  }
 0x164   :  { %s1409_s20 = scalar_lea.vmem %s1040_s11, 32  ;;  %p1414_p9 = scmp.lt.s32.totalorder %s1040_s11, %s1040_s11 }
 0x165   :  { %p1410_p8 = scmp.ne.s32.totalorder %s1040_s11, %s1409_s20  ;;  %p1415_p10 = scmp.lt.s32.totalorder %s1409_s20, %s1409_s20 }
 0x167   :  { %p1416_p11 = por %p1415_p10, %p1414_p9 }
 0x169   :  { %p1417_p12 = pnand %p1416_p11, %p1410_p8 }
 0x16b   :  { %1420 = shalt.err (!%p1417_p12)
}
 0x16c   :  { %s1421_s23 = scalar_lea.hbm %s1896_s4, 32 }
 0x16d   :  { %p1422_p13 = scmp.ne.s32.totalorder %s1896_s4, %s1421_s23  ;;  %p1425_p0 = scmp.lt.u32.totalorder %s1421_s23, %s1896_s4 }
 0x16f   :  { %p1427_p1 = pnand %p1425_p0, %p1422_p13 }
 0x171   :  { %1430 = shalt.err (!%p1427_p1)
}
 0x172   :  { %1042 = dma.vmem_to_hbm [thread:$0]  %s1040_s11, 32, %s1896_s4, [#allocation5]  }
 0x173   :  { %1431 = dma.done.wait [#allocation3], 32  }
 0x174   :  { %1432 = vsyncadd [#allocation3], 4294967264 }
 0x175   :  { %1433 = dma.done.wait [#allocation5], 32  }
 0x176   :  { %1434 = vsyncadd [#allocation5], 4294967264 }
 0x177   :  { %1049 = vsyncpa [#allocation3], 1 }
 0x178   :  { %1050 = vsyncpa [#allocation5], 1 }

// kernel: encoder_forward.8
= control target key start
LH: loop header
LB: loop body
LE: loop exit
PB: predicated region body
PF: predicated region fallthrough
CT: control target
= control target key end

     0   :  { %s2154_s1 = inlined_call_operand.vmem [shape: bf16[1152,256], index: 1, kind: input, shape index: {}]   ;;  %s2155_s0 = inlined_call_operand.vmem [shape: bf16[8,1152], index: 0, kind: input, shape index: {}]   ;;  %s2156_s2 = inlined_call_operand.vmem [shape: f32[1,256], index: 2, kind: input, shape index: {}]   ;;  %s2157_s3 = inlined_call_operand.vmem [shape: f32[1,256], index: 3, kind: input, shape index: {}]   ;;  %s2158_s4 = inlined_call_operand.vmem [shape: bf16[8,256], index: 4, kind: output, shape index: {}]  }
   0x1   :  { %v1430_v0 = vld [vmem:[%s2154_s1 + $0x4] ss:$8 sps:$4 sm:$0xff]   ;;  %v1434_v2 = vld [vmem:[%s2154_s1] ss:$8 sps:$4 sm:$0xff]   ;;  %v1436_v4 = vld [vmem:[%s2154_s1 + $0x14] ss:$8 sps:$4 sm:$0xff]  }
   0x2   :  { %v1432_v1 = vld [vmem:[%s2154_s1 + $0x204] ss:$8 sps:$4 sm:$0xff]   ;;  %919 = vmatprep.subr.bf16.mxu1 %v1430_v0  ;;  %v1435_v3 = vld [vmem:[%s2154_s1 + $0x200] ss:$8 sps:$4 sm:$0xff]   ;;  %v1438_v5 = vld [vmem:[%s2154_s1 + $0x214] ss:$8 sps:$4 sm:$0xff]  }
   0x3   :  { %1001 = vmatprep.subr.bf16.mxu0 %v1432_v1  ;;  %920 = vmatpush1.bf16.msra.mxu1 %v1434_v2  ;;  %v1440_v6 = vld [vmem:[%s2154_s1 + $0x10] ss:$8 sps:$4 sm:$0xff]   ;;  %v1442_v8 = vld [vmem:[%s2154_s1 + $0x24] ss:$8 sps:$4 sm:$0xff]   ;;  %v1446_v10 = vld [vmem:[%s2154_s1 + $0x20] ss:$8 sps:$4 sm:$0xff]  }
   0x4   :  { %1002 = vmatpush1.bf16.msra.mxu0 %v1435_v3  ;;  %921 = vmatprep.subr.bf16.mxu1 %v1436_v4  ;;  %v1441_v7 = vld [vmem:[%s2154_s1 + $0x210] ss:$8 sps:$4 sm:$0xff]   ;;  %v1444_v9 = vld [vmem:[%s2154_s1 + $0x224] ss:$8 sps:$4 sm:$0xff]   ;;  %v1447_v11 = vld [vmem:[%s2154_s1 + $0x220] ss:$8 sps:$4 sm:$0xff]  }
   0x5   :  { %1003 = vmatprep.subr.bf16.mxu0 %v1438_v5  ;;  %v1448_v12 = vld [vmem:[%s2154_s1 + $0x34] ss:$8 sps:$4 sm:$0xff]   ;;  %v1452_v14 = vld [vmem:[%s2154_s1 + $0x30] ss:$8 sps:$4 sm:$0xff]   ;;  %v1454_v16 = vld [vmem:[%s2154_s1 + $0x44] ss:$8 sps:$4 sm:$0xff]  }
   0x6   :  { %v1450_v13 = vld [vmem:[%s2154_s1 + $0x234] ss:$8 sps:$4 sm:$0xff]   ;;  %v1453_v15 = vld [vmem:[%s2154_s1 + $0x230] ss:$8 sps:$4 sm:$0xff]   ;;  %v1456_v17 = vld [vmem:[%s2154_s1 + $0x244] ss:$8 sps:$4 sm:$0xff]  }
   0x7   :  { %922 = vmatpush1.bf16.msra.mxu1 %v1440_v6  ;;  %v1458_v18 = vld [vmem:[%s2154_s1 + $0x40] ss:$8 sps:$4 sm:$0xff]   ;;  %v1460_v20 = vld [vmem:[%s2154_s1 + $0x54] ss:$8 sps:$4 sm:$0xff]   ;;  %v1464_v22 = vld [vmem:[%s2154_s1 + $0x50] ss:$8 sps:$4 sm:$0xff]  }
   0x8   :  { %1004 = vmatpush1.bf16.msra.mxu0 %v1441_v7  ;;  %923 = vmatprep.subr.bf16.mxu1 %v1442_v8  ;;  %v1459_v19 = vld [vmem:[%s2154_s1 + $0x240] ss:$8 sps:$4 sm:$0xff]   ;;  %v1462_v21 = vld [vmem:[%s2154_s1 + $0x254] ss:$8 sps:$4 sm:$0xff]   ;;  %v1465_v23 = vld [vmem:[%s2154_s1 + $0x250] ss:$8 sps:$4 sm:$0xff]  }
   0x9   :  { %1005 = vmatprep.subr.bf16.mxu0 %v1444_v9  ;;  %v1466_v24 = vld [vmem:[%s2154_s1 + $0x64] ss:$8 sps:$4 sm:$0xff]   ;;  %v1470_v26 = vld [vmem:[%s2154_s1 + $0x60] ss:$8 sps:$4 sm:$0xff]   ;;  %v1472_v28 = vld [vmem:[%s2154_s1 + $0x74] ss:$8 sps:$4 sm:$0xff]  }
   0xa   :  { %v1468_v25 = vld [vmem:[%s2154_s1 + $0x264] ss:$8 sps:$4 sm:$0xff]   ;;  %v1471_v27 = vld [vmem:[%s2154_s1 + $0x260] ss:$8 sps:$4 sm:$0xff]   ;;  %v1474_v29 = vld [vmem:[%s2154_s1 + $0x274] ss:$8 sps:$4 sm:$0xff]  }
   0xb   :  { %924 = vmatpush1.bf16.msra.mxu1 %v1446_v10  ;;  %v1476_v30 = vld [vmem:[%s2154_s1 + $0x70] ss:$8 sps:$4 sm:$0xff]   ;;  %v1478_v32 = vld [vmem:[%s2154_s1 + $0x84] ss:$8 sps:$4 sm:$0xff]   ;;  %v1482_v34 = vld [vmem:[%s2154_s1 + $0x80] ss:$8 sps:$4 sm:$0xff]  }
   0xc   :  { %1006 = vmatpush1.bf16.msra.mxu0 %v1447_v11  ;;  %925 = vmatprep.subr.bf16.mxu1 %v1448_v12  ;;  %v1477_v31 = vld [vmem:[%s2154_s1 + $0x270] ss:$8 sps:$4 sm:$0xff]   ;;  %v1480_v33 = vld [vmem:[%s2154_s1 + $0x284] ss:$8 sps:$4 sm:$0xff]   ;;  %v1483_v35 = vld [vmem:[%s2154_s1 + $0x280] ss:$8 sps:$4 sm:$0xff]  }
   0xd   :  { %1007 = vmatprep.subr.bf16.mxu0 %v1450_v13  ;;  %v1484_v36 = vld [vmem:[%s2154_s1 + $0x94] ss:$8 sps:$4 sm:$0xff]   ;;  %v1488_v38 = vld [vmem:[%s2154_s1 + $0x90] ss:$8 sps:$4 sm:$0xff]   ;;  %v1490_v40 = vld [vmem:[%s2154_s1 + $0xa4] ss:$8 sps:$4 sm:$0xff]  }
   0xe   :  { %v1486_v37 = vld [vmem:[%s2154_s1 + $0x294] ss:$8 sps:$4 sm:$0xff]   ;;  %v1489_v39 = vld [vmem:[%s2154_s1 + $0x290] ss:$8 sps:$4 sm:$0xff]   ;;  %v1492_v41 = vld [vmem:[%s2154_s1 + $0x2a4] ss:$8 sps:$4 sm:$0xff]  }
   0xf   :  { %926 = vmatpush1.bf16.msra.mxu1 %v1452_v14  ;;  %v1494_v42 = vld [vmem:[%s2154_s1 + $0xa0] ss:$8 sps:$4 sm:$0xff]   ;;  %v1496_v44 = vld [vmem:[%s2154_s1 + $0xb4] ss:$8 sps:$4 sm:$0xff]   ;;  %v1500_v47 = vld [vmem:[%s2154_s1 + $0xb0] ss:$8 sps:$4 sm:$0xff]  }
  0x10   :  { %1008 = vmatpush1.bf16.msra.mxu0 %v1453_v15  ;;  %927 = vmatprep.subr.bf16.mxu1 %v1454_v16  ;;  %v1495_v43 = vld [vmem:[%s2154_s1 + $0x2a0] ss:$8 sps:$4 sm:$0xff]   ;;  %v1498_v45 = vld [vmem:[%s2154_s1 + $0x2b4] ss:$8 sps:$4 sm:$0xff]   ;;  %v1501_v49 = vld [vmem:[%s2154_s1 + $0x2b0] ss:$8 sps:$4 sm:$0xff]  }
  0x11   :  { %1009 = vmatprep.subr.bf16.mxu0 %v1456_v17  ;;  %v18_v46 = vld [vmem:[%s2155_s0] sm:$0xff]  ;;  %v20_v50 = vld [vmem:[%s2155_s0 + $0x10] sm:$0xff] }
  0x12   :  { %v1260_v48 = vcombine.high %v18_v46, %v18_v46  ;;  %v1502_v51 = vld [vmem:[%s2154_s1 + $0xc4] ss:$8 sps:$4 sm:$0xff]   ;;  %v1264_v53 = vcombine.high %v20_v50, %v20_v50  ;;  %v1506_v54 = vld [vmem:[%s2154_s1 + $0xc0] ss:$8 sps:$4 sm:$0xff]   ;;  %v1508_v56 = vld [vmem:[%s2154_s1 + $0xd4] ss:$8 sps:$4 sm:$0xff]   ;;  %v1259_v6 = vcombine.low %v18_v46, %v18_v46  ;;  %v1263_v7 = vcombine.low %v20_v50, %v20_v50 }
  0x13   :  { %928 = vmatpush1.bf16.msra.mxu1 %v1458_v18  ;;  %v1504_v52 = vld [vmem:[%s2154_s1 + $0x2c4] ss:$8 sps:$4 sm:$0xff]   ;;  %v1507_v55 = vld [vmem:[%s2154_s1 + $0x2c0] ss:$8 sps:$4 sm:$0xff]   ;;  %v1510_v57 = vld [vmem:[%s2154_s1 + $0x2d4] ss:$8 sps:$4 sm:$0xff]  }
  0x14   :  { %1010 = vmatpush1.bf16.msra.mxu0 %v1459_v19  ;;  %929 = vmatprep.subr.bf16.mxu1 %v1460_v20  ;;  %v1512_v58 = vld [vmem:[%s2154_s1 + $0xd0] ss:$8 sps:$4 sm:$0xff]   ;;  %v1514_v60 = vld [vmem:[%s2154_s1 + $0xe4] ss:$8 sps:$4 sm:$0xff]   ;;  %v1518_v62 = vld [vmem:[%s2154_s1 + $0xe0] ss:$8 sps:$4 sm:$0xff]  }
  0x15   :  { %1011 = vmatprep.subr.bf16.mxu0 %v1462_v21  ;;  %951 = vmatprep.mubr.bf16.mxu1 %v1260_v48  ;;  %v1513_v59 = vld [vmem:[%s2154_s1 + $0x2d0] ss:$8 sps:$4 sm:$0xff]   ;;  %v1516_v61 = vld [vmem:[%s2154_s1 + $0x2e4] ss:$8 sps:$4 sm:$0xff]   ;;  %v1519_v63 = vld [vmem:[%s2154_s1 + $0x2e0] ss:$8 sps:$4 sm:$0xff]  }
  0x16   :  { %1033 = vmatprep.mubr.bf16.mxu0 %v1264_v53  ;;  %v1520_v0 = vld [vmem:[%s2154_s1 + $0xf4] ss:$8 sps:$4 sm:$0xff]   ;;  %v1524_v2 = vld [vmem:[%s2154_s1 + $0xf0] ss:$8 sps:$4 sm:$0xff]   ;;  %v1530_v4 = vld [vmem:[%s2154_s1 + $0x104] ss:$8 sps:$4 sm:$0xff]  }
  0x17   :  { %930 = vmatpush1.bf16.msra.mxu1 %v1464_v22  ;;  %v1522_v1 = vld [vmem:[%s2154_s1 + $0x2f4] ss:$8 sps:$4 sm:$0xff]   ;;  %v1525_v3 = vld [vmem:[%s2154_s1 + $0x2f0] ss:$8 sps:$4 sm:$0xff]   ;;  %v1535_v5 = vld [vmem:[%s2154_s1 + $0x304] ss:$8 sps:$4 sm:$0xff]  }
  0x18   :  { %1012 = vmatpush1.bf16.msra.mxu0 %v1465_v23  ;;  %931 = vmatprep.subr.bf16.mxu1 %v1466_v24  ;;  %v1528_v8 = vld [vmem:[%s2154_s1 + $0x100] ss:$8 sps:$4 sm:$0xff]   ;;  %v1538_v10 = vld [vmem:[%s2154_s1 + $0x114] ss:$8 sps:$4 sm:$0xff]   ;;  %v1536_v12 = vld [vmem:[%s2154_s1 + $0x110] ss:$8 sps:$4 sm:$0xff]  }
  0x19   :  { %1013 = vmatprep.subr.bf16.mxu0 %v1468_v25  ;;  %v1533_v9 = vld [vmem:[%s2154_s1 + $0x300] ss:$8 sps:$4 sm:$0xff]   ;;  %v1541_v11 = vld [vmem:[%s2154_s1 + $0x314] ss:$8 sps:$4 sm:$0xff]   ;;  %v1539_v13 = vld [vmem:[%s2154_s1 + $0x310] ss:$8 sps:$4 sm:$0xff]  }
  0x1a   :  { %v1544_v14 = vld [vmem:[%s2154_s1 + $0x124] ss:$8 sps:$4 sm:$0xff]   ;;  %v1542_v16 = vld [vmem:[%s2154_s1 + $0x120] ss:$8 sps:$4 sm:$0xff]   ;;  %v1550_v18 = vld [vmem:[%s2154_s1 + $0x134] ss:$8 sps:$4 sm:$0xff]  }
  0x1b   :  { %932 = vmatpush1.bf16.msra.mxu1 %v1470_v26  ;;  %v1547_v15 = vld [vmem:[%s2154_s1 + $0x324] ss:$8 sps:$4 sm:$0xff]   ;;  %v1545_v17 = vld [vmem:[%s2154_s1 + $0x320] ss:$8 sps:$4 sm:$0xff]   ;;  %v1553_v19 = vld [vmem:[%s2154_s1 + $0x334] ss:$8 sps:$4 sm:$0xff]  }
  0x1c   :  { %1014 = vmatpush1.bf16.msra.mxu0 %v1471_v27  ;;  %933 = vmatprep.subr.bf16.mxu1 %v1472_v28  ;;  %v1548_v20 = vld [vmem:[%s2154_s1 + $0x130] ss:$8 sps:$4 sm:$0xff]   ;;  %v1556_v22 = vld [vmem:[%s2154_s1 + $0x144] ss:$8 sps:$4 sm:$0xff]   ;;  %v1554_v24 = vld [vmem:[%s2154_s1 + $0x140] ss:$8 sps:$4 sm:$0xff]  }
  0x1d   :  { %1015 = vmatprep.subr.bf16.mxu0 %v1474_v29  ;;  %v1551_v21 = vld [vmem:[%s2154_s1 + $0x330] ss:$8 sps:$4 sm:$0xff]   ;;  %v1559_v23 = vld [vmem:[%s2154_s1 + $0x344] ss:$8 sps:$4 sm:$0xff]   ;;  %v1557_v25 = vld [vmem:[%s2154_s1 + $0x340] ss:$8 sps:$4 sm:$0xff]  }
  0x1e   :  { %v1562_v26 = vld [vmem:[%s2154_s1 + $0x154] ss:$8 sps:$4 sm:$0xff]   ;;  %v1560_v28 = vld [vmem:[%s2154_s1 + $0x150] ss:$8 sps:$4 sm:$0xff]   ;;  %v1592_v50 = vld [vmem:[%s2154_s1 + $0x1a4] ss:$8 sps:$4 sm:$0xff]  }
  0x1f   :  { %934 = vmatpush1.bf16.msra.mxu1 %v1476_v30  ;;  %v1565_v27 = vld [vmem:[%s2154_s1 + $0x354] ss:$8 sps:$4 sm:$0xff]   ;;  %v1563_v29 = vld [vmem:[%s2154_s1 + $0x350] ss:$8 sps:$4 sm:$0xff]   ;;  %v1568_v30 = vld [vmem:[%s2154_s1 + $0x164] ss:$8 sps:$4 sm:$0xff]  }
  0x20   :  { %1016 = vmatpush1.bf16.msra.mxu0 %v1477_v31  ;;  %935 = vmatprep.subr.bf16.mxu1 %v1478_v32  ;;  %v1571_v31 = vld [vmem:[%s2154_s1 + $0x364] ss:$8 sps:$4 sm:$0xff]   ;;  %v1586_v46 = vld [vmem:[%s2154_s1 + $0x194] ss:$8 sps:$4 sm:$0xff]   ;;  %v1584_v48 = vld [vmem:[%s2154_s1 + $0x190] ss:$8 sps:$4 sm:$0xff]  }
  0x21   :  { %1017 = vmatprep.subr.bf16.mxu0 %v1480_v33  ;;  %v1965_v32 = vld [vmem:[%s2155_s0 + $0x8] sm:$0xff]  ;;  %v1970_v33 = vld [vmem:[%s2155_s0 + $0x18] sm:$0xff] }
  0x22   :  { %v1593_v53 = vld [vmem:[%s2154_s1 + $0x3a0] ss:$8 sps:$4 sm:$0xff]  }
  0x23   :  { %936 = vmatpush1.bf16.msra.mxu1 %v1482_v34  ;;  %v1566_v34 = vld [vmem:[%s2154_s1 + $0x160] ss:$8 sps:$4 sm:$0xff]  }
  0x24   :  { %1018 = vmatpush1.bf16.msra.mxu0 %v1483_v35  ;;  %937 = vmatprep.subr.bf16.mxu1 %v1484_v36  ;;  %v1569_v35 = vld [vmem:[%s2154_s1 + $0x360] ss:$8 sps:$4 sm:$0xff]   ;;  %v1262_v36 = vcombine.high %v1965_v32, %v1965_v32 }
  0x25   :  { %1019 = vmatprep.subr.bf16.mxu0 %v1486_v37  ;;  %v1266_v37 = vcombine.high %v1970_v33, %v1970_v33 }
  0x27   :  { %938 = vmatpush1.bf16.msra.mxu1 %v1488_v38  ;;  %v1574_v38 = vld [vmem:[%s2154_s1 + $0x174] ss:$8 sps:$4 sm:$0xff]  }
  0x28   :  { %1020 = vmatpush1.bf16.msra.mxu0 %v1489_v39  ;;  %939 = vmatprep.subr.bf16.mxu1 %v1490_v40  ;;  %v1577_v39 = vld [vmem:[%s2154_s1 + $0x374] ss:$8 sps:$4 sm:$0xff]   ;;  %v1572_v40 = vld [vmem:[%s2154_s1 + $0x170] ss:$8 sps:$4 sm:$0xff]  }
  0x29   :  { %1021 = vmatprep.subr.bf16.mxu0 %v1492_v41  ;;  %v1575_v41 = vld [vmem:[%s2154_s1 + $0x370] ss:$8 sps:$4 sm:$0xff]  }
  0x2b   :  { %940 = vmatpush1.bf16.msra.mxu1 %v1494_v42  ;;  %v1580_v42 = vld [vmem:[%s2154_s1 + $0x184] ss:$8 sps:$4 sm:$0xff]  }
  0x2c   :  { %1022 = vmatpush1.bf16.msra.mxu0 %v1495_v43  ;;  %941 = vmatprep.subr.bf16.mxu1 %v1496_v44  ;;  %v1583_v43 = vld [vmem:[%s2154_s1 + $0x384] ss:$8 sps:$4 sm:$0xff]   ;;  %v1578_v44 = vld [vmem:[%s2154_s1 + $0x180] ss:$8 sps:$4 sm:$0xff]  }
  0x2d   :  { %1023 = vmatprep.subr.bf16.mxu0 %v1498_v45  ;;  %v1581_v45 = vld [vmem:[%s2154_s1 + $0x380] ss:$8 sps:$4 sm:$0xff]  }
  0x2f   :  { %942 = vmatpush1.bf16.msra.mxu1 %v1500_v47  ;;  %v1589_v47 = vld [vmem:[%s2154_s1 + $0x394] ss:$8 sps:$4 sm:$0xff]  }
  0x30   :  { %1024 = vmatpush1.bf16.msra.mxu0 %v1501_v49  ;;  %943 = vmatprep.subr.bf16.mxu1 %v1502_v51  ;;  %v1587_v49 = vld [vmem:[%s2154_s1 + $0x390] ss:$8 sps:$4 sm:$0xff]   ;;  %v1595_v51 = vld [vmem:[%s2154_s1 + $0x3a4] ss:$8 sps:$4 sm:$0xff]  }
  0x31   :  { %1025 = vmatprep.subr.bf16.mxu0 %v1504_v52  ;;  %v1590_v52 = vld [vmem:[%s2154_s1 + $0x1a0] ss:$8 sps:$4 sm:$0xff]  }
  0x33   :  { %944 = vmatpush1.bf16.msra.mxu1 %v1506_v54  ;;  %v1598_v54 = vld [vmem:[%s2154_s1 + $0x1b4] ss:$8 sps:$4 sm:$0xff]  }
  0x34   :  { %1026 = vmatpush1.bf16.msra.mxu0 %v1507_v55  ;;  %945 = vmatprep.subr.bf16.mxu1 %v1508_v56  ;;  %v1601_v55 = vld [vmem:[%s2154_s1 + $0x3b4] ss:$8 sps:$4 sm:$0xff]   ;;  %v1596_v56 = vld [vmem:[%s2154_s1 + $0x1b0] ss:$8 sps:$4 sm:$0xff]  }
  0x35   :  { %1027 = vmatprep.subr.bf16.mxu0 %v1510_v57  ;;  %v1599_v57 = vld [vmem:[%s2154_s1 + $0x3b0] ss:$8 sps:$4 sm:$0xff]  }
  0x37   :  { %946 = vmatpush1.bf16.msra.mxu1 %v1512_v58  ;;  %v1604_v58 = vld [vmem:[%s2154_s1 + $0x1c4] ss:$8 sps:$4 sm:$0xff]  }
  0x38   :  { %1028 = vmatpush1.bf16.msra.mxu0 %v1513_v59  ;;  %947 = vmatprep.subr.bf16.mxu1 %v1514_v60  ;;  %v1607_v59 = vld [vmem:[%s2154_s1 + $0x3c4] ss:$8 sps:$4 sm:$0xff]   ;;  %v1602_v60 = vld [vmem:[%s2154_s1 + $0x1c0] ss:$8 sps:$4 sm:$0xff]  }
  0x39   :  { %1029 = vmatprep.subr.bf16.mxu0 %v1516_v61  ;;  %v1605_v61 = vld [vmem:[%s2154_s1 + $0x3c0] ss:$8 sps:$4 sm:$0xff]  }
  0x3b   :  { %948 = vmatpush1.bf16.msra.mxu1 %v1518_v62  ;;  %v1610_v62 = vld [vmem:[%s2154_s1 + $0x1d4] ss:$8 sps:$4 sm:$0xff]  }
  0x3c   :  { %1030 = vmatpush1.bf16.msra.mxu0 %v1519_v63  ;;  %949 = vmatprep.subr.bf16.mxu1 %v1520_v0  ;;  %v1613_v63 = vld [vmem:[%s2154_s1 + $0x3d4] ss:$8 sps:$4 sm:$0xff]   ;;  %v1608_v0 = vld [vmem:[%s2154_s1 + $0x1d0] ss:$8 sps:$4 sm:$0xff]  }
  0x3d   :  { %1031 = vmatprep.subr.bf16.mxu0 %v1522_v1  ;;  %v1611_v1 = vld [vmem:[%s2154_s1 + $0x3d0] ss:$8 sps:$4 sm:$0xff]  }
  0x3f   :  { %950 = vmatpush1.bf16.msra.mxu1 %v1524_v2  ;;  %v1616_v2 = vld [vmem:[%s2154_s1 + $0x1e4] ss:$8 sps:$4 sm:$0xff]  }
  0x40   :  { %1032 = vmatpush1.bf16.msra.mxu0 %v1525_v3  ;;  %960 = vmatprep.subr.bf16.mxu1 %v1530_v4  ;;  %v1619_v3 = vld [vmem:[%s2154_s1 + $0x3e4] ss:$8 sps:$4 sm:$0xff]   ;;  %v1614_v4 = vld [vmem:[%s2154_s1 + $0x1e0] ss:$8 sps:$4 sm:$0xff]  }
  0x41   :  { %1042 = vmatprep.subr.bf16.mxu0 %v1535_v5  ;;  %v1617_v5 = vld [vmem:[%s2154_s1 + $0x3e0] ss:$8 sps:$4 sm:$0xff]  }
  0x42   :  { %952 = vmatmul.mubr.bf16.vlgmr.msra.gmra.mrb[0].mxu1 %v1259_v6  ;;  %v1622_v6 = vld [vmem:[%s2154_s1 + $0x1f4] ss:$8 sps:$4 sm:$0xff]  }
  0x43   :  { %1034 = vmatmul.mubr.bf16.vlgmr.msra.gmra.mrb[0].mxu0 %v1263_v7  ;;  %961 = vmatpush1.bf16.msra.mxu1 %v1528_v8  ;;  %v1625_v7 = vld [vmem:[%s2154_s1 + $0x3f4] ss:$8 sps:$4 sm:$0xff]   ;;  %v1620_v8 = vld [vmem:[%s2154_s1 + $0x1f0] ss:$8 sps:$4 sm:$0xff]  }
  0x44   :  { %1043 = vmatpush1.bf16.msra.mxu0 %v1533_v9  ;;  %962 = vmatprep.subr.bf16.mxu1 %v1538_v10  ;;  %v1623_v9 = vld [vmem:[%s2154_s1 + $0x3f0] ss:$8 sps:$4 sm:$0xff]   ;;  %v1632_v10 = vld [vmem:[%s2154_s1 + $0x404] ss:$8 sps:$4 sm:$0xff]  }
  0x45   :  { %1044 = vmatprep.subr.bf16.mxu0 %v1541_v11  ;;  %992 = vmatprep.mubr.bf16.mxu1 %v1262_v36  ;;  %v1261_v11 = vcombine.low %v1965_v32, %v1965_v32 }
  0x46   :  { %1074 = vmatprep.mubr.bf16.mxu0 %v1266_v37 }
  0x47   :  { %963 = vmatpush1.bf16.msra.mxu1 %v1536_v12  ;;  %v1265_v12 = vcombine.low %v1970_v33, %v1970_v33 }
  0x48   :  { %1045 = vmatpush1.bf16.msra.mxu0 %v1539_v13  ;;  %964 = vmatprep.subr.bf16.mxu1 %v1544_v14  ;;  %v1630_v13 = vld [vmem:[%s2154_s1 + $0x400] ss:$8 sps:$4 sm:$0xff]   ;;  %v1635_v14 = vld [vmem:[%s2154_s1 + $0x414] ss:$8 sps:$4 sm:$0xff]  }
  0x49   :  { %1046 = vmatprep.subr.bf16.mxu0 %v1547_v15  ;;  %v1633_v15 = vld [vmem:[%s2154_s1 + $0x410] ss:$8 sps:$4 sm:$0xff]  }
  0x4b   :  { %965 = vmatpush1.bf16.msra.mxu1 %v1542_v16  ;;  %v1659_v16 = vmov 0  }
  0x4c   :  { %1047 = vmatpush1.bf16.msra.mxu0 %v1545_v17  ;;  %966 = vmatprep.subr.bf16.mxu1 %v1550_v18  ;;  %v1638_v17 = vld [vmem:[%s2154_s1 + $0x424] ss:$8 sps:$4 sm:$0xff]   ;;  %v1636_v18 = vld [vmem:[%s2154_s1 + $0x420] ss:$8 sps:$4 sm:$0xff]  }
  0x4d   :  { %1048 = vmatprep.subr.bf16.mxu0 %v1553_v19  ;;  %v1641_v19 = vld [vmem:[%s2154_s1 + $0x434] ss:$8 sps:$4 sm:$0xff]  }
  0x4f   :  { %967 = vmatpush1.bf16.msra.mxu1 %v1548_v20  ;;  %v1639_v20 = vld [vmem:[%s2154_s1 + $0x430] ss:$8 sps:$4 sm:$0xff]  }
  0x50   :  { %1049 = vmatpush1.bf16.msra.mxu0 %v1551_v21  ;;  %968 = vmatprep.subr.bf16.mxu1 %v1556_v22  ;;  %v1644_v21 = vld [vmem:[%s2154_s1 + $0x444] ss:$8 sps:$4 sm:$0xff]   ;;  %v1642_v22 = vld [vmem:[%s2154_s1 + $0x440] ss:$8 sps:$4 sm:$0xff]  }
  0x51   :  { %1050 = vmatprep.subr.bf16.mxu0 %v1559_v23  ;;  %v1647_v23 = vld [vmem:[%s2154_s1 + $0x454] ss:$8 sps:$4 sm:$0xff]  }
  0x53   :  { %969 = vmatpush1.bf16.msra.mxu1 %v1554_v24  ;;  %v1645_v24 = vld [vmem:[%s2154_s1 + $0x450] ss:$8 sps:$4 sm:$0xff]  }
  0x54   :  { %1051 = vmatpush1.bf16.msra.mxu0 %v1557_v25  ;;  %970 = vmatprep.subr.bf16.mxu1 %v1562_v26  ;;  %v1650_v25 = vld [vmem:[%s2154_s1 + $0x464] ss:$8 sps:$4 sm:$0xff]   ;;  %v1648_v26 = vld [vmem:[%s2154_s1 + $0x460] ss:$8 sps:$4 sm:$0xff]  }
  0x55   :  { %1052 = vmatprep.subr.bf16.mxu0 %v1565_v27  ;;  %v1653_v27 = vld [vmem:[%s2154_s1 + $0x474] ss:$8 sps:$4 sm:$0xff]  }
  0x57   :  { %971 = vmatpush1.bf16.msra.mxu1 %v1560_v28  ;;  %v1651_v28 = vld [vmem:[%s2154_s1 + $0x470] ss:$8 sps:$4 sm:$0xff]  }
  0x58   :  { %1053 = vmatpush1.bf16.msra.mxu0 %v1563_v29  ;;  %972 = vmatprep.subr.bf16.mxu1 %v1568_v30  ;;  %v1654_v29 = vld [vmem:[%s2155_s0 + $0x20] ss:$0 sps:$4 sm:$0xff]  }
  0x59   :  { %1054 = vmatprep.subr.bf16.mxu0 %v1571_v31 }
  0x5b   :  { %973 = vmatpush1.bf16.msra.mxu1 %v1566_v34 }
  0x5c   :  { %1055 = vmatpush1.bf16.msra.mxu0 %v1569_v35  ;;  %974 = vmatprep.subr.bf16.mxu1 %v1574_v38 }
  0x5d   :  { %1056 = vmatprep.subr.bf16.mxu0 %v1577_v39 }
  0x5f   :  { %975 = vmatpush1.bf16.msra.mxu1 %v1572_v40 }
  0x60   :  { %1057 = vmatpush1.bf16.msra.mxu0 %v1575_v41  ;;  %976 = vmatprep.subr.bf16.mxu1 %v1580_v42 }
  0x61   :  { %1058 = vmatprep.subr.bf16.mxu0 %v1583_v43 }
  0x63   :  { %977 = vmatpush1.bf16.msra.mxu1 %v1578_v44 }
  0x64   :  { %1059 = vmatpush1.bf16.msra.mxu0 %v1581_v45  ;;  %978 = vmatprep.subr.bf16.mxu1 %v1586_v46 }
  0x65   :  { %1060 = vmatprep.subr.bf16.mxu0 %v1589_v47 }
  0x67   :  { %979 = vmatpush1.bf16.msra.mxu1 %v1584_v48 }
  0x68   :  { %1061 = vmatpush1.bf16.msra.mxu0 %v1587_v49  ;;  %980 = vmatprep.subr.bf16.mxu1 %v1592_v50 }
  0x69   :  { %1062 = vmatprep.subr.bf16.mxu0 %v1595_v51 }
  0x6b   :  { %981 = vmatpush1.bf16.msra.mxu1 %v1590_v52 }
  0x6c   :  { %1063 = vmatpush1.bf16.msra.mxu0 %v1593_v53  ;;  %982 = vmatprep.subr.bf16.mxu1 %v1598_v54 }
  0x6d   :  { %1064 = vmatprep.subr.bf16.mxu0 %v1601_v55 }
  0x6f   :  { %983 = vmatpush1.bf16.msra.mxu1 %v1596_v56 }
  0x70   :  { %1065 = vmatpush1.bf16.msra.mxu0 %v1599_v57  ;;  %984 = vmatprep.subr.bf16.mxu1 %v1604_v58 }
  0x71   :  { %1066 = vmatprep.subr.bf16.mxu0 %v1607_v59 }
  0x73   :  { %985 = vmatpush1.bf16.msra.mxu1 %v1602_v60 }
  0x74   :  { %1067 = vmatpush1.bf16.msra.mxu0 %v1605_v61  ;;  %986 = vmatprep.subr.bf16.mxu1 %v1610_v62 }
  0x75   :  { %1068 = vmatprep.subr.bf16.mxu0 %v1613_v63 }
  0x77   :  { %987 = vmatpush1.bf16.msra.mxu1 %v1608_v0 }
  0x78   :  { %1069 = vmatpush1.bf16.msra.mxu0 %v1611_v1  ;;  %988 = vmatprep.subr.bf16.mxu1 %v1616_v2 }
  0x79   :  { %1070 = vmatprep.subr.bf16.mxu0 %v1619_v3 }
  0x7b   :  { %989 = vmatpush1.bf16.msra.mxu1 %v1614_v4 }
  0x7c   :  { %1071 = vmatpush1.bf16.msra.mxu0 %v1617_v5  ;;  %990 = vmatprep.subr.bf16.mxu1 %v1622_v6 }
  0x7d   :  { %1072 = vmatprep.subr.bf16.mxu0 %v1625_v7 }
  0x7f   :  { %991 = vmatpush1.bf16.msra.mxu1 %v1620_v8 }
  0x80   :  { %1073 = vmatpush1.bf16.msra.mxu0 %v1623_v9 }
  0x81   :  { %1083 = vmatprep.subr.bf16.mxu0 %v1632_v10  ;;  %v1660_v10 = vmov 1966171168  }
  0x82   :  { %993 = vmatmul.mubr.bf16.vlgmr.msra.gmra.mrb[0].mxu1 %v1261_v11  ;;  %v1179_v11 = vunpack.c.l.s4 %v1660_v10 }
  0x83   :  { %1075 = vmatmul.mubr.bf16.vlgmr.msra.gmra.mrb[0].mxu0 %v1265_v12  ;;  %v1181_v12 = vlaneseq }
  0x84   :  { %1084 = vmatpush1.bf16.msra.mxu0 %v1630_v13  ;;  %1115 = vmatprep.mubr.bf16.mxu0 %v1659_v16  ;;  %v1180_v13 = vunpack.c.0.s8 %v1179_v11 }
  0x85   :  { %1085 = vmatprep.subr.bf16.mxu0 %v1635_v14  ;;  %v1182_v14 = vshrl.u32 %v1181_v12, 7 }
  0x87   :  { %v1183_v16 = vsub.s32 %v1180_v13, %v1182_v14 }
  0x88   :  { %1086 = vmatpush1.bf16.msra.mxu0 %v1633_v15 }
  0x89   :  { %1087 = vmatprep.subr.bf16.mxu0 %v1638_v17 }
  0x8c   :  { %1088 = vmatpush1.bf16.msra.mxu0 %v1636_v18 }
  0x8d   :  { %1089 = vmatprep.subr.bf16.mxu0 %v1641_v19 }
  0x90   :  { %1090 = vmatpush1.bf16.msra.mxu0 %v1639_v20  ;;  %v1170_v20 = vld [vmem:[%s2156_s2] sm:$0x3] }
  0x91   :  { %1091 = vmatprep.subr.bf16.mxu0 %v1644_v21 }
  0x94   :  { %1092 = vmatpush1.bf16.msra.mxu0 %v1642_v22  ;;  %v1198_v22 = vsub.s32 0, %v1182_v14 }
  0x95   :  { %1093 = vmatprep.subr.bf16.mxu0 %v1647_v23  ;;  %v1202_v23 = vsub.s32 1, %v1182_v14 }
  0x98   :  { %1094 = vmatpush1.bf16.msra.mxu0 %v1645_v24 }
  0x99   :  { %1095 = vmatprep.subr.bf16.mxu0 %v1650_v25 }
  0x9c   :  { %1096 = vmatpush1.bf16.msra.mxu0 %v1648_v26 }
  0x9d   :  { %1097 = vmatprep.subr.bf16.mxu0 %v1653_v27 }
  0xa0   :  { %1098 = vmatpush1.bf16.msra.mxu0 %v1651_v28 }
  0xa3   :  { %1116 = vmatmul.mubr.bf16.vlgmr.msra.gmra.mrb[0].mxu0 %v1654_v29 }
 0x155   :  { %v994_v30 = vpop.f32.mrb[0].mxu1 }
 0x156   :  { %v996_v31 = vpop.f32.mrb[1].mxu1 }
 0x157   :  { %v998_v32 = vpop.f32.mrb[2].mxu1 }
 0x158   :  { %v999_v33 = vpop.f32.mrb[3].mxu1 }
 0x159   :  { %v1194_v33 = vld [vmem:[%s2157_s3] sm:$0x3] }
 0x176   :  { %v1117_v34 = vpop.f32.mrb[0].mxu0 }
 0x177   :  { %v1414_v35 = vadd.f32 %v1117_v34, %v994_v30  ;;  %v1119_v36 = vpop.f32.mrb[1].mxu0 }
 0x178   :  { %v1415_v37 = vadd.f32 %v1119_v36, %v996_v31  ;;  %v1121_v38 = vpop.f32.mrb[2].mxu0 }
 0x179   :  { %v1138_v39 = vrot.slane %v1414_v35, 4  ;;  %v1122_v40 = vpop.f32.mrb[3].mxu0 }
 0x17a   :  { %v1144_v41 = vrot.slane %v1415_v37, 4 }
 0x17b   :  { %v1139_v42 = vadd.f32 %v1414_v35, %v1138_v39 }
 0x17c   :  { %v1145_v43 = vadd.f32 %v1415_v37, %v1144_v41 }
 0x17d   :  { %v1140_v44 = vrot.slane %v1139_v42, 2 }
 0x17e   :  { %v1146_v45 = vrot.slane %v1145_v43, 2 }
 0x17f   :  { %v1141_v46 = vadd.f32 %v1140_v44, %v1139_v42 }
 0x180   :  { %v1147_v47 = vadd.f32 %v1146_v45, %v1145_v43 }
 0x181   :  { %v1142_v48 = vrot.slane %v1141_v46, 1 }
 0x182   :  { %v1148_v49 = vrot.slane %v1147_v47, 1 }
 0x183   :  { %v1143_v50 = vadd.f32 %v1142_v48, %v1141_v46 }
 0x184   :  { %v1149_v51 = vadd.f32 %v1148_v49, %v1147_v47 }
 0x185   :  { %v1150_v52 = vmul.f32 0.125, %v1143_v50 }
 0x186   :  { %v1151_v53 = vmul.f32 0.125, %v1149_v51 }
 0x187   :  { %v1152_v54 = vsub.f32 %v1414_v35, %v1150_v52 }
 0x188   :  { %v1153_v55 = vsub.f32 %v1415_v37, %v1151_v53 }
 0x189   :  { %v1154_v56 = vmul.f32 %v1152_v54, %v1152_v54 }
 0x18a   :  { %v1155_v57 = vmul.f32 %v1153_v55, %v1153_v55 }
 0x18b   :  { %v1156_v58 = vrot.slane %v1154_v56, 4 }
 0x18c   :  { %v1162_v59 = vrot.slane %v1155_v57, 4 }
 0x18d   :  { %v1157_v60 = vadd.f32 %v1156_v58, %v1154_v56 }
 0x18e   :  { %v1163_v61 = vadd.f32 %v1162_v59, %v1155_v57 }
 0x18f   :  { %v1158_v62 = vrot.slane %v1157_v60, 2 }
 0x190   :  { %v1164_v63 = vrot.slane %v1163_v61, 2 }
 0x191   :  { %v1159_v0 = vadd.f32 %v1158_v62, %v1157_v60 }
 0x192   :  { %v1165_v1 = vadd.f32 %v1164_v63, %v1163_v61 }
 0x193   :  { %v1160_v2 = vrot.slane %v1159_v0, 1 }
 0x194   :  { %v1166_v3 = vrot.slane %v1165_v1, 1 }
 0x195   :  { %v1161_v4 = vadd.f32 %v1160_v2, %v1159_v0 }
 0x196   :  { %v1167_v5 = vadd.f32 %v1166_v3, %v1165_v1 }
 0x197   :  { %v1168_v6 = vmul.f32 0.125, %v1161_v4 }
 0x198   :  { %v1169_v7 = vmul.f32 0.125, %v1167_v5 }
 0x199   :  { %v1171_v8 = vadd.f32 1e-05, %v1168_v6 }
 0x19a   :  { %v1172_v9 = vadd.f32 1e-05, %v1169_v7 }
 0x19b   :  { %1655 = vrsqrt.f32 %v1171_v8 }
 0x19c   :  { %1657 = vrsqrt.f32 %v1172_v9 }
 0x1a5   :  { %v1656_v15 = vpop.eup %1655 }
 0x1a6   :  { %v1658_v17 = vpop.eup %1657 }
 0x1a7   :  { %v1177_v18 = vcombine.low %v1656_v15, %v1658_v17 }
 0x1a9   :  { %v1184_v19 = vrot.slane %v1177_v18, %v1183_v16 }
 0x1ab   :  { %v1191_v21 = vrot.slane %v1184_v19, %v1183_v16 }
 0x1ad   :  { %v1193_v24 = vmul.f32 %v1191_v21, %v1170_v20 }
 0x1af   :  { %v1199_v25 = vrot.slane %v1193_v24, %v1198_v22  ;;  %v1203_v26 = vrot.slane %v1193_v24, %v1202_v23 }
 0x1b1   :  { %v1206_v27 = vmul.f32 %v1199_v25, %v1150_v52  ;;  %v1207_v28 = vmul.f32 %v1203_v26, %v1151_v53  ;;  %v1227_v29 = vmul.f32 %v1414_v35, %v1199_v25  ;;  %v1228_v30 = vmul.f32 %v1415_v37, %v1203_v26 }
 0x1b3   :  { %v1210_v31 = vcombine.low %v1206_v27, %v1207_v28 }
 0x1b5   :  { %v1217_v32 = vrot.slane %v1210_v31, %v1183_v16 }
 0x1b7   :  { %v1224_v34 = vrot.slane %v1217_v32, %v1183_v16 }
 0x1b9   :  { %v1226_v36 = vsub.f32 %v1194_v33, %v1224_v34 }
 0x1bb   :  { %v1233_v38 = vrot.slane %v1226_v36, %v1198_v22  ;;  %v1237_v39 = vrot.slane %v1226_v36, %v1202_v23 }
 0x1bd   :  { %v1240_v40 = vadd.f32 %v1233_v38, %v1227_v29  ;;  %v1241_v41 = vadd.f32 %v1237_v39, %v1228_v30 }
 0x1bf   :  { %v1242_v42 = vmax.f32 %v1240_v40, 0.0  ;;  %v1243_v43 = vmax.f32 %v1241_v41, 0.0 }
 0x1c1   :  { %v1413_v44 = vpack.c.bf16 %v1243_v43, %v1242_v42 }
 0x1c3   :  { %1252 = vst [vmem:[%s2158_s4] sm:$0xff] %v1413_v44 }

</bundles_post_ra>
